<compile_context>
chip_gen: v5e
topology: v5e:2x2
jax: 0.10.0
libtpu: 0.0.40
codegen_flags: <defaults>
</compile_context>

<pallas_src>
import math
from functools import partial

import jax
import jax.numpy as jnp
from jax import lax
from jax.experimental import pallas as pl
from jax.experimental.pallas import tpu as pltpu

HIDDEN = 256
APAD = 128                              # lane-padded head / output width (lane-dense I/O)
LOG_STD_MIN, LOG_STD_MAX = -20.0, 2.0
_HALF_LOG_2PI = 0.5 * math.log(2.0 * math.pi)
_LOG2 = math.log(2.0)


def _pi_fc_kernel(x_ref, w1_ref, b1_ref, w2_ref, b2_ref, wh_ref, bh_ref,
                  eps_ref, out_ref, heads_ref, eps_pad_ref, *,
                  action_size, chunk_rows):
    A = action_size

    # --- trunk + fused heads: bf16 MXU inputs, f32 accumulation, full tile. ---
    x = x_ref[...].astype(jnp.bfloat16)
    h1 = jnp.maximum(
        jnp.dot(x, w1_ref[...], preferred_element_type=jnp.float32) + b1_ref[...], 0.0)
    h2 = jnp.maximum(
        jnp.dot(h1.astype(jnp.bfloat16), w2_ref[...],
                preferred_element_type=jnp.float32) + b2_ref[...], 0.0)
    # mu in lanes [0, APAD), log_std in lanes [APAD, 2*APAD); staged in VMEM so the
    # elementwise tail below can be chunked (bounds vreg pressure at large tiles).
    heads_ref[...] = jnp.dot(h2.astype(jnp.bfloat16), wh_ref[...],
                             preferred_element_type=jnp.float32) + bh_ref[...]

    # --- elementwise tail, chunked over `chunk_rows`-row slabs (all f32). ---
    lane = lax.broadcasted_iota(jnp.int32, (chunk_rows, APAD), 1)   # hoisted out of loop
    in_act = lane < A                     # real action lanes
    is_lp_lane = lane == A                # lane that carries the log-prob

    def chunk(c, carry):
        r0 = pl.multiple_of(c * chunk_rows, chunk_rows)
        mu = heads_ref[pl.ds(r0, chunk_rows), pl.ds(0, APAD)]
        ls = jnp.clip(heads_ref[pl.ds(r0, chunk_rows), pl.ds(APAD, APAD)],
                      LOG_STD_MIN, LOG_STD_MAX)

        # Widen eps (chunk_rows, A) -> (chunk_rows, APAD): masked store into the first A
        # lanes of a small VMEM scratch; dead (uninitialized) lanes are masked to zero.
        eps_pad_ref[:, pl.ds(0, A)] = eps_ref[pl.ds(r0, chunk_rows), :]
        eps = jnp.where(in_act, eps_pad_ref[...], 0.0)

        std = jnp.exp(ls)
        z = mu + std * eps                            # reparameterized sample

        # softplus(-2z) = 2*max(-z, 0) + log1p(exp(-2|z|)); e is reused for tanh(z).
        e = jnp.exp(-2.0 * jnp.abs(z))
        sp = 2.0 * jnp.maximum(-z, 0.0) + jnp.log1p(e)

        # Normal(mu, std).log_prob(z) minus tanh-squash correction, one cross-lane sum.
        per = (-0.5 * eps * eps - ls - _HALF_LOG_2PI) - 2.0 * (_LOG2 - z - sp)
        per = jnp.where(in_act, per, 0.0)
        lp = jnp.sum(per, axis=-1, keepdims=True)     # (chunk_rows, 1)

        # tanh(z) = sign(z) * (1 - e) / (1 + e); approx reciprocal rides the EUP slot.
        sgn = jnp.where(z >= 0.0, 1.0, -1.0)
        tanh_z = sgn * (1.0 - e) * pl.reciprocal(1.0 + e, approx=True)
        tanh_z = jnp.clip(tanh_z, -1.0, 1.0)          # guard approx-recip overshoot > 1

        # Lane-dense packed store: lanes [0, A) = tanh(z), lane A = log-prob.
        out_ref[pl.ds(r0, chunk_rows), :] = jnp.where(is_lp_lane, lp, tanh_z)
        return carry

    lax.fori_loop(0, out_ref.shape[0] // chunk_rows, chunk, 0, unroll=True)


def _round_up(n, m):
    return ((n + m - 1) // m) * m


def _tensorcores_per_chip():
    """2 on TPU v7x (two TensorCores per chip), else 1; safe fallback is 1."""
    try:
        kind = jax.devices()[0].device_kind.lower().replace(" ", "")
    except Exception:
        return 1
    return 2 if ("v7" in kind or "tpu7" in kind) else 1


def pi_fc_forward(x, params, eps, *, tile_cap=512, chunk_rows=32):
    """Returns (tanh(z), log_prob) matching Pi_FC.forward(x, deterministic=False,
    with_logprob=True) with the Gaussian noise `eps` supplied explicitly."""
    B = x.shape[0]
    A = eps.shape[1]
    assert 0 < A < APAD, "action_size must be < 128 (lane A stores the log-prob)"

    # Grid shaping: single step on single-TensorCore chips; even 'parallel' grid on v7x.
    n_cores = _tensorcores_per_chip()
    TB = min(tile_cap, _round_up(-(-B // n_cores), 8))
    if TB > chunk_rows:
        TB = _round_up(TB, chunk_rows)
        RC = chunk_rows
    else:
        RC = TB
    Bp = _round_up(B, TB)

    x_p = x.astype(jnp.float32)
    eps_p = eps.astype(jnp.float32)      # natural (B, A) width: no lane padding / copy
    if Bp != B:                          # only pad batch rows when the grid requires it
        x_p = jnp.pad(x_p, ((0, Bp - B), (0, 0)))
        eps_p = jnp.pad(eps_p, ((0, Bp - B), (0, 0)))

    def batch_spec(width):
        return pl.BlockSpec((TB, width), lambda i: (i, 0))

    def resident_spec(shape):            # weights/biases stay VMEM-resident across tiles
        return pl.BlockSpec(shape, lambda i: (0, 0))

    slab = pl.pallas_call(
        partial(_pi_fc_kernel, action_size=A, chunk_rows=RC),
        grid=(Bp // TB,),
        out_shape=jax.ShapeDtypeStruct((Bp, APAD), jnp.float32),
        in_specs=[
            batch_spec(x_p.shape[1]),
            resident_spec(params["w1"].shape),
            resident_spec(params["b1"].shape),
            resident_spec(params["w2"].shape),
            resident_spec(params["b2"].shape),
            resident_spec(params["wh"].shape),
            resident_spec(params["bh"].shape),
            batch_spec(A),
        ],
        out_specs=batch_spec(APAD),
        scratch_shapes=[
            pltpu.VMEM((TB, 2 * APAD), jnp.float32),   # staged head-matmul output
            pltpu.VMEM((RC, APAD), jnp.float32),       # eps widened to 128 lanes
        ],
        compiler_params=pltpu.CompilerParams(
            dimension_semantics=("parallel",)),
    )(x_p, params["w1"], params["b1"], params["w2"], params["b2"],
      params["wh"], params["bh"], eps_p)

    action = slab[:B, :A]
    log_prob = slab[:B, A]
    return action, log_prob


def pi_fc_reference(x, params, eps):
    """Pure-JAX reference with the same bf16-matmul / f32-elementwise numerics."""
    A = eps.shape[1]
    h1 = jax.nn.relu(jnp.dot(x.astype(jnp.bfloat16), params["w1"],
                             preferred_element_type=jnp.float32) + params["b1"])
    h2 = jax.nn.relu(jnp.dot(h1.astype(jnp.bfloat16), params["w2"],
                             preferred_element_type=jnp.float32) + params["b2"])
    heads = jnp.dot(h2.astype(jnp.bfloat16), params["wh"],
                    preferred_element_type=jnp.float32) + params["bh"]
    mu = heads[:, :A]
    ls = jnp.clip(heads[:, APAD:APAD + A], LOG_STD_MIN, LOG_STD_MAX)
    std = jnp.exp(ls)
    z = mu + std * eps
    lp = jnp.sum(-0.5 * eps * eps - ls - _HALF_LOG_2PI, axis=-1)
    corr = jnp.sum(2.0 * (_LOG2 - z - jax.nn.softplus(-2.0 * z)), axis=-1)
    return jnp.tanh(z), lp - corr


def init_params(key, obs_size, action_size):
    """Synthetic parameters; shapes from Pi_FC.__init__ (Linear stored as (in, out)).
    Contract: wh/bh padding columns (outside [0,A) and [APAD,APAD+A)) must be zero."""
    ks = jax.random.split(key, 8)

    def linear(kw, kb, fan_in, fan_out):
        bound = 1.0 / math.sqrt(fan_in)
        w = jax.random.uniform(kw, (fan_in, fan_out), jnp.float32, -bound, bound)
        b = jax.random.uniform(kb, (1, fan_out), jnp.float32, -bound, bound)
        return w, b

    w1, b1 = linear(ks[0], ks[1], obs_size, HIDDEN)
    w2, b2 = linear(ks[2], ks[3], HIDDEN, HIDDEN)
    wmu, bmu = linear(ks[4], ks[5], HIDDEN, action_size)
    wls, bls = linear(ks[6], ks[7], HIDDEN, action_size)

    # Fuse + lane-pad the two heads: columns [0,A) = mu, [APAD, APAD+A) = log_std,
    # remaining columns zero -> one lane-dense head matmul in the kernel.
    wh = jnp.zeros((HIDDEN, 2 * APAD), jnp.float32)
    wh = wh.at[:, :action_size].set(wmu).at[:, APAD:APAD + action_size].set(wls)
    bh = jnp.zeros((1, 2 * APAD), jnp.float32)
    bh = bh.at[:, :action_size].set(bmu[0]).at[:, APAD:APAD + action_size].set(bls[0])

    # Weights in bf16 (MXU inputs, half the DMA); biases stay f32.
    return dict(
        w1=w1.astype(jnp.bfloat16), b1=b1,
        w2=w2.astype(jnp.bfloat16), b2=b2,
        wh=wh.astype(jnp.bfloat16), bh=bh,
    )


if __name__ == "__main__":
    batch, obs_size, action_size = 256, 16, 8

    key = jax.random.PRNGKey(0)
    k_param, k_x, k_eps = jax.random.split(key, 3)

    params = init_params(k_param, obs_size, action_size)
    x = jax.random.normal(k_x, (batch, obs_size), jnp.float32)
    eps = jax.random.normal(k_eps, (batch, action_size), jnp.float32)

    fwd = jax.jit(pi_fc_forward)
    action, logprob = fwd(x, params, eps)
    action = jax.block_until_ready(action)
    logprob = jax.block_until_ready(logprob)

    ref_action, ref_lp = jax.jit(pi_fc_reference)(x, params, eps)
    ref_action = jax.block_until_ready(ref_action)
    ref_lp = jax.block_until_ready(ref_lp)

    assert action.shape == (batch, action_size)
    assert logprob.shape == (batch,)
    assert bool(jnp.all(jnp.isfinite(action))) and bool(jnp.all(jnp.isfinite(logprob)))
    assert bool(jnp.all(jnp.abs(action) <= 1.0))
    assert bool(jnp.allclose(action, ref_action, atol=2e-2, rtol=2e-2))
    assert bool(jnp.allclose(logprob, ref_lp, atol=5e-2, rtol=5e-2))

    print("KERNEL_OK")
</pallas_src>

<mosaic_0001>
module attributes {stable_mosaic.version = 11 : i64} {
  func.func @_pi_fc_kernel(%arg0: i32, %arg1: memref<256x16xf32, #tpu.memory_space<vmem>>, %arg2: memref<16x256xbf16, #tpu.memory_space<vmem>>, %arg3: memref<1x256xf32, #tpu.memory_space<vmem>>, %arg4: memref<256x256xbf16, #tpu.memory_space<vmem>>, %arg5: memref<1x256xf32, #tpu.memory_space<vmem>>, %arg6: memref<256x256xbf16, #tpu.memory_space<vmem>>, %arg7: memref<1x256xf32, #tpu.memory_space<vmem>>, %arg8: memref<256x8xf32, #tpu.memory_space<vmem>>, %arg9: memref<256x128xf32, #tpu.memory_space<vmem>>, %arg10: memref<256x256xf32, #tpu.memory_space<vmem>>, %arg11: memref<32x128xf32, #tpu.memory_space<vmem>>) attributes {dimension_semantics = [#tpu.dimension_semantics<parallel>], iteration_bounds = array<i64: 1>, scalar_prefetch = 0 : i64, scratch_operands = 2 : i64, tpu.core_type = #tpu.core_type<tc>, window_params = [{transform_indices = @transform_0, window_bounds = array<i64: 256, 16>}, {pipeline_mode = #tpu.pipeline_mode<synchronous>, transform_indices = @transform_1, window_bounds = array<i64: 16, 256>}, {pipeline_mode = #tpu.pipeline_mode<synchronous>, transform_indices = @transform_2, window_bounds = array<i64: 1, 256>}, {pipeline_mode = #tpu.pipeline_mode<synchronous>, transform_indices = @transform_3, window_bounds = array<i64: 256, 256>}, {pipeline_mode = #tpu.pipeline_mode<synchronous>, transform_indices = @transform_4, window_bounds = array<i64: 1, 256>}, {pipeline_mode = #tpu.pipeline_mode<synchronous>, transform_indices = @transform_5, window_bounds = array<i64: 256, 256>}, {pipeline_mode = #tpu.pipeline_mode<synchronous>, transform_indices = @transform_6, window_bounds = array<i64: 1, 256>}, {transform_indices = @transform_7, window_bounds = array<i64: 256, 8>}, {transform_indices = @transform_8, window_bounds = array<i64: 256, 128>}]} {
    %c0 = arith.constant 0 : index
    %c0_0 = arith.constant 0 : index
    %0 = vector.load %arg1[%c0, %c0_0] : memref<256x16xf32, #tpu.memory_space<vmem>>, vector<256x16xf32>
    %1 = arith.truncf %0 : vector<256x16xf32> to vector<256x16xbf16>
    %c0_1 = arith.constant 0 : index
    %c0_2 = arith.constant 0 : index
    %2 = vector.load %arg2[%c0_1, %c0_2] : memref<16x256xbf16, #tpu.memory_space<vmem>>, vector<16x256xbf16>
    %cst = arith.constant dense<0.000000e+00> : vector<256x256xf32>
    %3 = tpu.matmul %1, %2, %cst {dimension_numbers = #tpu.dot_dimension_numbers<[1], [0], [0], [1], [0, 0, 1, 1], [], []>} : vector<256x16xbf16>, vector<16x256xbf16>, vector<256x256xf32> -> vector<256x256xf32>
    %c0_3 = arith.constant 0 : index
    %c0_4 = arith.constant 0 : index
    %4 = vector.load %arg3[%c0_3, %c0_4] : memref<1x256xf32, #tpu.memory_space<vmem>>, vector<1x256xf32>
    %5 = vector.broadcast %4 : vector<1x256xf32> to vector<256x256xf32>
    %6 = arith.addf %3, %5 : vector<256x256xf32>
    %cst_5 = arith.constant 0.000000e+00 : f32
    %7 = vector.broadcast %cst_5 : f32 to vector<256x256xf32>
    %8 = arith.maximumf %6, %7 : vector<256x256xf32>
    %9 = arith.truncf %8 : vector<256x256xf32> to vector<256x256xbf16>
    %c0_6 = arith.constant 0 : index
    %c0_7 = arith.constant 0 : index
    %10 = vector.load %arg4[%c0_6, %c0_7] : memref<256x256xbf16, #tpu.memory_space<vmem>>, vector<256x256xbf16>
    %cst_8 = arith.constant dense<0.000000e+00> : vector<256x256xf32>
    %11 = tpu.matmul %9, %10, %cst_8 {dimension_numbers = #tpu.dot_dimension_numbers<[1], [0], [0], [1], [0, 0, 1, 1], [], []>} : vector<256x256xbf16>, vector<256x256xbf16>, vector<256x256xf32> -> vector<256x256xf32>
    %c0_9 = arith.constant 0 : index
    %c0_10 = arith.constant 0 : index
    %12 = vector.load %arg5[%c0_9, %c0_10] : memref<1x256xf32, #tpu.memory_space<vmem>>, vector<1x256xf32>
    %13 = vector.broadcast %12 : vector<1x256xf32> to vector<256x256xf32>
    %14 = arith.addf %11, %13 : vector<256x256xf32>
    %cst_11 = arith.constant 0.000000e+00 : f32
    %15 = vector.broadcast %cst_11 : f32 to vector<256x256xf32>
    %16 = arith.maximumf %14, %15 : vector<256x256xf32>
    %17 = arith.truncf %16 : vector<256x256xf32> to vector<256x256xbf16>
    %c0_12 = arith.constant 0 : index
    %c0_13 = arith.constant 0 : index
    %18 = vector.load %arg6[%c0_12, %c0_13] : memref<256x256xbf16, #tpu.memory_space<vmem>>, vector<256x256xbf16>
    %cst_14 = arith.constant dense<0.000000e+00> : vector<256x256xf32>
    %19 = tpu.matmul %17, %18, %cst_14 {dimension_numbers = #tpu.dot_dimension_numbers<[1], [0], [0], [1], [0, 0, 1, 1], [], []>} : vector<256x256xbf16>, vector<256x256xbf16>, vector<256x256xf32> -> vector<256x256xf32>
    %c0_15 = arith.constant 0 : index
    %c0_16 = arith.constant 0 : index
    %20 = vector.load %arg7[%c0_15, %c0_16] : memref<1x256xf32, #tpu.memory_space<vmem>>, vector<1x256xf32>
    %21 = vector.broadcast %20 : vector<1x256xf32> to vector<256x256xf32>
    %22 = arith.addf %19, %21 : vector<256x256xf32>
    %c0_17 = arith.constant 0 : index
    %c0_18 = arith.constant 0 : index
    %23 = vector.load %arg10[%c0_17, %c0_18] : memref<256x256xf32, #tpu.memory_space<vmem>>, vector<256x256xf32>
    tpu.vector_store %arg10[%c0_17, %c0_18], %22 {strides = array<i32>} : memref<256x256xf32, #tpu.memory_space<vmem>>, vector<256x256xf32>,
    %24 = tpu.iota {dimensions = array<i32: 1>} : vector<32x128xi32>
    %c8_i32 = arith.constant 8 : i32
    %25 = vector.broadcast %c8_i32 : i32 to vector<32x128xi32>
    %26 = arith.cmpi slt, %24, %25 : vector<32x128xi32>
    %c8_i32_19 = arith.constant 8 : i32
    %27 = vector.broadcast %c8_i32_19 : i32 to vector<32x128xi32>
    %28 = arith.cmpi eq, %24, %27 : vector<32x128xi32>
    %c0_i32 = arith.constant 0 : i32
    %c32_i32 = arith.constant 32 : i32
    %29 = arith.muli %c0_i32, %c32_i32 : i32
    %30 = tpu.assume_multiple %29, 32 : i32
    %31 = arith.index_cast %30 : i32 to index
    %c0_20 = arith.constant 0 : index
    %32 = vector.load %arg10[%31, %c0_20] : memref<256x256xf32, #tpu.memory_space<vmem>>, vector<32x128xf32>
    %33 = arith.index_cast %30 : i32 to index
    %c128 = arith.constant 128 : index
    %34 = vector.load %arg10[%33, %c128] : memref<256x256xf32, #tpu.memory_space<vmem>>, vector<32x128xf32>
    %cst_21 = arith.constant -2.000000e+01 : f32
    %cst_22 = arith.constant 2.000000e+00 : f32
    %35 = vector.broadcast %cst_21 : f32 to vector<32x128xf32>
    %36 = arith.maximumf %35, %34 : vector<32x128xf32>
    %37 = vector.broadcast %cst_22 : f32 to vector<32x128xf32>
    %38 = arith.minimumf %37, %36 : vector<32x128xf32>
    %39 = arith.index_cast %30 : i32 to index
    %c0_23 = arith.constant 0 : index
    %40 = vector.load %arg8[%39, %c0_23] : memref<256x8xf32, #tpu.memory_space<vmem>>, vector<32x8xf32>
    %c0_24 = arith.constant 0 : index
    %c0_25 = arith.constant 0 : index
    %41 = vector.load %arg11[%c0_24, %c0_25] : memref<32x128xf32, #tpu.memory_space<vmem>>, vector<32x8xf32>
    tpu.vector_store %arg11[%c0_24, %c0_25], %40 {strides = array<i32>} : memref<32x128xf32, #tpu.memory_space<vmem>>, vector<32x8xf32>,
    %c0_26 = arith.constant 0 : index
    %c0_27 = arith.constant 0 : index
    %42 = vector.load %arg11[%c0_26, %c0_27] : memref<32x128xf32, #tpu.memory_space<vmem>>, vector<32x128xf32>
    %cst_28 = arith.constant 0.000000e+00 : f32
    %43 = vector.broadcast %cst_28 : f32 to vector<32x128xf32>
    %44 = arith.select %26, %42, %43 : vector<32x128xi1>, vector<32x128xf32>
    %45 = math.exp %38 : vector<32x128xf32>
    %46 = arith.mulf %45, %44 : vector<32x128xf32>
    %47 = arith.addf %32, %46 : vector<32x128xf32>
    %48 = math.absf %47 : vector<32x128xf32>
    %cst_29 = arith.constant -2.000000e+00 : f32
    %49 = vector.broadcast %cst_29 : f32 to vector<32x128xf32>
    %50 = arith.mulf %49, %48 : vector<32x128xf32>
    %51 = math.exp %50 : vector<32x128xf32>
    %cst_30 = arith.constant 0.000000e+00 : f32
    %52 = vector.broadcast %cst_30 : f32 to vector<32x128xf32>
    %53 = arith.subf %52, %47 : vector<32x128xf32>
    %cst_31 = arith.constant 0.000000e+00 : f32
    %54 = vector.broadcast %cst_31 : f32 to vector<32x128xf32>
    %55 = arith.maximumf %53, %54 : vector<32x128xf32>
    %cst_32 = arith.constant 2.000000e+00 : f32
    %56 = vector.broadcast %cst_32 : f32 to vector<32x128xf32>
    %57 = arith.mulf %56, %55 : vector<32x128xf32>
    %58 = math.log1p %51 : vector<32x128xf32>
    %59 = arith.addf %57, %58 : vector<32x128xf32>
    %cst_33 = arith.constant -5.000000e-01 : f32
    %60 = vector.broadcast %cst_33 : f32 to vector<32x128xf32>
    %61 = arith.mulf %60, %44 : vector<32x128xf32>
    %62 = arith.mulf %61, %44 : vector<32x128xf32>
    %63 = arith.subf %62, %38 : vector<32x128xf32>
    %cst_34 = arith.constant 0.918938517 : f32
    %64 = vector.broadcast %cst_34 : f32 to vector<32x128xf32>
    %65 = arith.subf %63, %64 : vector<32x128xf32>
    %cst_35 = arith.constant 0.693147182 : f32
    %66 = vector.broadcast %cst_35 : f32 to vector<32x128xf32>
    %67 = arith.subf %66, %47 : vector<32x128xf32>
    %68 = arith.subf %67, %59 : vector<32x128xf32>
    %cst_36 = arith.constant 2.000000e+00 : f32
    %69 = vector.broadcast %cst_36 : f32 to vector<32x128xf32>
    %70 = arith.mulf %69, %68 : vector<32x128xf32>
    %71 = arith.subf %65, %70 : vector<32x128xf32>
    %cst_37 = arith.constant 0.000000e+00 : f32
    %72 = vector.broadcast %cst_37 : f32 to vector<32x128xf32>
    %73 = arith.select %26, %71, %72 : vector<32x128xi1>, vector<32x128xf32>
    %cst_38 = arith.constant dense<0.000000e+00> : vector<32xf32>
    %74 = vector.multi_reduction <add>, %73, %cst_38 [1] : vector<32x128xf32> to vector<32xf32>
    %75 = vector.shape_cast %74 : vector<32xf32> to vector<32x1xf32>
    %cst_39 = arith.constant 0.000000e+00 : f32
    %76 = vector.broadcast %cst_39 : f32 to vector<32x128xf32>
    %77 = arith.cmpf oge, %47, %76 : vector<32x128xf32>
    %cst_40 = arith.constant 1.000000e+00 : f32
    %cst_41 = arith.constant -1.000000e+00 : f32
    %78 = vector.broadcast %cst_40 : f32 to vector<32x128xf32>
    %79 = vector.broadcast %cst_41 : f32 to vector<32x128xf32>
    %80 = arith.select %77, %78, %79 : vector<32x128xi1>, vector<32x128xf32>
    %cst_42 = arith.constant 1.000000e+00 : f32
    %81 = vector.broadcast %cst_42 : f32 to vector<32x128xf32>
    %82 = arith.subf %81, %51 : vector<32x128xf32>
    %83 = arith.mulf %80, %82 : vector<32x128xf32>
    %cst_43 = arith.constant 1.000000e+00 : f32
    %84 = vector.broadcast %cst_43 : f32 to vector<32x128xf32>
    %85 = arith.addf %84, %51 : vector<32x128xf32>
    %86 = tpu.reciprocal %85 {approx = true} : vector<32x128xf32> -> vector<32x128xf32>
    %87 = arith.mulf %83, %86 : vector<32x128xf32>
    %cst_44 = arith.constant -1.000000e+00 : f32
    %cst_45 = arith.constant 1.000000e+00 : f32
    %88 = vector.broadcast %cst_44 : f32 to vector<32x128xf32>
    %89 = arith.maximumf %88, %87 : vector<32x128xf32>
    %90 = vector.broadcast %cst_45 : f32 to vector<32x128xf32>
    %91 = arith.minimumf %90, %89 : vector<32x128xf32>
    %92 = vector.shape_cast %75 : vector<32x1xf32> to vector<32x1xf32>
    %93 = vector.broadcast %92 : vector<32x1xf32> to vector<32x128xf32>
    %94 = arith.select %28, %93, %91 : vector<32x128xi1>, vector<32x128xf32>
    %95 = arith.index_cast %30 : i32 to index
    %c0_46 = arith.constant 0 : index
    %96 = vector.load %arg9[%95, %c0_46] : memref<256x128xf32, #tpu.memory_space<vmem>>, vector<32x128xf32>
    tpu.vector_store %arg9[%95, %c0_46], %94 {strides = array<i32>} : memref<256x128xf32, #tpu.memory_space<vmem>>, vector<32x128xf32>,
    %c1_i32 = arith.constant 1 : i32
    %c32_i32_47 = arith.constant 32 : i32
    %97 = arith.muli %c1_i32, %c32_i32_47 : i32
    %98 = tpu.assume_multiple %97, 32 : i32
    %99 = arith.index_cast %98 : i32 to index
    %c0_48 = arith.constant 0 : index
    %100 = vector.load %arg10[%99, %c0_48] : memref<256x256xf32, #tpu.memory_space<vmem>>, vector<32x128xf32>
    %101 = arith.index_cast %98 : i32 to index
    %c128_49 = arith.constant 128 : index
    %102 = vector.load %arg10[%101, %c128_49] : memref<256x256xf32, #tpu.memory_space<vmem>>, vector<32x128xf32>
    %cst_50 = arith.constant -2.000000e+01 : f32
    %cst_51 = arith.constant 2.000000e+00 : f32
    %103 = vector.broadcast %cst_50 : f32 to vector<32x128xf32>
    %104 = arith.maximumf %103, %102 : vector<32x128xf32>
    %105 = vector.broadcast %cst_51 : f32 to vector<32x128xf32>
    %106 = arith.minimumf %105, %104 : vector<32x128xf32>
    %107 = arith.index_cast %98 : i32 to index
    %c0_52 = arith.constant 0 : index
    %108 = vector.load %arg8[%107, %c0_52] : memref<256x8xf32, #tpu.memory_space<vmem>>, vector<32x8xf32>
    %c0_53 = arith.constant 0 : index
    %c0_54 = arith.constant 0 : index
    %109 = vector.load %arg11[%c0_53, %c0_54] : memref<32x128xf32, #tpu.memory_space<vmem>>, vector<32x8xf32>
    tpu.vector_store %arg11[%c0_53, %c0_54], %108 {strides = array<i32>} : memref<32x128xf32, #tpu.memory_space<vmem>>, vector<32x8xf32>,
    %c0_55 = arith.constant 0 : index
    %c0_56 = arith.constant 0 : index
    %110 = vector.load %arg11[%c0_55, %c0_56] : memref<32x128xf32, #tpu.memory_space<vmem>>, vector<32x128xf32>
    %cst_57 = arith.constant 0.000000e+00 : f32
    %111 = vector.broadcast %cst_57 : f32 to vector<32x128xf32>
    %112 = arith.select %26, %110, %111 : vector<32x128xi1>, vector<32x128xf32>
    %113 = math.exp %106 : vector<32x128xf32>
    %114 = arith.mulf %113, %112 : vector<32x128xf32>
    %115 = arith.addf %100, %114 : vector<32x128xf32>
    %116 = math.absf %115 : vector<32x128xf32>
    %cst_58 = arith.constant -2.000000e+00 : f32
    %117 = vector.broadcast %cst_58 : f32 to vector<32x128xf32>
    %118 = arith.mulf %117, %116 : vector<32x128xf32>
    %119 = math.exp %118 : vector<32x128xf32>
    %cst_59 = arith.constant 0.000000e+00 : f32
    %120 = vector.broadcast %cst_59 : f32 to vector<32x128xf32>
    %121 = arith.subf %120, %115 : vector<32x128xf32>
    %cst_60 = arith.constant 0.000000e+00 : f32
    %122 = vector.broadcast %cst_60 : f32 to vector<32x128xf32>
    %123 = arith.maximumf %121, %122 : vector<32x128xf32>
    %cst_61 = arith.constant 2.000000e+00 : f32
    %124 = vector.broadcast %cst_61 : f32 to vector<32x128xf32>
    %125 = arith.mulf %124, %123 : vector<32x128xf32>
    %126 = math.log1p %119 : vector<32x128xf32>
    %127 = arith.addf %125, %126 : vector<32x128xf32>
    %cst_62 = arith.constant -5.000000e-01 : f32
    %128 = vector.broadcast %cst_62 : f32 to vector<32x128xf32>
    %129 = arith.mulf %128, %112 : vector<32x128xf32>
    %130 = arith.mulf %129, %112 : vector<32x128xf32>
    %131 = arith.subf %130, %106 : vector<32x128xf32>
    %cst_63 = arith.constant 0.918938517 : f32
    %132 = vector.broadcast %cst_63 : f32 to vector<32x128xf32>
    %133 = arith.subf %131, %132 : vector<32x128xf32>
    %cst_64 = arith.constant 0.693147182 : f32
    %134 = vector.broadcast %cst_64 : f32 to vector<32x128xf32>
    %135 = arith.subf %134, %115 : vector<32x128xf32>
    %136 = arith.subf %135, %127 : vector<32x128xf32>
    %cst_65 = arith.constant 2.000000e+00 : f32
    %137 = vector.broadcast %cst_65 : f32 to vector<32x128xf32>
    %138 = arith.mulf %137, %136 : vector<32x128xf32>
    %139 = arith.subf %133, %138 : vector<32x128xf32>
    %cst_66 = arith.constant 0.000000e+00 : f32
    %140 = vector.broadcast %cst_66 : f32 to vector<32x128xf32>
    %141 = arith.select %26, %139, %140 : vector<32x128xi1>, vector<32x128xf32>
    %cst_67 = arith.constant dense<0.000000e+00> : vector<32xf32>
    %142 = vector.multi_reduction <add>, %141, %cst_67 [1] : vector<32x128xf32> to vector<32xf32>
    %143 = vector.shape_cast %142 : vector<32xf32> to vector<32x1xf32>
    %cst_68 = arith.constant 0.000000e+00 : f32
    %144 = vector.broadcast %cst_68 : f32 to vector<32x128xf32>
    %145 = arith.cmpf oge, %115, %144 : vector<32x128xf32>
    %cst_69 = arith.constant 1.000000e+00 : f32
    %cst_70 = arith.constant -1.000000e+00 : f32
    %146 = vector.broadcast %cst_69 : f32 to vector<32x128xf32>
    %147 = vector.broadcast %cst_70 : f32 to vector<32x128xf32>
    %148 = arith.select %145, %146, %147 : vector<32x128xi1>, vector<32x128xf32>
    %cst_71 = arith.constant 1.000000e+00 : f32
    %149 = vector.broadcast %cst_71 : f32 to vector<32x128xf32>
    %150 = arith.subf %149, %119 : vector<32x128xf32>
    %151 = arith.mulf %148, %150 : vector<32x128xf32>
    %cst_72 = arith.constant 1.000000e+00 : f32
    %152 = vector.broadcast %cst_72 : f32 to vector<32x128xf32>
    %153 = arith.addf %152, %119 : vector<32x128xf32>
    %154 = tpu.reciprocal %153 {approx = true} : vector<32x128xf32> -> vector<32x128xf32>
    %155 = arith.mulf %151, %154 : vector<32x128xf32>
    %cst_73 = arith.constant -1.000000e+00 : f32
    %cst_74 = arith.constant 1.000000e+00 : f32
    %156 = vector.broadcast %cst_73 : f32 to vector<32x128xf32>
    %157 = arith.maximumf %156, %155 : vector<32x128xf32>
    %158 = vector.broadcast %cst_74 : f32 to vector<32x128xf32>
    %159 = arith.minimumf %158, %157 : vector<32x128xf32>
    %160 = vector.shape_cast %143 : vector<32x1xf32> to vector<32x1xf32>
    %161 = vector.broadcast %160 : vector<32x1xf32> to vector<32x128xf32>
    %162 = arith.select %28, %161, %159 : vector<32x128xi1>, vector<32x128xf32>
    %163 = arith.index_cast %98 : i32 to index
    %c0_75 = arith.constant 0 : index
    %164 = vector.load %arg9[%163, %c0_75] : memref<256x128xf32, #tpu.memory_space<vmem>>, vector<32x128xf32>
    tpu.vector_store %arg9[%163, %c0_75], %162 {strides = array<i32>} : memref<256x128xf32, #tpu.memory_space<vmem>>, vector<32x128xf32>,
    %c2_i32 = arith.constant 2 : i32
    %c32_i32_76 = arith.constant 32 : i32
    %165 = arith.muli %c2_i32, %c32_i32_76 : i32
    %166 = tpu.assume_multiple %165, 32 : i32
    %167 = arith.index_cast %166 : i32 to index
    %c0_77 = arith.constant 0 : index
    %168 = vector.load %arg10[%167, %c0_77] : memref<256x256xf32, #tpu.memory_space<vmem>>, vector<32x128xf32>
    %169 = arith.index_cast %166 : i32 to index
    %c128_78 = arith.constant 128 : index
    %170 = vector.load %arg10[%169, %c128_78] : memref<256x256xf32, #tpu.memory_space<vmem>>, vector<32x128xf32>
    %cst_79 = arith.constant -2.000000e+01 : f32
    %cst_80 = arith.constant 2.000000e+00 : f32
    %171 = vector.broadcast %cst_79 : f32 to vector<32x128xf32>
    %172 = arith.maximumf %171, %170 : vector<32x128xf32>
    %173 = vector.broadcast %cst_80 : f32 to vector<32x128xf32>
    %174 = arith.minimumf %173, %172 : vector<32x128xf32>
    %175 = arith.index_cast %166 : i32 to index
    %c0_81 = arith.constant 0 : index
    %176 = vector.load %arg8[%175, %c0_81] : memref<256x8xf32, #tpu.memory_space<vmem>>, vector<32x8xf32>
    %c0_82 = arith.constant 0 : index
    %c0_83 = arith.constant 0 : index
    %177 = vector.load %arg11[%c0_82, %c0_83] : memref<32x128xf32, #tpu.memory_space<vmem>>, vector<32x8xf32>
    tpu.vector_store %arg11[%c0_82, %c0_83], %176 {strides = array<i32>} : memref<32x128xf32, #tpu.memory_space<vmem>>, vector<32x8xf32>,
    %c0_84 = arith.constant 0 : index
    %c0_85 = arith.constant 0 : index
    %178 = vector.load %arg11[%c0_84, %c0_85] : memref<32x128xf32, #tpu.memory_space<vmem>>, vector<32x128xf32>
    %cst_86 = arith.constant 0.000000e+00 : f32
    %179 = vector.broadcast %cst_86 : f32 to vector<32x128xf32>
    %180 = arith.select %26, %178, %179 : vector<32x128xi1>, vector<32x128xf32>
    %181 = math.exp %174 : vector<32x128xf32>
    %182 = arith.mulf %181, %180 : vector<32x128xf32>
    %183 = arith.addf %168, %182 : vector<32x128xf32>
    %184 = math.absf %183 : vector<32x128xf32>
    %cst_87 = arith.constant -2.000000e+00 : f32
    %185 = vector.broadcast %cst_87 : f32 to vector<32x128xf32>
    %186 = arith.mulf %185, %184 : vector<32x128xf32>
    %187 = math.exp %186 : vector<32x128xf32>
    %cst_88 = arith.constant 0.000000e+00 : f32
    %188 = vector.broadcast %cst_88 : f32 to vector<32x128xf32>
    %189 = arith.subf %188, %183 : vector<32x128xf32>
    %cst_89 = arith.constant 0.000000e+00 : f32
    %190 = vector.broadcast %cst_89 : f32 to vector<32x128xf32>
    %191 = arith.maximumf %189, %190 : vector<32x128xf32>
    %cst_90 = arith.constant 2.000000e+00 : f32
    %192 = vector.broadcast %cst_90 : f32 to vector<32x128xf32>
    %193 = arith.mulf %192, %191 : vector<32x128xf32>
    %194 = math.log1p %187 : vector<32x128xf32>
    %195 = arith.addf %193, %194 : vector<32x128xf32>
    %cst_91 = arith.constant -5.000000e-01 : f32
    %196 = vector.broadcast %cst_91 : f32 to vector<32x128xf32>
    %197 = arith.mulf %196, %180 : vector<32x128xf32>
    %198 = arith.mulf %197, %180 : vector<32x128xf32>
    %199 = arith.subf %198, %174 : vector<32x128xf32>
    %cst_92 = arith.constant 0.918938517 : f32
    %200 = vector.broadcast %cst_92 : f32 to vector<32x128xf32>
    %201 = arith.subf %199, %200 : vector<32x128xf32>
    %cst_93 = arith.constant 0.693147182 : f32
    %202 = vector.broadcast %cst_93 : f32 to vector<32x128xf32>
    %203 = arith.subf %202, %183 : vector<32x128xf32>
    %204 = arith.subf %203, %195 : vector<32x128xf32>
    %cst_94 = arith.constant 2.000000e+00 : f32
    %205 = vector.broadcast %cst_94 : f32 to vector<32x128xf32>
    %206 = arith.mulf %205, %204 : vector<32x128xf32>
    %207 = arith.subf %201, %206 : vector<32x128xf32>
    %cst_95 = arith.constant 0.000000e+00 : f32
    %208 = vector.broadcast %cst_95 : f32 to vector<32x128xf32>
    %209 = arith.select %26, %207, %208 : vector<32x128xi1>, vector<32x128xf32>
    %cst_96 = arith.constant dense<0.000000e+00> : vector<32xf32>
    %210 = vector.multi_reduction <add>, %209, %cst_96 [1] : vector<32x128xf32> to vector<32xf32>
    %211 = vector.shape_cast %210 : vector<32xf32> to vector<32x1xf32>
    %cst_97 = arith.constant 0.000000e+00 : f32
    %212 = vector.broadcast %cst_97 : f32 to vector<32x128xf32>
    %213 = arith.cmpf oge, %183, %212 : vector<32x128xf32>
    %cst_98 = arith.constant 1.000000e+00 : f32
    %cst_99 = arith.constant -1.000000e+00 : f32
    %214 = vector.broadcast %cst_98 : f32 to vector<32x128xf32>
    %215 = vector.broadcast %cst_99 : f32 to vector<32x128xf32>
    %216 = arith.select %213, %214, %215 : vector<32x128xi1>, vector<32x128xf32>
    %cst_100 = arith.constant 1.000000e+00 : f32
    %217 = vector.broadcast %cst_100 : f32 to vector<32x128xf32>
    %218 = arith.subf %217, %187 : vector<32x128xf32>
    %219 = arith.mulf %216, %218 : vector<32x128xf32>
    %cst_101 = arith.constant 1.000000e+00 : f32
    %220 = vector.broadcast %cst_101 : f32 to vector<32x128xf32>
    %221 = arith.addf %220, %187 : vector<32x128xf32>
    %222 = tpu.reciprocal %221 {approx = true} : vector<32x128xf32> -> vector<32x128xf32>
    %223 = arith.mulf %219, %222 : vector<32x128xf32>
    %cst_102 = arith.constant -1.000000e+00 : f32
    %cst_103 = arith.constant 1.000000e+00 : f32
    %224 = vector.broadcast %cst_102 : f32 to vector<32x128xf32>
    %225 = arith.maximumf %224, %223 : vector<32x128xf32>
    %226 = vector.broadcast %cst_103 : f32 to vector<32x128xf32>
    %227 = arith.minimumf %226, %225 : vector<32x128xf32>
    %228 = vector.shape_cast %211 : vector<32x1xf32> to vector<32x1xf32>
    %229 = vector.broadcast %228 : vector<32x1xf32> to vector<32x128xf32>
    %230 = arith.select %28, %229, %227 : vector<32x128xi1>, vector<32x128xf32>
    %231 = arith.index_cast %166 : i32 to index
    %c0_104 = arith.constant 0 : index
    %232 = vector.load %arg9[%231, %c0_104] : memref<256x128xf32, #tpu.memory_space<vmem>>, vector<32x128xf32>
    tpu.vector_store %arg9[%231, %c0_104], %230 {strides = array<i32>} : memref<256x128xf32, #tpu.memory_space<vmem>>, vector<32x128xf32>,
    %c3_i32 = arith.constant 3 : i32
    %c32_i32_105 = arith.constant 32 : i32
    %233 = arith.muli %c3_i32, %c32_i32_105 : i32
    %234 = tpu.assume_multiple %233, 32 : i32
    %235 = arith.index_cast %234 : i32 to index
    %c0_106 = arith.constant 0 : index
    %236 = vector.load %arg10[%235, %c0_106] : memref<256x256xf32, #tpu.memory_space<vmem>>, vector<32x128xf32>
    %237 = arith.index_cast %234 : i32 to index
    %c128_107 = arith.constant 128 : index
    %238 = vector.load %arg10[%237, %c128_107] : memref<256x256xf32, #tpu.memory_space<vmem>>, vector<32x128xf32>
    %cst_108 = arith.constant -2.000000e+01 : f32
    %cst_109 = arith.constant 2.000000e+00 : f32
    %239 = vector.broadcast %cst_108 : f32 to vector<32x128xf32>
    %240 = arith.maximumf %239, %238 : vector<32x128xf32>
    %241 = vector.broadcast %cst_109 : f32 to vector<32x128xf32>
    %242 = arith.minimumf %241, %240 : vector<32x128xf32>
    %243 = arith.index_cast %234 : i32 to index
    %c0_110 = arith.constant 0 : index
    %244 = vector.load %arg8[%243, %c0_110] : memref<256x8xf32, #tpu.memory_space<vmem>>, vector<32x8xf32>
    %c0_111 = arith.constant 0 : index
    %c0_112 = arith.constant 0 : index
    %245 = vector.load %arg11[%c0_111, %c0_112] : memref<32x128xf32, #tpu.memory_space<vmem>>, vector<32x8xf32>
    tpu.vector_store %arg11[%c0_111, %c0_112], %244 {strides = array<i32>} : memref<32x128xf32, #tpu.memory_space<vmem>>, vector<32x8xf32>,
    %c0_113 = arith.constant 0 : index
    %c0_114 = arith.constant 0 : index
    %246 = vector.load %arg11[%c0_113, %c0_114] : memref<32x128xf32, #tpu.memory_space<vmem>>, vector<32x128xf32>
    %cst_115 = arith.constant 0.000000e+00 : f32
    %247 = vector.broadcast %cst_115 : f32 to vector<32x128xf32>
    %248 = arith.select %26, %246, %247 : vector<32x128xi1>, vector<32x128xf32>
    %249 = math.exp %242 : vector<32x128xf32>
    %250 = arith.mulf %249, %248 : vector<32x128xf32>
    %251 = arith.addf %236, %250 : vector<32x128xf32>
    %252 = math.absf %251 : vector<32x128xf32>
    %cst_116 = arith.constant -2.000000e+00 : f32
    %253 = vector.broadcast %cst_116 : f32 to vector<32x128xf32>
    %254 = arith.mulf %253, %252 : vector<32x128xf32>
    %255 = math.exp %254 : vector<32x128xf32>
    %cst_117 = arith.constant 0.000000e+00 : f32
    %256 = vector.broadcast %cst_117 : f32 to vector<32x128xf32>
    %257 = arith.subf %256, %251 : vector<32x128xf32>
    %cst_118 = arith.constant 0.000000e+00 : f32
    %258 = vector.broadcast %cst_118 : f32 to vector<32x128xf32>
    %259 = arith.maximumf %257, %258 : vector<32x128xf32>
    %cst_119 = arith.constant 2.000000e+00 : f32
    %260 = vector.broadcast %cst_119 : f32 to vector<32x128xf32>
    %261 = arith.mulf %260, %259 : vector<32x128xf32>
    %262 = math.log1p %255 : vector<32x128xf32>
    %263 = arith.addf %261, %262 : vector<32x128xf32>
    %cst_120 = arith.constant -5.000000e-01 : f32
    %264 = vector.broadcast %cst_120 : f32 to vector<32x128xf32>
    %265 = arith.mulf %264, %248 : vector<32x128xf32>
    %266 = arith.mulf %265, %248 : vector<32x128xf32>
    %267 = arith.subf %266, %242 : vector<32x128xf32>
    %cst_121 = arith.constant 0.918938517 : f32
    %268 = vector.broadcast %cst_121 : f32 to vector<32x128xf32>
    %269 = arith.subf %267, %268 : vector<32x128xf32>
    %cst_122 = arith.constant 0.693147182 : f32
    %270 = vector.broadcast %cst_122 : f32 to vector<32x128xf32>
    %271 = arith.subf %270, %251 : vector<32x128xf32>
    %272 = arith.subf %271, %263 : vector<32x128xf32>
    %cst_123 = arith.constant 2.000000e+00 : f32
    %273 = vector.broadcast %cst_123 : f32 to vector<32x128xf32>
    %274 = arith.mulf %273, %272 : vector<32x128xf32>
    %275 = arith.subf %269, %274 : vector<32x128xf32>
    %cst_124 = arith.constant 0.000000e+00 : f32
    %276 = vector.broadcast %cst_124 : f32 to vector<32x128xf32>
    %277 = arith.select %26, %275, %276 : vector<32x128xi1>, vector<32x128xf32>
    %cst_125 = arith.constant dense<0.000000e+00> : vector<32xf32>
    %278 = vector.multi_reduction <add>, %277, %cst_125 [1] : vector<32x128xf32> to vector<32xf32>
    %279 = vector.shape_cast %278 : vector<32xf32> to vector<32x1xf32>
    %cst_126 = arith.constant 0.000000e+00 : f32
    %280 = vector.broadcast %cst_126 : f32 to vector<32x128xf32>
    %281 = arith.cmpf oge, %251, %280 : vector<32x128xf32>
    %cst_127 = arith.constant 1.000000e+00 : f32
    %cst_128 = arith.constant -1.000000e+00 : f32
    %282 = vector.broadcast %cst_127 : f32 to vector<32x128xf32>
    %283 = vector.broadcast %cst_128 : f32 to vector<32x128xf32>
    %284 = arith.select %281, %282, %283 : vector<32x128xi1>, vector<32x128xf32>
    %cst_129 = arith.constant 1.000000e+00 : f32
    %285 = vector.broadcast %cst_129 : f32 to vector<32x128xf32>
    %286 = arith.subf %285, %255 : vector<32x128xf32>
    %287 = arith.mulf %284, %286 : vector<32x128xf32>
    %cst_130 = arith.constant 1.000000e+00 : f32
    %288 = vector.broadcast %cst_130 : f32 to vector<32x128xf32>
    %289 = arith.addf %288, %255 : vector<32x128xf32>
    %290 = tpu.reciprocal %289 {approx = true} : vector<32x128xf32> -> vector<32x128xf32>
    %291 = arith.mulf %287, %290 : vector<32x128xf32>
    %cst_131 = arith.constant -1.000000e+00 : f32
    %cst_132 = arith.constant 1.000000e+00 : f32
    %292 = vector.broadcast %cst_131 : f32 to vector<32x128xf32>
    %293 = arith.maximumf %292, %291 : vector<32x128xf32>
    %294 = vector.broadcast %cst_132 : f32 to vector<32x128xf32>
    %295 = arith.minimumf %294, %293 : vector<32x128xf32>
    %296 = vector.shape_cast %279 : vector<32x1xf32> to vector<32x1xf32>
    %297 = vector.broadcast %296 : vector<32x1xf32> to vector<32x128xf32>
    %298 = arith.select %28, %297, %295 : vector<32x128xi1>, vector<32x128xf32>
    %299 = arith.index_cast %234 : i32 to index
    %c0_133 = arith.constant 0 : index
    %300 = vector.load %arg9[%299, %c0_133] : memref<256x128xf32, #tpu.memory_space<vmem>>, vector<32x128xf32>
    tpu.vector_store %arg9[%299, %c0_133], %298 {strides = array<i32>} : memref<256x128xf32, #tpu.memory_space<vmem>>, vector<32x128xf32>,
    %c4_i32 = arith.constant 4 : i32
    %c32_i32_134 = arith.constant 32 : i32
    %301 = arith.muli %c4_i32, %c32_i32_134 : i32
    %302 = tpu.assume_multiple %301, 32 : i32
    %303 = arith.index_cast %302 : i32 to index
    %c0_135 = arith.constant 0 : index
    %304 = vector.load %arg10[%303, %c0_135] : memref<256x256xf32, #tpu.memory_space<vmem>>, vector<32x128xf32>
    %305 = arith.index_cast %302 : i32 to index
    %c128_136 = arith.constant 128 : index
    %306 = vector.load %arg10[%305, %c128_136] : memref<256x256xf32, #tpu.memory_space<vmem>>, vector<32x128xf32>
    %cst_137 = arith.constant -2.000000e+01 : f32
    %cst_138 = arith.constant 2.000000e+00 : f32
    %307 = vector.broadcast %cst_137 : f32 to vector<32x128xf32>
    %308 = arith.maximumf %307, %306 : vector<32x128xf32>
    %309 = vector.broadcast %cst_138 : f32 to vector<32x128xf32>
    %310 = arith.minimumf %309, %308 : vector<32x128xf32>
    %311 = arith.index_cast %302 : i32 to index
    %c0_139 = arith.constant 0 : index
    %312 = vector.load %arg8[%311, %c0_139] : memref<256x8xf32, #tpu.memory_space<vmem>>, vector<32x8xf32>
    %c0_140 = arith.constant 0 : index
    %c0_141 = arith.constant 0 : index
    %313 = vector.load %arg11[%c0_140, %c0_141] : memref<32x128xf32, #tpu.memory_space<vmem>>, vector<32x8xf32>
    tpu.vector_store %arg11[%c0_140, %c0_141], %312 {strides = array<i32>} : memref<32x128xf32, #tpu.memory_space<vmem>>, vector<32x8xf32>,
    %c0_142 = arith.constant 0 : index
    %c0_143 = arith.constant 0 : index
    %314 = vector.load %arg11[%c0_142, %c0_143] : memref<32x128xf32, #tpu.memory_space<vmem>>, vector<32x128xf32>
    %cst_144 = arith.constant 0.000000e+00 : f32
    %315 = vector.broadcast %cst_144 : f32 to vector<32x128xf32>
    %316 = arith.select %26, %314, %315 : vector<32x128xi1>, vector<32x128xf32>
    %317 = math.exp %310 : vector<32x128xf32>
    %318 = arith.mulf %317, %316 : vector<32x128xf32>
    %319 = arith.addf %304, %318 : vector<32x128xf32>
    %320 = math.absf %319 : vector<32x128xf32>
    %cst_145 = arith.constant -2.000000e+00 : f32
    %321 = vector.broadcast %cst_145 : f32 to vector<32x128xf32>
    %322 = arith.mulf %321, %320 : vector<32x128xf32>
    %323 = math.exp %322 : vector<32x128xf32>
    %cst_146 = arith.constant 0.000000e+00 : f32
    %324 = vector.broadcast %cst_146 : f32 to vector<32x128xf32>
    %325 = arith.subf %324, %319 : vector<32x128xf32>
    %cst_147 = arith.constant 0.000000e+00 : f32
    %326 = vector.broadcast %cst_147 : f32 to vector<32x128xf32>
    %327 = arith.maximumf %325, %326 : vector<32x128xf32>
    %cst_148 = arith.constant 2.000000e+00 : f32
    %328 = vector.broadcast %cst_148 : f32 to vector<32x128xf32>
    %329 = arith.mulf %328, %327 : vector<32x128xf32>
    %330 = math.log1p %323 : vector<32x128xf32>
    %331 = arith.addf %329, %330 : vector<32x128xf32>
    %cst_149 = arith.constant -5.000000e-01 : f32
    %332 = vector.broadcast %cst_149 : f32 to vector<32x128xf32>
    %333 = arith.mulf %332, %316 : vector<32x128xf32>
    %334 = arith.mulf %333, %316 : vector<32x128xf32>
    %335 = arith.subf %334, %310 : vector<32x128xf32>
    %cst_150 = arith.constant 0.918938517 : f32
    %336 = vector.broadcast %cst_150 : f32 to vector<32x128xf32>
    %337 = arith.subf %335, %336 : vector<32x128xf32>
    %cst_151 = arith.constant 0.693147182 : f32
    %338 = vector.broadcast %cst_151 : f32 to vector<32x128xf32>
    %339 = arith.subf %338, %319 : vector<32x128xf32>
    %340 = arith.subf %339, %331 : vector<32x128xf32>
    %cst_152 = arith.constant 2.000000e+00 : f32
    %341 = vector.broadcast %cst_152 : f32 to vector<32x128xf32>
    %342 = arith.mulf %341, %340 : vector<32x128xf32>
    %343 = arith.subf %337, %342 : vector<32x128xf32>
    %cst_153 = arith.constant 0.000000e+00 : f32
    %344 = vector.broadcast %cst_153 : f32 to vector<32x128xf32>
    %345 = arith.select %26, %343, %344 : vector<32x128xi1>, vector<32x128xf32>
    %cst_154 = arith.constant dense<0.000000e+00> : vector<32xf32>
    %346 = vector.multi_reduction <add>, %345, %cst_154 [1] : vector<32x128xf32> to vector<32xf32>
    %347 = vector.shape_cast %346 : vector<32xf32> to vector<32x1xf32>
    %cst_155 = arith.constant 0.000000e+00 : f32
    %348 = vector.broadcast %cst_155 : f32 to vector<32x128xf32>
    %349 = arith.cmpf oge, %319, %348 : vector<32x128xf32>
    %cst_156 = arith.constant 1.000000e+00 : f32
    %cst_157 = arith.constant -1.000000e+00 : f32
    %350 = vector.broadcast %cst_156 : f32 to vector<32x128xf32>
    %351 = vector.broadcast %cst_157 : f32 to vector<32x128xf32>
    %352 = arith.select %349, %350, %351 : vector<32x128xi1>, vector<32x128xf32>
    %cst_158 = arith.constant 1.000000e+00 : f32
    %353 = vector.broadcast %cst_158 : f32 to vector<32x128xf32>
    %354 = arith.subf %353, %323 : vector<32x128xf32>
    %355 = arith.mulf %352, %354 : vector<32x128xf32>
    %cst_159 = arith.constant 1.000000e+00 : f32
    %356 = vector.broadcast %cst_159 : f32 to vector<32x128xf32>
    %357 = arith.addf %356, %323 : vector<32x128xf32>
    %358 = tpu.reciprocal %357 {approx = true} : vector<32x128xf32> -> vector<32x128xf32>
    %359 = arith.mulf %355, %358 : vector<32x128xf32>
    %cst_160 = arith.constant -1.000000e+00 : f32
    %cst_161 = arith.constant 1.000000e+00 : f32
    %360 = vector.broadcast %cst_160 : f32 to vector<32x128xf32>
    %361 = arith.maximumf %360, %359 : vector<32x128xf32>
    %362 = vector.broadcast %cst_161 : f32 to vector<32x128xf32>
    %363 = arith.minimumf %362, %361 : vector<32x128xf32>
    %364 = vector.shape_cast %347 : vector<32x1xf32> to vector<32x1xf32>
    %365 = vector.broadcast %364 : vector<32x1xf32> to vector<32x128xf32>
    %366 = arith.select %28, %365, %363 : vector<32x128xi1>, vector<32x128xf32>
    %367 = arith.index_cast %302 : i32 to index
    %c0_162 = arith.constant 0 : index
    %368 = vector.load %arg9[%367, %c0_162] : memref<256x128xf32, #tpu.memory_space<vmem>>, vector<32x128xf32>
    tpu.vector_store %arg9[%367, %c0_162], %366 {strides = array<i32>} : memref<256x128xf32, #tpu.memory_space<vmem>>, vector<32x128xf32>,
    %c5_i32 = arith.constant 5 : i32
    %c32_i32_163 = arith.constant 32 : i32
    %369 = arith.muli %c5_i32, %c32_i32_163 : i32
    %370 = tpu.assume_multiple %369, 32 : i32
    %371 = arith.index_cast %370 : i32 to index
    %c0_164 = arith.constant 0 : index
    %372 = vector.load %arg10[%371, %c0_164] : memref<256x256xf32, #tpu.memory_space<vmem>>, vector<32x128xf32>
    %373 = arith.index_cast %370 : i32 to index
    %c128_165 = arith.constant 128 : index
    %374 = vector.load %arg10[%373, %c128_165] : memref<256x256xf32, #tpu.memory_space<vmem>>, vector<32x128xf32>
    %cst_166 = arith.constant -2.000000e+01 : f32
    %cst_167 = arith.constant 2.000000e+00 : f32
    %375 = vector.broadcast %cst_166 : f32 to vector<32x128xf32>
    %376 = arith.maximumf %375, %374 : vector<32x128xf32>
    %377 = vector.broadcast %cst_167 : f32 to vector<32x128xf32>
    %378 = arith.minimumf %377, %376 : vector<32x128xf32>
    %379 = arith.index_cast %370 : i32 to index
    %c0_168 = arith.constant 0 : index
    %380 = vector.load %arg8[%379, %c0_168] : memref<256x8xf32, #tpu.memory_space<vmem>>, vector<32x8xf32>
    %c0_169 = arith.constant 0 : index
    %c0_170 = arith.constant 0 : index
    %381 = vector.load %arg11[%c0_169, %c0_170] : memref<32x128xf32, #tpu.memory_space<vmem>>, vector<32x8xf32>
    tpu.vector_store %arg11[%c0_169, %c0_170], %380 {strides = array<i32>} : memref<32x128xf32, #tpu.memory_space<vmem>>, vector<32x8xf32>,
    %c0_171 = arith.constant 0 : index
    %c0_172 = arith.constant 0 : index
    %382 = vector.load %arg11[%c0_171, %c0_172] : memref<32x128xf32, #tpu.memory_space<vmem>>, vector<32x128xf32>
    %cst_173 = arith.constant 0.000000e+00 : f32
    %383 = vector.broadcast %cst_173 : f32 to vector<32x128xf32>
    %384 = arith.select %26, %382, %383 : vector<32x128xi1>, vector<32x128xf32>
    %385 = math.exp %378 : vector<32x128xf32>
    %386 = arith.mulf %385, %384 : vector<32x128xf32>
    %387 = arith.addf %372, %386 : vector<32x128xf32>
    %388 = math.absf %387 : vector<32x128xf32>
    %cst_174 = arith.constant -2.000000e+00 : f32
    %389 = vector.broadcast %cst_174 : f32 to vector<32x128xf32>
    %390 = arith.mulf %389, %388 : vector<32x128xf32>
    %391 = math.exp %390 : vector<32x128xf32>
    %cst_175 = arith.constant 0.000000e+00 : f32
    %392 = vector.broadcast %cst_175 : f32 to vector<32x128xf32>
    %393 = arith.subf %392, %387 : vector<32x128xf32>
    %cst_176 = arith.constant 0.000000e+00 : f32
    %394 = vector.broadcast %cst_176 : f32 to vector<32x128xf32>
    %395 = arith.maximumf %393, %394 : vector<32x128xf32>
    %cst_177 = arith.constant 2.000000e+00 : f32
    %396 = vector.broadcast %cst_177 : f32 to vector<32x128xf32>
    %397 = arith.mulf %396, %395 : vector<32x128xf32>
    %398 = math.log1p %391 : vector<32x128xf32>
    %399 = arith.addf %397, %398 : vector<32x128xf32>
    %cst_178 = arith.constant -5.000000e-01 : f32
    %400 = vector.broadcast %cst_178 : f32 to vector<32x128xf32>
    %401 = arith.mulf %400, %384 : vector<32x128xf32>
    %402 = arith.mulf %401, %384 : vector<32x128xf32>
    %403 = arith.subf %402, %378 : vector<32x128xf32>
    %cst_179 = arith.constant 0.918938517 : f32
    %404 = vector.broadcast %cst_179 : f32 to vector<32x128xf32>
    %405 = arith.subf %403, %404 : vector<32x128xf32>
    %cst_180 = arith.constant 0.693147182 : f32
    %406 = vector.broadcast %cst_180 : f32 to vector<32x128xf32>
    %407 = arith.subf %406, %387 : vector<32x128xf32>
    %408 = arith.subf %407, %399 : vector<32x128xf32>
    %cst_181 = arith.constant 2.000000e+00 : f32
    %409 = vector.broadcast %cst_181 : f32 to vector<32x128xf32>
    %410 = arith.mulf %409, %408 : vector<32x128xf32>
    %411 = arith.subf %405, %410 : vector<32x128xf32>
    %cst_182 = arith.constant 0.000000e+00 : f32
    %412 = vector.broadcast %cst_182 : f32 to vector<32x128xf32>
    %413 = arith.select %26, %411, %412 : vector<32x128xi1>, vector<32x128xf32>
    %cst_183 = arith.constant dense<0.000000e+00> : vector<32xf32>
    %414 = vector.multi_reduction <add>, %413, %cst_183 [1] : vector<32x128xf32> to vector<32xf32>
    %415 = vector.shape_cast %414 : vector<32xf32> to vector<32x1xf32>
    %cst_184 = arith.constant 0.000000e+00 : f32
    %416 = vector.broadcast %cst_184 : f32 to vector<32x128xf32>
    %417 = arith.cmpf oge, %387, %416 : vector<32x128xf32>
    %cst_185 = arith.constant 1.000000e+00 : f32
    %cst_186 = arith.constant -1.000000e+00 : f32
    %418 = vector.broadcast %cst_185 : f32 to vector<32x128xf32>
    %419 = vector.broadcast %cst_186 : f32 to vector<32x128xf32>
    %420 = arith.select %417, %418, %419 : vector<32x128xi1>, vector<32x128xf32>
    %cst_187 = arith.constant 1.000000e+00 : f32
    %421 = vector.broadcast %cst_187 : f32 to vector<32x128xf32>
    %422 = arith.subf %421, %391 : vector<32x128xf32>
    %423 = arith.mulf %420, %422 : vector<32x128xf32>
    %cst_188 = arith.constant 1.000000e+00 : f32
    %424 = vector.broadcast %cst_188 : f32 to vector<32x128xf32>
    %425 = arith.addf %424, %391 : vector<32x128xf32>
    %426 = tpu.reciprocal %425 {approx = true} : vector<32x128xf32> -> vector<32x128xf32>
    %427 = arith.mulf %423, %426 : vector<32x128xf32>
    %cst_189 = arith.constant -1.000000e+00 : f32
    %cst_190 = arith.constant 1.000000e+00 : f32
    %428 = vector.broadcast %cst_189 : f32 to vector<32x128xf32>
    %429 = arith.maximumf %428, %427 : vector<32x128xf32>
    %430 = vector.broadcast %cst_190 : f32 to vector<32x128xf32>
    %431 = arith.minimumf %430, %429 : vector<32x128xf32>
    %432 = vector.shape_cast %415 : vector<32x1xf32> to vector<32x1xf32>
    %433 = vector.broadcast %432 : vector<32x1xf32> to vector<32x128xf32>
    %434 = arith.select %28, %433, %431 : vector<32x128xi1>, vector<32x128xf32>
    %435 = arith.index_cast %370 : i32 to index
    %c0_191 = arith.constant 0 : index
    %436 = vector.load %arg9[%435, %c0_191] : memref<256x128xf32, #tpu.memory_space<vmem>>, vector<32x128xf32>
    tpu.vector_store %arg9[%435, %c0_191], %434 {strides = array<i32>} : memref<256x128xf32, #tpu.memory_space<vmem>>, vector<32x128xf32>,
    %c6_i32 = arith.constant 6 : i32
    %c32_i32_192 = arith.constant 32 : i32
    %437 = arith.muli %c6_i32, %c32_i32_192 : i32
    %438 = tpu.assume_multiple %437, 32 : i32
    %439 = arith.index_cast %438 : i32 to index
    %c0_193 = arith.constant 0 : index
    %440 = vector.load %arg10[%439, %c0_193] : memref<256x256xf32, #tpu.memory_space<vmem>>, vector<32x128xf32>
    %441 = arith.index_cast %438 : i32 to index
    %c128_194 = arith.constant 128 : index
    %442 = vector.load %arg10[%441, %c128_194] : memref<256x256xf32, #tpu.memory_space<vmem>>, vector<32x128xf32>
    %cst_195 = arith.constant -2.000000e+01 : f32
    %cst_196 = arith.constant 2.000000e+00 : f32
    %443 = vector.broadcast %cst_195 : f32 to vector<32x128xf32>
    %444 = arith.maximumf %443, %442 : vector<32x128xf32>
    %445 = vector.broadcast %cst_196 : f32 to vector<32x128xf32>
    %446 = arith.minimumf %445, %444 : vector<32x128xf32>
    %447 = arith.index_cast %438 : i32 to index
    %c0_197 = arith.constant 0 : index
    %448 = vector.load %arg8[%447, %c0_197] : memref<256x8xf32, #tpu.memory_space<vmem>>, vector<32x8xf32>
    %c0_198 = arith.constant 0 : index
    %c0_199 = arith.constant 0 : index
    %449 = vector.load %arg11[%c0_198, %c0_199] : memref<32x128xf32, #tpu.memory_space<vmem>>, vector<32x8xf32>
    tpu.vector_store %arg11[%c0_198, %c0_199], %448 {strides = array<i32>} : memref<32x128xf32, #tpu.memory_space<vmem>>, vector<32x8xf32>,
    %c0_200 = arith.constant 0 : index
    %c0_201 = arith.constant 0 : index
    %450 = vector.load %arg11[%c0_200, %c0_201] : memref<32x128xf32, #tpu.memory_space<vmem>>, vector<32x128xf32>
    %cst_202 = arith.constant 0.000000e+00 : f32
    %451 = vector.broadcast %cst_202 : f32 to vector<32x128xf32>
    %452 = arith.select %26, %450, %451 : vector<32x128xi1>, vector<32x128xf32>
    %453 = math.exp %446 : vector<32x128xf32>
    %454 = arith.mulf %453, %452 : vector<32x128xf32>
    %455 = arith.addf %440, %454 : vector<32x128xf32>
    %456 = math.absf %455 : vector<32x128xf32>
    %cst_203 = arith.constant -2.000000e+00 : f32
    %457 = vector.broadcast %cst_203 : f32 to vector<32x128xf32>
    %458 = arith.mulf %457, %456 : vector<32x128xf32>
    %459 = math.exp %458 : vector<32x128xf32>
    %cst_204 = arith.constant 0.000000e+00 : f32
    %460 = vector.broadcast %cst_204 : f32 to vector<32x128xf32>
    %461 = arith.subf %460, %455 : vector<32x128xf32>
    %cst_205 = arith.constant 0.000000e+00 : f32
    %462 = vector.broadcast %cst_205 : f32 to vector<32x128xf32>
    %463 = arith.maximumf %461, %462 : vector<32x128xf32>
    %cst_206 = arith.constant 2.000000e+00 : f32
    %464 = vector.broadcast %cst_206 : f32 to vector<32x128xf32>
    %465 = arith.mulf %464, %463 : vector<32x128xf32>
    %466 = math.log1p %459 : vector<32x128xf32>
    %467 = arith.addf %465, %466 : vector<32x128xf32>
    %cst_207 = arith.constant -5.000000e-01 : f32
    %468 = vector.broadcast %cst_207 : f32 to vector<32x128xf32>
    %469 = arith.mulf %468, %452 : vector<32x128xf32>
    %470 = arith.mulf %469, %452 : vector<32x128xf32>
    %471 = arith.subf %470, %446 : vector<32x128xf32>
    %cst_208 = arith.constant 0.918938517 : f32
    %472 = vector.broadcast %cst_208 : f32 to vector<32x128xf32>
    %473 = arith.subf %471, %472 : vector<32x128xf32>
    %cst_209 = arith.constant 0.693147182 : f32
    %474 = vector.broadcast %cst_209 : f32 to vector<32x128xf32>
    %475 = arith.subf %474, %455 : vector<32x128xf32>
    %476 = arith.subf %475, %467 : vector<32x128xf32>
    %cst_210 = arith.constant 2.000000e+00 : f32
    %477 = vector.broadcast %cst_210 : f32 to vector<32x128xf32>
    %478 = arith.mulf %477, %476 : vector<32x128xf32>
    %479 = arith.subf %473, %478 : vector<32x128xf32>
    %cst_211 = arith.constant 0.000000e+00 : f32
    %480 = vector.broadcast %cst_211 : f32 to vector<32x128xf32>
    %481 = arith.select %26, %479, %480 : vector<32x128xi1>, vector<32x128xf32>
    %cst_212 = arith.constant dense<0.000000e+00> : vector<32xf32>
    %482 = vector.multi_reduction <add>, %481, %cst_212 [1] : vector<32x128xf32> to vector<32xf32>
    %483 = vector.shape_cast %482 : vector<32xf32> to vector<32x1xf32>
    %cst_213 = arith.constant 0.000000e+00 : f32
    %484 = vector.broadcast %cst_213 : f32 to vector<32x128xf32>
    %485 = arith.cmpf oge, %455, %484 : vector<32x128xf32>
    %cst_214 = arith.constant 1.000000e+00 : f32
    %cst_215 = arith.constant -1.000000e+00 : f32
    %486 = vector.broadcast %cst_214 : f32 to vector<32x128xf32>
    %487 = vector.broadcast %cst_215 : f32 to vector<32x128xf32>
    %488 = arith.select %485, %486, %487 : vector<32x128xi1>, vector<32x128xf32>
    %cst_216 = arith.constant 1.000000e+00 : f32
    %489 = vector.broadcast %cst_216 : f32 to vector<32x128xf32>
    %490 = arith.subf %489, %459 : vector<32x128xf32>
    %491 = arith.mulf %488, %490 : vector<32x128xf32>
    %cst_217 = arith.constant 1.000000e+00 : f32
    %492 = vector.broadcast %cst_217 : f32 to vector<32x128xf32>
    %493 = arith.addf %492, %459 : vector<32x128xf32>
    %494 = tpu.reciprocal %493 {approx = true} : vector<32x128xf32> -> vector<32x128xf32>
    %495 = arith.mulf %491, %494 : vector<32x128xf32>
    %cst_218 = arith.constant -1.000000e+00 : f32
    %cst_219 = arith.constant 1.000000e+00 : f32
    %496 = vector.broadcast %cst_218 : f32 to vector<32x128xf32>
    %497 = arith.maximumf %496, %495 : vector<32x128xf32>
    %498 = vector.broadcast %cst_219 : f32 to vector<32x128xf32>
    %499 = arith.minimumf %498, %497 : vector<32x128xf32>
    %500 = vector.shape_cast %483 : vector<32x1xf32> to vector<32x1xf32>
    %501 = vector.broadcast %500 : vector<32x1xf32> to vector<32x128xf32>
    %502 = arith.select %28, %501, %499 : vector<32x128xi1>, vector<32x128xf32>
    %503 = arith.index_cast %438 : i32 to index
    %c0_220 = arith.constant 0 : index
    %504 = vector.load %arg9[%503, %c0_220] : memref<256x128xf32, #tpu.memory_space<vmem>>, vector<32x128xf32>
    tpu.vector_store %arg9[%503, %c0_220], %502 {strides = array<i32>} : memref<256x128xf32, #tpu.memory_space<vmem>>, vector<32x128xf32>,
    %c7_i32 = arith.constant 7 : i32
    %c32_i32_221 = arith.constant 32 : i32
    %505 = arith.muli %c7_i32, %c32_i32_221 : i32
    %506 = tpu.assume_multiple %505, 32 : i32
    %507 = arith.index_cast %506 : i32 to index
    %c0_222 = arith.constant 0 : index
    %508 = vector.load %arg10[%507, %c0_222] : memref<256x256xf32, #tpu.memory_space<vmem>>, vector<32x128xf32>
    %509 = arith.index_cast %506 : i32 to index
    %c128_223 = arith.constant 128 : index
    %510 = vector.load %arg10[%509, %c128_223] : memref<256x256xf32, #tpu.memory_space<vmem>>, vector<32x128xf32>
    %cst_224 = arith.constant -2.000000e+01 : f32
    %cst_225 = arith.constant 2.000000e+00 : f32
    %511 = vector.broadcast %cst_224 : f32 to vector<32x128xf32>
    %512 = arith.maximumf %511, %510 : vector<32x128xf32>
    %513 = vector.broadcast %cst_225 : f32 to vector<32x128xf32>
    %514 = arith.minimumf %513, %512 : vector<32x128xf32>
    %515 = arith.index_cast %506 : i32 to index
    %c0_226 = arith.constant 0 : index
    %516 = vector.load %arg8[%515, %c0_226] : memref<256x8xf32, #tpu.memory_space<vmem>>, vector<32x8xf32>
    %c0_227 = arith.constant 0 : index
    %c0_228 = arith.constant 0 : index
    %517 = vector.load %arg11[%c0_227, %c0_228] : memref<32x128xf32, #tpu.memory_space<vmem>>, vector<32x8xf32>
    tpu.vector_store %arg11[%c0_227, %c0_228], %516 {strides = array<i32>} : memref<32x128xf32, #tpu.memory_space<vmem>>, vector<32x8xf32>,
    %c0_229 = arith.constant 0 : index
    %c0_230 = arith.constant 0 : index
    %518 = vector.load %arg11[%c0_229, %c0_230] : memref<32x128xf32, #tpu.memory_space<vmem>>, vector<32x128xf32>
    %cst_231 = arith.constant 0.000000e+00 : f32
    %519 = vector.broadcast %cst_231 : f32 to vector<32x128xf32>
    %520 = arith.select %26, %518, %519 : vector<32x128xi1>, vector<32x128xf32>
    %521 = math.exp %514 : vector<32x128xf32>
    %522 = arith.mulf %521, %520 : vector<32x128xf32>
    %523 = arith.addf %508, %522 : vector<32x128xf32>
    %524 = math.absf %523 : vector<32x128xf32>
    %cst_232 = arith.constant -2.000000e+00 : f32
    %525 = vector.broadcast %cst_232 : f32 to vector<32x128xf32>
    %526 = arith.mulf %525, %524 : vector<32x128xf32>
    %527 = math.exp %526 : vector<32x128xf32>
    %cst_233 = arith.constant 0.000000e+00 : f32
    %528 = vector.broadcast %cst_233 : f32 to vector<32x128xf32>
    %529 = arith.subf %528, %523 : vector<32x128xf32>
    %cst_234 = arith.constant 0.000000e+00 : f32
    %530 = vector.broadcast %cst_234 : f32 to vector<32x128xf32>
    %531 = arith.maximumf %529, %530 : vector<32x128xf32>
    %cst_235 = arith.constant 2.000000e+00 : f32
    %532 = vector.broadcast %cst_235 : f32 to vector<32x128xf32>
    %533 = arith.mulf %532, %531 : vector<32x128xf32>
    %534 = math.log1p %527 : vector<32x128xf32>
    %535 = arith.addf %533, %534 : vector<32x128xf32>
    %cst_236 = arith.constant -5.000000e-01 : f32
    %536 = vector.broadcast %cst_236 : f32 to vector<32x128xf32>
    %537 = arith.mulf %536, %520 : vector<32x128xf32>
    %538 = arith.mulf %537, %520 : vector<32x128xf32>
    %539 = arith.subf %538, %514 : vector<32x128xf32>
    %cst_237 = arith.constant 0.918938517 : f32
    %540 = vector.broadcast %cst_237 : f32 to vector<32x128xf32>
    %541 = arith.subf %539, %540 : vector<32x128xf32>
    %cst_238 = arith.constant 0.693147182 : f32
    %542 = vector.broadcast %cst_238 : f32 to vector<32x128xf32>
    %543 = arith.subf %542, %523 : vector<32x128xf32>
    %544 = arith.subf %543, %535 : vector<32x128xf32>
    %cst_239 = arith.constant 2.000000e+00 : f32
    %545 = vector.broadcast %cst_239 : f32 to vector<32x128xf32>
    %546 = arith.mulf %545, %544 : vector<32x128xf32>
    %547 = arith.subf %541, %546 : vector<32x128xf32>
    %cst_240 = arith.constant 0.000000e+00 : f32
    %548 = vector.broadcast %cst_240 : f32 to vector<32x128xf32>
    %549 = arith.select %26, %547, %548 : vector<32x128xi1>, vector<32x128xf32>
    %cst_241 = arith.constant dense<0.000000e+00> : vector<32xf32>
    %550 = vector.multi_reduction <add>, %549, %cst_241 [1] : vector<32x128xf32> to vector<32xf32>
    %551 = vector.shape_cast %550 : vector<32xf32> to vector<32x1xf32>
    %cst_242 = arith.constant 0.000000e+00 : f32
    %552 = vector.broadcast %cst_242 : f32 to vector<32x128xf32>
    %553 = arith.cmpf oge, %523, %552 : vector<32x128xf32>
    %cst_243 = arith.constant 1.000000e+00 : f32
    %cst_244 = arith.constant -1.000000e+00 : f32
    %554 = vector.broadcast %cst_243 : f32 to vector<32x128xf32>
    %555 = vector.broadcast %cst_244 : f32 to vector<32x128xf32>
    %556 = arith.select %553, %554, %555 : vector<32x128xi1>, vector<32x128xf32>
    %cst_245 = arith.constant 1.000000e+00 : f32
    %557 = vector.broadcast %cst_245 : f32 to vector<32x128xf32>
    %558 = arith.subf %557, %527 : vector<32x128xf32>
    %559 = arith.mulf %556, %558 : vector<32x128xf32>
    %cst_246 = arith.constant 1.000000e+00 : f32
    %560 = vector.broadcast %cst_246 : f32 to vector<32x128xf32>
    %561 = arith.addf %560, %527 : vector<32x128xf32>
    %562 = tpu.reciprocal %561 {approx = true} : vector<32x128xf32> -> vector<32x128xf32>
    %563 = arith.mulf %559, %562 : vector<32x128xf32>
    %cst_247 = arith.constant -1.000000e+00 : f32
    %cst_248 = arith.constant 1.000000e+00 : f32
    %564 = vector.broadcast %cst_247 : f32 to vector<32x128xf32>
    %565 = arith.maximumf %564, %563 : vector<32x128xf32>
    %566 = vector.broadcast %cst_248 : f32 to vector<32x128xf32>
    %567 = arith.minimumf %566, %565 : vector<32x128xf32>
    %568 = vector.shape_cast %551 : vector<32x1xf32> to vector<32x1xf32>
    %569 = vector.broadcast %568 : vector<32x1xf32> to vector<32x128xf32>
    %570 = arith.select %28, %569, %567 : vector<32x128xi1>, vector<32x128xf32>
    %571 = arith.index_cast %506 : i32 to index
    %c0_249 = arith.constant 0 : index
    %572 = vector.load %arg9[%571, %c0_249] : memref<256x128xf32, #tpu.memory_space<vmem>>, vector<32x128xf32>
    tpu.vector_store %arg9[%571, %c0_249], %570 {strides = array<i32>} : memref<256x128xf32, #tpu.memory_space<vmem>>, vector<32x128xf32>,
    %c8_i32_250 = arith.constant 8 : i32
    return
  }
  func.func @transform_0(%arg0: i32) -> (i32, i32) {
    %c0_i32 = arith.constant 0 : i32
    %c0_i32_0 = arith.constant 0 : i32
    return %arg0, %c0_i32 : i32, i32
  }
  func.func @transform_1(%arg0: i32) -> (i32, i32) {
    %c0_i32 = arith.constant 0 : i32
    %c0_i32_0 = arith.constant 0 : i32
    %c0_i32_1 = arith.constant 0 : i32
    return %c0_i32, %c0_i32_0 : i32, i32
  }
  func.func @transform_2(%arg0: i32) -> (i32, i32) {
    %c0_i32 = arith.constant 0 : i32
    %c0_i32_0 = arith.constant 0 : i32
    %c0_i32_1 = arith.constant 0 : i32
    return %c0_i32, %c0_i32_0 : i32, i32
  }
  func.func @transform_3(%arg0: i32) -> (i32, i32) {
    %c0_i32 = arith.constant 0 : i32
    %c0_i32_0 = arith.constant 0 : i32
    %c0_i32_1 = arith.constant 0 : i32
    return %c0_i32, %c0_i32_0 : i32, i32
  }
  func.func @transform_4(%arg0: i32) -> (i32, i32) {
    %c0_i32 = arith.constant 0 : i32
    %c0_i32_0 = arith.constant 0 : i32
    %c0_i32_1 = arith.constant 0 : i32
    return %c0_i32, %c0_i32_0 : i32, i32
  }
  func.func @transform_5(%arg0: i32) -> (i32, i32) {
    %c0_i32 = arith.constant 0 : i32
    %c0_i32_0 = arith.constant 0 : i32
    %c0_i32_1 = arith.constant 0 : i32
    return %c0_i32, %c0_i32_0 : i32, i32
  }
  func.func @transform_6(%arg0: i32) -> (i32, i32) {
    %c0_i32 = arith.constant 0 : i32
    %c0_i32_0 = arith.constant 0 : i32
    %c0_i32_1 = arith.constant 0 : i32
    return %c0_i32, %c0_i32_0 : i32, i32
  }
  func.func @transform_7(%arg0: i32) -> (i32, i32) {
    %c0_i32 = arith.constant 0 : i32
    %c0_i32_0 = arith.constant 0 : i32
    return %arg0, %c0_i32 : i32, i32
  }
  func.func @transform_8(%arg0: i32) -> (i32, i32) {
    %c0_i32 = arith.constant 0 : i32
    %c0_i32_0 = arith.constant 0 : i32
    return %arg0, %c0_i32 : i32, i32
  }
}

</mosaic_0001>

<bundles_post_ra>
// kernel: pi_fc_forward.1
= control target key start
LH: loop header
LB: loop body
LE: loop exit
PB: predicated region body
PF: predicated region fallthrough
CT: control target
= control target key end

     0   :  { %vm96_vm0 = vcmask 130048   ;;  %vm1714_vm1 = vcmask 64512   ;;  %s6685_s1 = inlined_call_operand.vmem [shape: bf16[16,256], index: 1, kind: input, shape index: {}]   ;;  %s6686_s0 = inlined_call_operand.vmem [shape: f32[256,16], index: 0, kind: input, shape index: {}]   ;;  %s6687_s3 = inlined_call_operand.vmem [shape: bf16[256,256], index: 3, kind: input, shape index: {}]   ;;  %s6688_s5 = inlined_call_operand.vmem [shape: bf16[256,256], index: 5, kind: input, shape index: {}]   ;;  %s6689_s2 = inlined_call_operand.vmem [shape: f32[1,256], index: 2, kind: input, shape index: {}]   ;;  %s6690_s4 = inlined_call_operand.vmem [shape: f32[1,256], index: 4, kind: input, shape index: {}]   ;;  %s6691_s7 = inlined_call_operand.vmem [shape: f32[256,8], index: 7, kind: input, shape index: {}]   ;;  %s6692_s6 = inlined_call_operand.vmem [shape: f32[1,256], index: 6, kind: input, shape index: {}]   ;;  %s6693_s8 = inlined_call_operand.vmem [shape: f32[256,128], index: 8, kind: output, shape index: {}]  }
   0x1   :  { %v3375_v0 = vld [vmem:[%s6685_s1] sm:$0xf]  ;;  %v3790_v1 = vld [vmem:[%s6685_s1 + $0x4] sm:$0xf0]  ;;  %v3789_v2 = vld [vmem:[%s6685_s1 + $0x4] sm:$0xf] }
   0x2   :  { %v3376_v3 = vor.u32 %v3790_v1, %v3375_v0  ;;  %v3377_v4 = vld [vmem:[%s6685_s1 + $0x8] sm:$0xf0]  ;;  %v30_v5 = vld [vmem:[%s6686_s0] sm:$0xff]  ;;  %v48_v12 = vld [vmem:[%s6686_s0 + $0x90] sm:$0xff] }
   0x3   :  { %v31_v6 = vld [vmem:[%s6686_s0 + $0x8] sm:$0xff]  ;;  %v3380_v7 = vor.u32 %v3789_v2, %v3377_v4  ;;  %v46_v9 = vld [vmem:[%s6686_s0 + $0x80] sm:$0xff]  ;;  %v49_v13 = vld [vmem:[%s6686_s0 + $0x98] sm:$0xff] }
   0x4   :  { %v62_v8 = vpack.c.bf16 %v31_v6, %v30_v5  ;;  %v47_v10 = vld [vmem:[%s6686_s0 + $0x88] sm:$0xff]  ;;  %152 = vmatpush.bf16.msra.mxu0 %v3376_v3  ;;  %3855 = vmatpush.bf16.msra.mxu2 %v3376_v3  ;;  %v71_v14 = vpack.c.bf16 %v49_v13, %v48_v12  ;;  %v3471_v15 = vld [vmem:[%s6687_s3 + $0x70] sm:$0xf]  ;;  %v3806_v16 = vld [vmem:[%s6687_s3 + $0x74] sm:$0xf0] }
   0x5   :  { %v4192_v11 = vpack.c.bf16 %v47_v10, %v46_v9  ;;  %241 = vmatpush.bf16.msra.mxu1 %v3380_v7  ;;  %3856 = vmatpush.bf16.msra.mxu3 %v3380_v7  ;;  %v3472_v17 = vor.u32 %v3806_v16, %v3471_v15  ;;  %v3805_v18 = vld [vmem:[%s6687_s3 + $0x74] sm:$0xf]  ;;  %v3473_v19 = vld [vmem:[%s6687_s3 + $0x78] sm:$0xf0]  ;;  %v3463_v24 = vld [vmem:[%s6687_s3 + $0x60] sm:$0xf] }
   0x6   :  { %v3476_v20 = vor.u32 %v3805_v18, %v3473_v19  ;;  %v3821_v21 = vld [vmem:[%s6687_s3 + $0xf4] sm:$0xf]  ;;  %v3537_v22 = vld [vmem:[%s6687_s3 + $0xf8] sm:$0xf0]  ;;  %v3804_v25 = vld [vmem:[%s6687_s3 + $0x64] sm:$0xf0] }
   0x7   :  { %3381 = vmatmul.msk.bf16.vlgmr.msra.gmra.mxu0 %vm96_vm0, %v62_v8  ;;  %3390 = vmatmul.msk.bf16.vlgmr.msra.gmra.mxu2 %vm96_vm0, %v71_v14  ;;  %v3540_v23 = vor.u32 %v3821_v21, %v3537_v22  ;;  %v3535_v26 = vld [vmem:[%s6687_s3 + $0xf0] sm:$0xf]  ;;  %v3464_v27 = vor.u32 %v3804_v25, %v3463_v24  ;;  %v3822_v28 = vld [vmem:[%s6687_s3 + $0xf4] sm:$0xf0]  ;;  %v50_v32 = vld [vmem:[%s6686_s0 + $0xa0] sm:$0xff] }
   0x8   :  { %3397 = vmatmul.msk.bf16.vlgmr.msra.gmra.mxu1 %vm96_vm0, %v62_v8  ;;  %3405 = vmatmul.msk.bf16.vlgmr.msra.gmra.mxu3 %vm96_vm0, %v4192_v11  ;;  %v3536_v29 = vor.u32 %v3822_v28, %v3535_v26  ;;  %v32_v30 = vld [vmem:[%s6686_s0 + $0x10] sm:$0xff]  ;;  %v33_v31 = vld [vmem:[%s6686_s0 + $0x18] sm:$0xff]  ;;  %v51_v33 = vld [vmem:[%s6686_s0 + $0xa8] sm:$0xff] }
   0x9   :  { %617 = vmatpush.bf16.msrb.mxu2 %v3472_v17  ;;  %795 = vmatpush.bf16.msrb.mxu0 %v3476_v20  ;;  %v63_v34 = vpack.c.bf16 %v33_v31, %v32_v30  ;;  %v72_v35 = vpack.c.bf16 %v51_v33, %v50_v32  ;;  %v3803_v36 = vld [vmem:[%s6687_s3 + $0x64] sm:$0xf]  ;;  %v3465_v37 = vld [vmem:[%s6687_s3 + $0x68] sm:$0xf0]  ;;  %v3455_v42 = vld [vmem:[%s6687_s3 + $0x50] sm:$0xf] }
   0xa   :  { %884 = vmatpush.bf16.msrb.mxu1 %v3540_v23  ;;  %706 = vmatpush.bf16.msrb.mxu3 %v3536_v29  ;;  %v3819_v38 = vld [vmem:[%s6687_s3 + $0xe4] sm:$0xf]  ;;  %v3529_v39 = vld [vmem:[%s6687_s3 + $0xe8] sm:$0xf0]  ;;  %v3468_v40 = vor.u32 %v3803_v36, %v3465_v37  ;;  %v3802_v43 = vld [vmem:[%s6687_s3 + $0x54] sm:$0xf0] }
   0xb   :  { %v3532_v41 = vor.u32 %v3819_v38, %v3529_v39  ;;  %v3527_v44 = vld [vmem:[%s6687_s3 + $0xe0] sm:$0xf]  ;;  %v3456_v45 = vor.u32 %v3802_v43, %v3455_v42  ;;  %v3820_v46 = vld [vmem:[%s6687_s3 + $0xe4] sm:$0xf0]  ;;  %v52_v50 = vld [vmem:[%s6686_s0 + $0xb0] sm:$0xff] }
   0xc   :  { %v3528_v47 = vor.u32 %v3820_v46, %v3527_v44  ;;  %v34_v48 = vld [vmem:[%s6686_s0 + $0x20] sm:$0xff]  ;;  %v35_v49 = vld [vmem:[%s6686_s0 + $0x28] sm:$0xff]  ;;  %v53_v51 = vld [vmem:[%s6686_s0 + $0xb8] sm:$0xff] }
   0xd   :  { %618 = vmatpush.bf16.msrb.mxu2 %v3464_v27  ;;  %796 = vmatpush.bf16.msrb.mxu0 %v3468_v40  ;;  %v64_v52 = vpack.c.bf16 %v35_v49, %v34_v48  ;;  %v73_v53 = vpack.c.bf16 %v53_v51, %v52_v50  ;;  %v3817_v54 = vld [vmem:[%s6687_s3 + $0xd4] sm:$0xf]  ;;  %v3521_v55 = vld [vmem:[%s6687_s3 + $0xd8] sm:$0xf0]  ;;  %v3447_v56 = vld [vmem:[%s6687_s3 + $0x40] sm:$0xf] }
   0xe   :  { %885 = vmatpush.bf16.msrb.mxu1 %v3532_v41  ;;  %707 = vmatpush.bf16.msrb.mxu3 %v3528_v47  ;;  %v3800_v57 = vld [vmem:[%s6687_s3 + $0x44] sm:$0xf0]  ;;  %v3524_v58 = vor.u32 %v3817_v54, %v3521_v55  ;;  %v3801_v60 = vld [vmem:[%s6687_s3 + $0x54] sm:$0xf]  ;;  %v3457_v61 = vld [vmem:[%s6687_s3 + $0x58] sm:$0xf0] }
   0xf   :  { %v3448_v59 = vor.u32 %v3800_v57, %v3447_v56  ;;  %v3519_v62 = vld [vmem:[%s6687_s3 + $0xd0] sm:$0xf]  ;;  %v3460_v63 = vor.u32 %v3801_v60, %v3457_v61  ;;  %v3818_v0 = vld [vmem:[%s6687_s3 + $0xd4] sm:$0xf0]  ;;  %v54_v4 = vld [vmem:[%s6686_s0 + $0xc0] sm:$0xff] }
  0x10   :  { %v3520_v1 = vor.u32 %v3818_v0, %v3519_v62  ;;  %v36_v2 = vld [vmem:[%s6686_s0 + $0x30] sm:$0xff]  ;;  %v37_v3 = vld [vmem:[%s6686_s0 + $0x38] sm:$0xff]  ;;  %v55_v5 = vld [vmem:[%s6686_s0 + $0xc8] sm:$0xff] }
  0x11   :  { %619 = vmatpush.bf16.msrb.mxu2 %v3456_v45  ;;  %797 = vmatpush.bf16.msrb.mxu0 %v3460_v63  ;;  %v65_v6 = vpack.c.bf16 %v37_v3, %v36_v2  ;;  %v74_v7 = vpack.c.bf16 %v55_v5, %v54_v4  ;;  %v3439_v8 = vld [vmem:[%s6687_s3 + $0x30] sm:$0xf]  ;;  %v3798_v9 = vld [vmem:[%s6687_s3 + $0x34] sm:$0xf0]  ;;  %v3815_v10 = vld [vmem:[%s6687_s3 + $0xc4] sm:$0xf] }
  0x12   :  { %886 = vmatpush.bf16.msrb.mxu1 %v3524_v58  ;;  %708 = vmatpush.bf16.msrb.mxu3 %v3520_v1  ;;  %v3513_v12 = vld [vmem:[%s6687_s3 + $0xc8] sm:$0xf0]  ;;  %v3440_v13 = vor.u32 %v3798_v9, %v3439_v8  ;;  %v3799_v15 = vld [vmem:[%s6687_s3 + $0x44] sm:$0xf]  ;;  %v3511_v17 = vld [vmem:[%s6687_s3 + $0xc0] sm:$0xf] }
  0x13   :  { %v3449_v16 = vld [vmem:[%s6687_s3 + $0x48] sm:$0xf0]  ;;  %v3816_v19 = vld [vmem:[%s6687_s3 + $0xc4] sm:$0xf0]  ;;  %v38_v21 = vld [vmem:[%s6686_s0 + $0x40] sm:$0xff] }
  0x14   :  { %v3452_v18 = vor.u32 %v3799_v15, %v3449_v16  ;;  %v3512_v20 = vor.u32 %v3816_v19, %v3511_v17  ;;  %v39_v22 = vld [vmem:[%s6686_s0 + $0x48] sm:$0xff]  ;;  %v56_v23 = vld [vmem:[%s6686_s0 + $0xd0] sm:$0xff]  ;;  %v57_v24 = vld [vmem:[%s6686_s0 + $0xd8] sm:$0xff] }
  0x15   :  { %620 = vmatpush.bf16.msrb.mxu2 %v3448_v59  ;;  %v66_v25 = vpack.c.bf16 %v39_v22, %v38_v21  ;;  %v75_v26 = vpack.c.bf16 %v57_v24, %v56_v23  ;;  %v3431_v27 = vld [vmem:[%s6687_s3 + $0x20] sm:$0xf]  ;;  %v3796_v28 = vld [vmem:[%s6687_s3 + $0x24] sm:$0xf0]  ;;  %v3813_v30 = vld [vmem:[%s6687_s3 + $0xb4] sm:$0xf] }
  0x16   :  { %798 = vmatpush.bf16.msrb.mxu0 %v3452_v18  ;;  %709 = vmatpush.bf16.msrb.mxu3 %v3512_v20  ;;  %v3432_v29 = vor.u32 %v3796_v28, %v3431_v27  ;;  %v3505_v31 = vld [vmem:[%s6687_s3 + $0xb8] sm:$0xf0]  ;;  %v3797_v33 = vld [vmem:[%s6687_s3 + $0x34] sm:$0xf]  ;;  %v3814_v37 = vld [vmem:[%s6687_s3 + $0xb4] sm:$0xf0] }
  0x17   :  { %3382 = vmatmul.msk.bf16.gmra.mxu0 %vm96_vm0, %v63_v34  ;;  %3391 = vmatmul.msk.bf16.gmra.mxu2 %vm96_vm0, %v72_v35  ;;  %v3508_v32 = vor.u32 %v3813_v30, %v3505_v31  ;;  %v40_v39 = vld [vmem:[%s6686_s0 + $0x50] sm:$0xff]  ;;  %v41_v40 = vld [vmem:[%s6686_s0 + $0x58] sm:$0xff]  ;;  %v58_v41 = vld [vmem:[%s6686_s0 + $0xe0] sm:$0xff] }
  0x18   :  { %3398 = vmatmul.msk.bf16.gmra.mxu1 %vm96_vm0, %v63_v34  ;;  %3406 = vmatmul.msk.bf16.gmra.mxu3 %vm96_vm0, %v71_v14  ;;  %v3516_v14 = vor.u32 %v3815_v10, %v3513_v12  ;;  %v3441_v34 = vld [vmem:[%s6687_s3 + $0x38] sm:$0xf0]  ;;  %v59_v42 = vld [vmem:[%s6686_s0 + $0xe8] sm:$0xff]  ;;  %v67_v43 = vpack.c.bf16 %v41_v40, %v40_v39  ;;  %v3423_v45 = vld [vmem:[%s6687_s3 + $0x10] sm:$0xf] }
  0x19   :  { %621 = vmatpush.bf16.msrb.mxu2 %v3440_v13  ;;  %v3444_v36 = vor.u32 %v3797_v33, %v3441_v34  ;;  %v76_v44 = vpack.c.bf16 %v59_v42, %v58_v41  ;;  %v3794_v46 = vld [vmem:[%s6687_s3 + $0x14] sm:$0xf0]  ;;  %v3811_v48 = vld [vmem:[%s6687_s3 + $0xa4] sm:$0xf]  ;;  %v3497_v49 = vld [vmem:[%s6687_s3 + $0xa8] sm:$0xf0] }
  0x1a   :  { %887 = vmatpush.bf16.msrb.mxu1 %v3516_v14  ;;  %v3424_v47 = vor.u32 %v3794_v46, %v3423_v45  ;;  %v3500_v50 = vor.u32 %v3811_v48, %v3497_v49  ;;  %v3795_v51 = vld [vmem:[%s6687_s3 + $0x24] sm:$0xf]  ;;  %v43_v55 = vld [vmem:[%s6686_s0 + $0x68] sm:$0xff]  ;;  %v60_v56 = vld [vmem:[%s6686_s0 + $0xf0] sm:$0xff] }
  0x1b   :  { %799 = vmatpush.bf16.msrb.mxu0 %v3444_v36  ;;  %v42_v54 = vld [vmem:[%s6686_s0 + $0x60] sm:$0xff]  ;;  %v61_v57 = vld [vmem:[%s6686_s0 + $0xf8] sm:$0xff]  ;;  %v3812_v61 = vld [vmem:[%s6687_s3 + $0xa4] sm:$0xf0] }
  0x1c   :  { %v68_v58 = vpack.c.bf16 %v43_v55, %v42_v54  ;;  %v77_v59 = vpack.c.bf16 %v61_v57, %v60_v56  ;;  %v3495_v60 = vld [vmem:[%s6687_s3 + $0xa0] sm:$0xf]  ;;  %v3792_v0 = vld [vmem:[%s6687_s3 + $0x4] sm:$0xf0]  ;;  %v3809_v1 = vld [vmem:[%s6687_s3 + $0x94] sm:$0xf] }
  0x1d   :  { %622 = vmatpush.bf16.msrb.mxu2 %v3432_v29  ;;  %v3496_v62 = vor.u32 %v3812_v61, %v3495_v60  ;;  %v3415_v63 = vld [vmem:[%s6687_s3] sm:$0xf]  ;;  %v3489_v3 = vld [vmem:[%s6687_s3 + $0x98] sm:$0xf0]  ;;  %v3487_v5 = vld [vmem:[%s6687_s3 + $0x90] sm:$0xf] }
  0x1e   :  { %888 = vmatpush.bf16.msrb.mxu1 %v3508_v32  ;;  %v3416_v2 = vor.u32 %v3792_v0, %v3415_v63  ;;  %v3492_v4 = vor.u32 %v3809_v1, %v3489_v3  ;;  %v3479_v8 = vld [vmem:[%s6687_s3 + $0x80] sm:$0xf]  ;;  %v3808_v9 = vld [vmem:[%s6687_s3 + $0x84] sm:$0xf0]  ;;  %v3793_v10 = vld [vmem:[%s6687_s3 + $0x14] sm:$0xf] }
  0x1f   :  { %v3480_v12 = vor.u32 %v3808_v9, %v3479_v8  ;;  %v3425_v13 = vld [vmem:[%s6687_s3 + $0x18] sm:$0xf0]  ;;  %v3807_v14 = vld [vmem:[%s6687_s3 + $0x84] sm:$0xf]  ;;  %v3481_v15 = vld [vmem:[%s6687_s3 + $0x88] sm:$0xf0] }
  0x20   :  { %v44_v16 = vld [vmem:[%s6686_s0 + $0x70] sm:$0xff]  ;;  %v45_v17 = vld [vmem:[%s6686_s0 + $0x78] sm:$0xff]  ;;  %v3428_v18 = vor.u32 %v3793_v10, %v3425_v13  ;;  %v3484_v19 = vor.u32 %v3807_v14, %v3481_v15  ;;  %v3791_v20 = vld [vmem:[%s6687_s3 + $0x4] sm:$0xf] }
  0x21   :  { %623 = vmatpush.bf16.msrb.mxu2 %v3424_v47  ;;  %v3417_v21 = vld [vmem:[%s6687_s3 + $0x8] sm:$0xf0]  ;;  %v69_v22 = vpack.c.bf16 %v45_v17, %v44_v16  ;;  %v3599_v24 = vld [vmem:[%s6688_s5 + $0x70] sm:$0xf]  ;;  %v80_v27 = vld [vmem:[%s6689_s2] sm:$0x3] }
  0x22   :  { %889 = vmatpush.bf16.msrb.mxu1 %v3500_v50  ;;  %v3420_v23 = vor.u32 %v3791_v20, %v3417_v21  ;;  %v4511_v30 = vperm.slane %v80_v27, 1  ;;  %v4513_v31 = vperm.slane %v80_v27, 0  ;;  %v3853_v32 = vld [vmem:[%s6688_s5 + $0xf4] sm:$0xf]  ;;  %v3665_v33 = vld [vmem:[%s6688_s5 + $0xf8] sm:$0xf0] }
  0x23   :  { %v3668_v34 = vor.u32 %v3853_v32, %v3665_v33  ;;  %v3591_v50 = vld [vmem:[%s6688_s5 + $0x60] sm:$0xf]  ;;  %v3663_v57 = vld [vmem:[%s6688_s5 + $0xf0] sm:$0xf]  ;;  %v3601_v63 = vld [vmem:[%s6688_s5 + $0x78] sm:$0xf0] }
  0x25   :  { %624 = vmatpush.bf16.msrb.mxu2 %v3416_v2 }
  0x26   :  { %890 = vmatpush.bf16.msrb.mxu1 %v3492_v4 }
  0x27   :  { %3383 = vmatmul.msk.bf16.gmra.mxu0 %vm96_vm0, %v64_v52  ;;  %3392 = vmatmul.msk.bf16.gmra.mxu2 %vm96_vm0, %v73_v53 }
  0x28   :  { %3399 = vmatmul.msk.bf16.gmra.mxu1 %vm96_vm0, %v64_v52  ;;  %3407 = vmatmul.msk.bf16.gmra.mxu3 %vm96_vm0, %v72_v35  ;;  %v3503_v35 = vld [vmem:[%s6687_s3 + $0xb0] sm:$0xf]  ;;  %v3433_v52 = vld [vmem:[%s6687_s3 + $0x28] sm:$0xf0] }
  0x29   :  { %v3504_v38 = vor.u32 %v3814_v37, %v3503_v35 }
  0x2a   :  { %891 = vmatpush.bf16.msrb.mxu1 %v3484_v19 }
  0x2b   :  { %710 = vmatpush.bf16.msrb.mxu3 %v3504_v38 }
  0x2e   :  { %1534 = vmatpush.bf16.msra.mxu1 %v3668_v34 }
  0x2f   :  { %711 = vmatpush.bf16.msrb.mxu3 %v3496_v62  ;;  %v3837_v62 = vld [vmem:[%s6688_s5 + $0x74] sm:$0xf] }
  0x30   :  { %v4552_v1 = vor.u32 %v3837_v62, %v3601_v63 }
  0x37   :  { %3384 = vmatmul.msk.bf16.gmra.mxu0 %vm96_vm0, %v65_v6  ;;  %3393 = vmatmul.msk.bf16.gmra.mxu2 %vm96_vm0, %v74_v7 }
  0x38   :  { %3400 = vmatmul.msk.bf16.gmra.mxu1 %vm96_vm0, %v65_v6  ;;  %3408 = vmatmul.msk.bf16.gmra.mxu3 %vm96_vm0, %v73_v53  ;;  %v3436_v53 = vor.u32 %v3795_v51, %v3433_v52  ;;  %v3810_v6 = vld [vmem:[%s6687_s3 + $0x94] sm:$0xf0]  ;;  %v3836_v51 = vld [vmem:[%s6688_s5 + $0x64] sm:$0xf0] }
  0x39   :  { %v3592_v56 = vor.u32 %v3836_v51, %v3591_v50 }
  0x3a   :  { %800 = vmatpush.bf16.msrb.mxu0 %v3436_v53 }
  0x3e   :  { %801 = vmatpush.bf16.msrb.mxu0 %v3428_v18 }
  0x42   :  { %802 = vmatpush.bf16.msrb.mxu0 %v3420_v23  ;;  %v3657_v23 = vld [vmem:[%s6688_s5 + $0xe8] sm:$0xf0] }
  0x46   :  { %1445 = vmatpush.bf16.msra.mxu0 %v4552_v1 }
  0x47   :  { %3385 = vmatmul.msk.bf16.gmra.mxu0 %vm96_vm0, %v66_v25  ;;  %3394 = vmatmul.msk.bf16.gmra.mxu2 %vm96_vm0, %v75_v26 }
  0x48   :  { %3401 = vmatmul.msk.bf16.gmra.mxu1 %vm96_vm0, %v66_v25  ;;  %3409 = vmatmul.msk.bf16.gmra.mxu3 %vm96_vm0, %v74_v7  ;;  %v3488_v7 = vor.u32 %v3810_v6, %v3487_v5  ;;  %v3838_v25 = vld [vmem:[%s6688_s5 + $0x74] sm:$0xf0] }
  0x4a   :  { %712 = vmatpush.bf16.msrb.mxu3 %v3488_v7 }
  0x4e   :  { %713 = vmatpush.bf16.msrb.mxu3 %v3480_v12 }
  0x57   :  { %3386 = vmatmul.msk.bf16.gmra.mxu0 %vm96_vm0, %v67_v43  ;;  %3395 = vmatmul.msk.bf16.gmra.mxu2 %vm96_vm0, %v76_v44 }
  0x58   :  { %3402 = vmatmul.msk.bf16.gmra.mxu1 %vm96_vm0, %v67_v43  ;;  %3410 = vmatmul.msk.bf16.gmra.mxu3 %vm96_vm0, %v75_v26  ;;  %v3600_v26 = vor.u32 %v3838_v25, %v3599_v24 }
  0x5a   :  { %1267 = vmatpush.bf16.msra.mxu2 %v3600_v26 }
  0x5e   :  { %1268 = vmatpush.bf16.msra.mxu2 %v3592_v56 }
  0x67   :  { %3387 = vmatmul.msk.bf16.gmra.mxu0 %vm96_vm0, %v68_v58  ;;  %3396 = vmatmul.msk.bf16.gmra.mxu2 %vm96_vm0, %v77_v59 }
  0x68   :  { %3403 = vmatmul.msk.bf16.gmra.mxu1 %vm96_vm0, %v68_v58  ;;  %3411 = vmatmul.msk.bf16.gmra.mxu3 %vm96_vm0, %v76_v44  ;;  %v3854_v58 = vld [vmem:[%s6688_s5 + $0xf4] sm:$0xf0] }
  0x69   :  { %v3664_v61 = vor.u32 %v3854_v58, %v3663_v57 }
  0x6b   :  { %1356 = vmatpush.bf16.msra.mxu3 %v3664_v61 }
  0x77   :  { %3388 = vmatmul.msk.bf16.gmra.mxu0 %vm96_vm0, %v69_v22 }
  0x78   :  { %3404 = vmatmul.msk.bf16.gmra.mxu1 %vm96_vm0, %v69_v22  ;;  %3412 = vmatmul.msk.bf16.gmra.mxu3 %vm96_vm0, %v77_v59  ;;  %v3851_v22 = vld [vmem:[%s6688_s5 + $0xe4] sm:$0xf] }
  0x79   :  { %v3660_v27 = vor.u32 %v3851_v22, %v3657_v23  ;;  %v3849_v23 = vld [vmem:[%s6688_s5 + $0xd4] sm:$0xf] }
  0x7b   :  { %1535 = vmatpush.bf16.msra.mxu1 %v3660_v27 }
  0x84   :  { %v154_v28 = vpop.f32.mrf.mxu0 }
  0x85   :  { %v243_v29 = vpop.f32.mrf.mxu1  ;;  %v155_v36 = vadd.f32 %v154_v28, %v4513_v31 }
  0x86   :  { %v244_v35 = vadd.f32 %v243_v29, %v4511_v30 }
  0x87   :  { %3389 = vmatmul.msk.bf16.gmra.mxu0 %vm96_vm0, %v4192_v11  ;;  %v323_v43 = vmax.f32 %v155_v36, 0.0 }
  0x88   :  { %v324_v41 = vmax.f32 %v244_v35, 0.0 }
  0x8a   :  { %v4525_v38 = vpop.f32.mrf.mxu2 }
  0x8b   :  { %v283_v37 = vpop.f32.mrf.mxu3 }
  0x8c   :  { %v156_v39 = vpop.f32.mrf.mxu0  ;;  %v284_v53 = vadd.f32 %v283_v37, %v4511_v30 }
  0x8d   :  { %v157_v11 = vadd.f32 %v156_v39, %v4513_v31  ;;  %v245_v40 = vpop.f32.mrf.mxu1 }
  0x8e   :  { %v246_v42 = vadd.f32 %v245_v40, %v4511_v30  ;;  %v356_v59 = vmax.f32 %v284_v53, 0.0  ;;  %v3655_v53 = vld [vmem:[%s6688_s5 + $0xe0] sm:$0xf] }
  0x8f   :  { %v325_v44 = vmax.f32 %v157_v11, 0.0 }
  0x90   :  { %v326_v45 = vmax.f32 %v246_v42, 0.0 }
  0x91   :  { %v387_v46 = vpack.c.bf16 %v325_v44, %v323_v43 }
  0x92   :  { %v388_v47 = vpack.c.bf16 %v326_v45, %v324_v41  ;;  %v4537_v55 = vpop.f32.mrf.mxu2 }
  0x93   :  { %625 = vmatmul.bf16.vlgmr.msrb.gmra.mxu2 %v387_v46  ;;  %v285_v48 = vpop.f32.mrf.mxu3 }
  0x94   :  { %714 = vmatmul.bf16.vlgmr.msrb.gmra.mxu3 %v388_v47  ;;  %892 = vmatmul.bf16.vlgmr.msrb.gmra.mxu1 %v388_v47  ;;  %v159_v49 = vpop.f32.mrf.mxu0  ;;  %v286_v54 = vadd.f32 %v285_v48, %v4511_v30  ;;  %v3583_v47 = vld [vmem:[%s6688_s5 + $0x50] sm:$0xf]  ;;  %v3834_v48 = vld [vmem:[%s6688_s5 + $0x54] sm:$0xf0] }
  0x95   :  { %v248_v52 = vpop.f32.mrf.mxu1  ;;  %v160_v2 = vadd.f32 %v159_v49, %v4513_v31 }
  0x96   :  { %v358_v60 = vmax.f32 %v286_v54, 0.0  ;;  %v249_v0 = vadd.f32 %v248_v52, %v4511_v30  ;;  %v3584_v52 = vor.u32 %v3834_v48, %v3583_v47  ;;  %v3852_v54 = vld [vmem:[%s6688_s5 + $0xe4] sm:$0xf0] }
  0x97   :  { %803 = vmatmul.bf16.vlgmr.msrb.gmra.mxu0 %v387_v46  ;;  %v327_v10 = vmax.f32 %v160_v2, 0.0  ;;  %v3656_v58 = vor.u32 %v3852_v54, %v3655_v53 }
  0x98   :  { %v4557_v7 = vpack.c.bf16 %v358_v60, %v356_v59  ;;  %v328_v8 = vmax.f32 %v249_v0, 0.0  ;;  %1269 = vmatpush.bf16.msra.mxu2 %v3584_v52  ;;  %v3835_v59 = vld [vmem:[%s6688_s5 + $0x64] sm:$0xf]  ;;  %v3593_v60 = vld [vmem:[%s6688_s5 + $0x68] sm:$0xf0] }
  0x99   :  { %v4601_v62 = vor.u32 %v3835_v59, %v3593_v60  ;;  %1357 = vmatpush.bf16.msra.mxu3 %v3656_v58  ;;  %v3850_v58 = vld [vmem:[%s6688_s5 + $0xd4] sm:$0xf0] }
  0x9a   :  { %v4560_v13 = vpop.f32.mrf.mxu2 }
  0x9b   :  { %v288_v3 = vpop.f32.mrf.mxu3  ;;  %1446 = vmatpush.bf16.msra.mxu0 %v4601_v62 }
  0x9c   :  { %v161_v4 = vpop.f32.mrf.mxu0  ;;  %v289_v20 = vadd.f32 %v288_v3, %v4511_v30 }
  0x9d   :  { %v162_v5 = vadd.f32 %v161_v4, %v4513_v31  ;;  %v250_v6 = vpop.f32.mrf.mxu1 }
  0x9e   :  { %v251_v9 = vadd.f32 %v250_v6, %v4511_v30  ;;  %v360_v24 = vmax.f32 %v289_v20, 0.0 }
  0x9f   :  { %v329_v12 = vmax.f32 %v162_v5, 0.0 }
  0xa0   :  { %v330_v14 = vmax.f32 %v251_v9, 0.0 }
  0xa1   :  { %v389_v15 = vpack.c.bf16 %v329_v12, %v327_v10 }
  0xa2   :  { %v390_v16 = vpack.c.bf16 %v330_v14, %v328_v8  ;;  %v4570_v26 = vpop.f32.mrf.mxu2 }
  0xa3   :  { %630 = vmatmul.bf16.gmra.mxu2 %v389_v15  ;;  %v290_v17 = vpop.f32.mrf.mxu3 }
  0xa4   :  { %719 = vmatmul.bf16.gmra.mxu3 %v390_v16  ;;  %897 = vmatmul.bf16.gmra.mxu1 %v390_v16  ;;  %v164_v18 = vpop.f32.mrf.mxu0  ;;  %v291_v21 = vadd.f32 %v290_v17, %v4511_v30 }
  0xa5   :  { %v253_v19 = vpop.f32.mrf.mxu1  ;;  %v165_v29 = vadd.f32 %v164_v18, %v4513_v31 }
  0xa6   :  { %v362_v25 = vmax.f32 %v291_v21, 0.0  ;;  %v254_v28 = vadd.f32 %v253_v19, %v4511_v30 }
  0xa7   :  { %808 = vmatmul.bf16.gmra.mxu0 %v389_v15  ;;  %v331_v11 = vmax.f32 %v165_v29, 0.0 }
  0xa8   :  { %v4575_v36 = vpack.c.bf16 %v362_v25, %v360_v24  ;;  %v332_v37 = vmax.f32 %v254_v28, 0.0  ;;  %v3649_v24 = vld [vmem:[%s6688_s5 + $0xd8] sm:$0xf0] }
  0xa9   :  { %v3652_v28 = vor.u32 %v3849_v23, %v3649_v24 }
  0xaa   :  { %v4578_v44 = vpop.f32.mrf.mxu2 }
  0xab   :  { %v293_v32 = vpop.f32.mrf.mxu3  ;;  %1536 = vmatpush.bf16.msra.mxu1 %v3652_v28 }
  0xac   :  { %v166_v33 = vpop.f32.mrf.mxu0  ;;  %v294_v50 = vadd.f32 %v293_v32, %v4511_v30 }
  0xad   :  { %v167_v34 = vadd.f32 %v166_v33, %v4513_v31  ;;  %v255_v35 = vpop.f32.mrf.mxu1 }
  0xae   :  { %v256_v39 = vadd.f32 %v255_v35, %v4511_v30  ;;  %v364_v56 = vmax.f32 %v294_v50, 0.0  ;;  %v3575_v50 = vld [vmem:[%s6688_s5 + $0x40] sm:$0xf] }
  0xaf   :  { %v333_v40 = vmax.f32 %v167_v34, 0.0 }
  0xb0   :  { %v334_v41 = vmax.f32 %v256_v39, 0.0 }
  0xb1   :  { %v391_v42 = vpack.c.bf16 %v333_v40, %v331_v11 }
  0xb2   :  { %v392_v43 = vpack.c.bf16 %v334_v41, %v332_v37  ;;  %v4606_v5 = vpop.f32.mrf.mxu2 }
  0xb3   :  { %635 = vmatmul.bf16.gmra.mxu2 %v391_v42  ;;  %v295_v45 = vpop.f32.mrf.mxu3 }
  0xb4   :  { %724 = vmatmul.bf16.gmra.mxu3 %v392_v43  ;;  %902 = vmatmul.bf16.gmra.mxu1 %v392_v43  ;;  %v169_v46 = vpop.f32.mrf.mxu0  ;;  %v296_v51 = vadd.f32 %v295_v45, %v4511_v30 }
  0xb5   :  { %v258_v49 = vpop.f32.mrf.mxu1  ;;  %v170_v63 = vadd.f32 %v169_v46, %v4513_v31 }
  0xb6   :  { %v366_v57 = vmax.f32 %v296_v51, 0.0  ;;  %v259_v61 = vadd.f32 %v258_v49, %v4511_v30  ;;  %v3832_v51 = vld [vmem:[%s6688_s5 + $0x44] sm:$0xf0] }
  0xb7   :  { %813 = vmatmul.bf16.gmra.mxu0 %v391_v42  ;;  %v335_v10 = vmax.f32 %v170_v63, 0.0  ;;  %v3833_v63 = vld [vmem:[%s6688_s5 + $0x54] sm:$0xf] }
  0xb8   :  { %v4608_v6 = vpack.c.bf16 %v366_v57, %v364_v56  ;;  %v336_v8 = vmax.f32 %v259_v61, 0.0  ;;  %v3576_v56 = vor.u32 %v3832_v51, %v3575_v50  ;;  %v3647_v57 = vld [vmem:[%s6688_s5 + $0xd0] sm:$0xf] }
  0xb9   :  { %v3648_v61 = vor.u32 %v3850_v58, %v3647_v57 }
  0xba   :  { %v4613_v22 = vpop.f32.mrf.mxu2  ;;  %1270 = vmatpush.bf16.msra.mxu2 %v3576_v56 }
  0xbb   :  { %v298_v0 = vpop.f32.mrf.mxu3  ;;  %1358 = vmatpush.bf16.msra.mxu3 %v3648_v61  ;;  %v3830_v61 = vld [vmem:[%s6688_s5 + $0x34] sm:$0xf0] }
  0xbc   :  { %v171_v2 = vpop.f32.mrf.mxu0  ;;  %v299_v20 = vadd.f32 %v298_v0, %v4511_v30  ;;  %v3585_v0 = vld [vmem:[%s6688_s5 + $0x58] sm:$0xf0] }
  0xbd   :  { %v172_v3 = vadd.f32 %v171_v2, %v4513_v31  ;;  %v260_v4 = vpop.f32.mrf.mxu1 }
  0xbe   :  { %v261_v9 = vadd.f32 %v260_v4, %v4511_v30  ;;  %v368_v25 = vmax.f32 %v299_v20, 0.0 }
  0xbf   :  { %v337_v12 = vmax.f32 %v172_v3, 0.0  ;;  %v4650_v3 = vor.u32 %v3833_v63, %v3585_v0 }
  0xc0   :  { %v338_v14 = vmax.f32 %v261_v9, 0.0 }
  0xc1   :  { %v393_v15 = vpack.c.bf16 %v337_v12, %v335_v10  ;;  %1447 = vmatpush.bf16.msra.mxu0 %v4650_v3 }
  0xc2   :  { %v394_v16 = vpack.c.bf16 %v338_v14, %v336_v8  ;;  %v4627_v46 = vpop.f32.mrf.mxu2 }
  0xc3   :  { %640 = vmatmul.bf16.gmra.mxu2 %v393_v15  ;;  %v300_v17 = vpop.f32.mrf.mxu3 }
  0xc4   :  { %729 = vmatmul.bf16.gmra.mxu3 %v394_v16  ;;  %907 = vmatmul.bf16.gmra.mxu1 %v394_v16  ;;  %v174_v18 = vpop.f32.mrf.mxu0  ;;  %v301_v21 = vadd.f32 %v300_v17, %v4511_v30 }
  0xc5   :  { %v263_v19 = vpop.f32.mrf.mxu1  ;;  %v175_v32 = vadd.f32 %v174_v18, %v4513_v31 }
  0xc6   :  { %v370_v27 = vmax.f32 %v301_v21, 0.0  ;;  %v264_v29 = vadd.f32 %v263_v19, %v4511_v30 }
  0xc7   :  { %818 = vmatmul.bf16.gmra.mxu0 %v393_v15  ;;  %v339_v41 = vmax.f32 %v175_v32, 0.0 }
  0xc8   :  { %v4624_v39 = vpack.c.bf16 %v370_v27, %v368_v25  ;;  %v340_v11 = vmax.f32 %v264_v29, 0.0 }
  0xca   :  { %v4653_v8 = vpop.f32.mrf.mxu2 }
  0xcb   :  { %v303_v33 = vpop.f32.mrf.mxu3 }
  0xcc   :  { %v176_v34 = vpop.f32.mrf.mxu0  ;;  %v304_v53 = vadd.f32 %v303_v33, %v4511_v30  ;;  %v3847_v33 = vld [vmem:[%s6688_s5 + $0xc4] sm:$0xf] }
  0xcd   :  { %v177_v35 = vadd.f32 %v176_v34, %v4513_v31  ;;  %v265_v37 = vpop.f32.mrf.mxu1  ;;  %v3641_v34 = vld [vmem:[%s6688_s5 + $0xc8] sm:$0xf0] }
  0xce   :  { %v266_v40 = vadd.f32 %v265_v37, %v4511_v30  ;;  %v372_v59 = vmax.f32 %v304_v53, 0.0 }
  0xcf   :  { %v341_v42 = vmax.f32 %v177_v35, 0.0  ;;  %v3644_v35 = vor.u32 %v3847_v33, %v3641_v34 }
  0xd0   :  { %v342_v43 = vmax.f32 %v266_v40, 0.0 }
  0xd1   :  { %v395_v45 = vpack.c.bf16 %v341_v42, %v339_v41  ;;  %1537 = vmatpush.bf16.msra.mxu1 %v3644_v35 }
  0xd2   :  { %v396_v47 = vpack.c.bf16 %v342_v43, %v340_v11  ;;  %v4660_v28 = vpop.f32.mrf.mxu2 }
  0xd3   :  { %645 = vmatmul.bf16.gmra.mxu2 %v395_v45  ;;  %v305_v48 = vpop.f32.mrf.mxu3 }
  0xd4   :  { %734 = vmatmul.bf16.gmra.mxu3 %v396_v47  ;;  %912 = vmatmul.bf16.gmra.mxu1 %v396_v47  ;;  %v179_v49 = vpop.f32.mrf.mxu0  ;;  %v306_v54 = vadd.f32 %v305_v48, %v4511_v30 }
  0xd5   :  { %v268_v52 = vpop.f32.mrf.mxu1  ;;  %v180_v4 = vadd.f32 %v179_v49, %v4513_v31 }
  0xd6   :  { %v374_v60 = vmax.f32 %v306_v54, 0.0  ;;  %v269_v2 = vadd.f32 %v268_v52, %v4511_v30 }
  0xd7   :  { %823 = vmatmul.bf16.gmra.mxu0 %v395_v45  ;;  %v343_v18 = vmax.f32 %v180_v4, 0.0 }
  0xd8   :  { %v4657_v15 = vpack.c.bf16 %v374_v60, %v372_v59  ;;  %v344_v16 = vmax.f32 %v269_v2, 0.0  ;;  %v3567_v60 = vld [vmem:[%s6688_s5 + $0x30] sm:$0xf] }
  0xd9   :  { %v3568_v4 = vor.u32 %v3830_v61, %v3567_v60  ;;  %v451_v61 = vld [vmem:[%s6690_s4] sm:$0x3] }
  0xda   :  { %v4676_v53 = vpop.f32.mrf.mxu2 }
  0xdb   :  { %v308_v9 = vpop.f32.mrf.mxu3  ;;  %1271 = vmatpush.bf16.msra.mxu2 %v3568_v4 }
  0xdc   :  { %v181_v10 = vpop.f32.mrf.mxu0  ;;  %v309_v29 = vadd.f32 %v308_v9, %v4511_v30 }
  0xdd   :  { %v182_v12 = vadd.f32 %v181_v10, %v4513_v31  ;;  %v270_v14 = vpop.f32.mrf.mxu1 }
  0xde   :  { %v271_v17 = vadd.f32 %v270_v14, %v4511_v30  ;;  %v376_v37 = vmax.f32 %v309_v29, 0.0  ;;  %v3639_v14 = vld [vmem:[%s6688_s5 + $0xc0] sm:$0xf] }
  0xdf   :  { %v345_v19 = vmax.f32 %v182_v12, 0.0 }
  0xe0   :  { %v346_v20 = vmax.f32 %v271_v17, 0.0 }
  0xe1   :  { %v397_v21 = vpack.c.bf16 %v345_v19, %v343_v18 }
  0xe2   :  { %v398_v23 = vpack.c.bf16 %v346_v20, %v344_v16  ;;  %v4686_v9 = vpop.f32.mrf.mxu2  ;;  %v3848_v16 = vld [vmem:[%s6688_s5 + $0xc4] sm:$0xf0] }
  0xe3   :  { %650 = vmatmul.bf16.gmra.mxu2 %v397_v21  ;;  %v310_v24 = vpop.f32.mrf.mxu3  ;;  %v3640_v18 = vor.u32 %v3848_v16, %v3639_v14  ;;  %v3559_v16 = vld [vmem:[%s6688_s5 + $0x20] sm:$0xf] }
  0xe4   :  { %739 = vmatmul.bf16.gmra.mxu3 %v398_v23  ;;  %917 = vmatmul.bf16.gmra.mxu1 %v398_v23  ;;  %v184_v25 = vpop.f32.mrf.mxu0  ;;  %v311_v32 = vadd.f32 %v310_v24, %v4511_v30  ;;  %v3577_v23 = vld [vmem:[%s6688_s5 + $0x48] sm:$0xf0] }
  0xe5   :  { %v273_v27 = vpop.f32.mrf.mxu1  ;;  %v185_v41 = vadd.f32 %v184_v25, %v4513_v31  ;;  %1359 = vmatpush.bf16.msra.mxu3 %v3640_v18 }
  0xe6   :  { %v378_v11 = vmax.f32 %v311_v32, 0.0  ;;  %v274_v40 = vadd.f32 %v273_v27, %v4511_v30 }
  0xe7   :  { %828 = vmatmul.bf16.gmra.mxu0 %v397_v21  ;;  %v347_v51 = vmax.f32 %v185_v41, 0.0  ;;  %v3831_v21 = vld [vmem:[%s6688_s5 + $0x44] sm:$0xf] }
  0xe8   :  { %v4673_v48 = vpack.c.bf16 %v378_v11, %v376_v37  ;;  %v348_v49 = vmax.f32 %v274_v40, 0.0  ;;  %v4702_v25 = vor.u32 %v3831_v21, %v3577_v23 }
  0xea   :  { %1448 = vmatpush.bf16.msra.mxu0 %v4702_v25 }
  0xeb   :  { %v313_v42 = vpop.f32.mrf.mxu3 }
  0xec   :  { %v186_v43 = vpop.f32.mrf.mxu0  ;;  %v314_v0 = vadd.f32 %v313_v42, %v4511_v30  ;;  %v4709_v42 = vpop.f32.mrf.mxu2 }
  0xed   :  { %v187_v45 = vadd.f32 %v186_v43, %v4513_v31  ;;  %v275_v47 = vpop.f32.mrf.mxu1 }
  0xee   :  { %v276_v50 = vadd.f32 %v275_v47, %v4511_v30  ;;  %v380_v10 = vmax.f32 %v314_v0, 0.0 }
  0xef   :  { %v349_v52 = vmax.f32 %v187_v45, 0.0 }
  0xf0   :  { %v350_v54 = vmax.f32 %v276_v50, 0.0 }
  0xf1   :  { %v399_v56 = vpack.c.bf16 %v349_v52, %v347_v51 }
  0xf2   :  { %v400_v57 = vpack.c.bf16 %v350_v54, %v348_v49  ;;  %v3845_v54 = vld [vmem:[%s6688_s5 + $0xb4] sm:$0xf] }
  0xf3   :  { %655 = vmatmul.bf16.gmra.mxu2 %v399_v56  ;;  %v315_v58 = vpop.f32.mrf.mxu3 }
  0xf4   :  { %744 = vmatmul.bf16.gmra.mxu3 %v400_v57  ;;  %922 = vmatmul.bf16.gmra.mxu1 %v400_v57  ;;  %v189_v59 = vpop.f32.mrf.mxu0  ;;  %v316_v2 = vadd.f32 %v315_v58, %v4511_v30 }
  0xf5   :  { %v278_v63 = vpop.f32.mrf.mxu1  ;;  %v190_v19 = vadd.f32 %v189_v59, %v4513_v31 }
  0xf6   :  { %v382_v12 = vmax.f32 %v316_v2, 0.0  ;;  %v279_v17 = vadd.f32 %v278_v63, %v4511_v30 }
  0xf7   :  { %833 = vmatmul.bf16.gmra.mxu0 %v399_v56  ;;  %v351_v35 = vmax.f32 %v190_v19, 0.0  ;;  %v3633_v56 = vld [vmem:[%s6688_s5 + $0xb8] sm:$0xf0] }
  0xf8   :  { %v4705_v32 = vpack.c.bf16 %v382_v12, %v380_v10  ;;  %v352_v33 = vmax.f32 %v279_v17, 0.0  ;;  %v3636_v58 = vor.u32 %v3845_v54, %v3633_v56  ;;  %v4728_v10 = vperm.slane %v451_v61, 1  ;;  %v3828_v17 = vld [vmem:[%s6688_s5 + $0x24] sm:$0xf0] }
  0xf9   :  { %v4730_v12 = vperm.slane %v451_v61, 0  ;;  %v3560_v19 = vor.u32 %v3828_v17, %v3559_v16 }
  0xfa   :  { %1538 = vmatpush.bf16.msra.mxu1 %v3636_v58 }
  0xfb   :  { %v318_v20 = vpop.f32.mrf.mxu3  ;;  %1272 = vmatpush.bf16.msra.mxu2 %v3560_v19  ;;  %v205_v19 = vadd.f32 %v4560_v13, %v4513_v31 }
  0xfc   :  { %v191_v24 = vpop.f32.mrf.mxu0  ;;  %v319_v47 = vadd.f32 %v318_v20, %v4511_v30 }
  0xfd   :  { %v192_v27 = vadd.f32 %v191_v24, %v4513_v31  ;;  %v280_v29 = vpop.f32.mrf.mxu1 }
  0xfe   :  { %v281_v34 = vadd.f32 %v280_v29, %v4511_v30  ;;  %v384_v50 = vmax.f32 %v319_v47, 0.0 }
  0xff   :  { %v353_v37 = vmax.f32 %v192_v27, 0.0  ;;  %v202_v27 = vadd.f32 %v4537_v55, %v4513_v31 }
 0x100   :  { %v354_v11 = vmax.f32 %v281_v34, 0.0  ;;  %v3631_v34 = vld [vmem:[%s6688_s5 + $0xb0] sm:$0xf] }
 0x101   :  { %v401_v40 = vpack.c.bf16 %v353_v37, %v351_v35  ;;  %v3846_v35 = vld [vmem:[%s6688_s5 + $0xb4] sm:$0xf0] }
 0x102   :  { %v402_v41 = vpack.c.bf16 %v354_v11, %v352_v33  ;;  %v3632_v37 = vor.u32 %v3846_v35, %v3631_v34  ;;  %v3829_v11 = vld [vmem:[%s6688_s5 + $0x34] sm:$0xf] }
 0x103   :  { %660 = vmatmul.bf16.gmra.mxu2 %v401_v40  ;;  %v320_v45 = vpop.f32.mrf.mxu3 }
 0x104   :  { %749 = vmatmul.bf16.gmra.mxu3 %v402_v41  ;;  %927 = vmatmul.bf16.gmra.mxu1 %v402_v41  ;;  %v194_v43 = vpop.f32.mrf.mxu0  ;;  %v321_v49 = vadd.f32 %v320_v45, %v4511_v30  ;;  %v4723_v30 = vpop.f32.mrf.mxu2 }
 0x105   :  { %v195_v52 = vadd.f32 %v194_v43, %v4513_v31  ;;  %1360 = vmatpush.bf16.msra.mxu3 %v3632_v37  ;;  %v361_v43 = vmax.f32 %v202_v27, 0.0 }
 0x106   :  { %v386_v51 = vmax.f32 %v321_v49, 0.0 }
 0x107   :  { %838 = vmatmul.bf16.gmra.mxu0 %v401_v40  ;;  %v355_v63 = vmax.f32 %v195_v52, 0.0 }
 0x108   :  { %v4721_v60 = vpack.c.bf16 %v386_v51, %v384_v50 }
 0x10c   :  { %v196_v57 = vpop.f32.mrf.mxu0 }
 0x10d   :  { %v197_v59 = vadd.f32 %v196_v57, %v4513_v31 }
 0x10f   :  { %v357_v0 = vmax.f32 %v197_v59, 0.0 }
 0x111   :  { %v893_v2 = vpop.f32.mrf.mxu1  ;;  %v403_v4 = vpack.c.bf16 %v357_v0, %v355_v63 }
 0x113   :  { %665 = vmatmul.bf16.gmra.mxu2 %v403_v4 }
 0x114   :  { %754 = vmatmul.bf16.gmra.mxu3 %v4557_v7  ;;  %932 = vmatmul.bf16.gmra.mxu1 %v4557_v7  ;;  %v804_v14 = vpop.f32.mrf.mxu0  ;;  %v200_v7 = vadd.f32 %v4525_v38, %v4513_v31  ;;  %v3569_v38 = vld [vmem:[%s6688_s5 + $0x38] sm:$0xf0] }
 0x115   :  { %v805_v18 = vadd.f32 %v804_v14, %v4728_v10  ;;  %v4758_v40 = vor.u32 %v3829_v11, %v3569_v38 }
 0x116   :  { %v626_v20 = vpop.f32.mrf.mxu2  ;;  %v359_v41 = vmax.f32 %v200_v7, 0.0 }
 0x117   :  { %v894_v21 = vadd.f32 %v893_v2, %v805_v18  ;;  %v627_v23 = vadd.f32 %v626_v20, %v4730_v12  ;;  %v715_v24 = vpop.f32.mrf.mxu3  ;;  %843 = vmatmul.bf16.gmra.mxu0 %v403_v4  ;;  %v207_v20 = vadd.f32 %v4570_v26, %v4513_v31 }
 0x118   :  { %1449 = vmatpush.bf16.msra.mxu0 %v4758_v40  ;;  %v405_v58 = vpack.c.bf16 %v361_v43, %v359_v41 }
 0x119   :  { %v716_v29 = vadd.f32 %v715_v24, %v627_v23  ;;  %v895_v33 = vpop.f32.mrf.mxu1  ;;  %v974_v52 = vmax.f32 %v894_v21, 0.0  ;;  %v3625_v24 = vld [vmem:[%s6688_s5 + $0xa8] sm:$0xf0] }
 0x11b   :  { %v973_v59 = vmax.f32 %v716_v29, 0.0  ;;  %v363_v29 = vmax.f32 %v205_v19, 0.0 }
 0x11c   :  { %v806_v55 = vpop.f32.mrf.mxu0 }
 0x11d   :  { %v807_v45 = vadd.f32 %v806_v55, %v4728_v10 }
 0x11e   :  { %v628_v47 = vpop.f32.mrf.mxu2 }
 0x11f   :  { %v896_v49 = vadd.f32 %v895_v33, %v807_v45  ;;  %v629_v50 = vadd.f32 %v628_v47, %v4730_v12  ;;  %v717_v51 = vpop.f32.mrf.mxu3  ;;  %v365_v33 = vmax.f32 %v207_v20, 0.0  ;;  %v3827_v20 = vld [vmem:[%s6688_s5 + $0x24] sm:$0xf] }
 0x121   :  { %v976_v54 = vmax.f32 %v896_v49, 0.0  ;;  %v718_v56 = vadd.f32 %v717_v51, %v629_v50  ;;  %v898_v57 = vpop.f32.mrf.mxu1  ;;  %v407_v43 = vpack.c.bf16 %v365_v33, %v363_v29  ;;  %v3551_v51 = vld [vmem:[%s6688_s5 + $0x10] sm:$0xf] }
 0x123   :  { %v4763_v61 = vpack.c.bf16 %v976_v54, %v974_v52  ;;  %v975_v63 = vmax.f32 %v718_v56, 0.0  ;;  %670 = vmatmul.bf16.gmra.mxu2 %v405_v58  ;;  %v3826_v52 = vld [vmem:[%s6688_s5 + $0x14] sm:$0xf0] }
 0x124   :  { %759 = vmatmul.bf16.gmra.mxu3 %v4575_v36  ;;  %937 = vmatmul.bf16.gmra.mxu1 %v4575_v36  ;;  %v809_v0 = vpop.f32.mrf.mxu0  ;;  %v3843_v36 = vld [vmem:[%s6688_s5 + $0xa4] sm:$0xf]  ;;  %v3552_v56 = vor.u32 %v3826_v52, %v3551_v51 }
 0x125   :  { %v4767_v2 = vpack.c.bf16 %v975_v63, %v973_v59  ;;  %v810_v4 = vadd.f32 %v809_v0, %v4728_v10  ;;  %v3628_v27 = vor.u32 %v3843_v36, %v3625_v24 }
 0x126   :  { %v631_v14 = vpop.f32.mrf.mxu2  ;;  %1273 = vmatpush.bf16.msra.mxu2 %v3552_v56  ;;  %v217_v56 = vadd.f32 %v4627_v46, %v4513_v31 }
 0x127   :  { %v899_v16 = vadd.f32 %v898_v57, %v810_v4  ;;  %v632_v17 = vadd.f32 %v631_v14, %v4730_v12  ;;  %v720_v18 = vpop.f32.mrf.mxu3  ;;  %848 = vmatmul.bf16.gmra.mxu0 %v405_v58  ;;  %1539 = vmatpush.bf16.msra.mxu1 %v3628_v27  ;;  %v212_v4 = vadd.f32 %v4606_v5, %v4513_v31 }
 0x129   :  { %v721_v21 = vadd.f32 %v720_v18, %v632_v17  ;;  %v900_v23 = vpop.f32.mrf.mxu1  ;;  %v978_v11 = vmax.f32 %v899_v16, 0.0  ;;  %v3623_v17 = vld [vmem:[%s6688_s5 + $0xa0] sm:$0xf]  ;;  %v3844_v18 = vld [vmem:[%s6688_s5 + $0xa4] sm:$0xf0]  ;;  %v369_v36 = vmax.f32 %v212_v4, 0.0 }
 0x12a   :  { %v3624_v19 = vor.u32 %v3844_v18, %v3623_v17 }
 0x12b   :  { %v977_v45 = vmax.f32 %v721_v21, 0.0 }
 0x12c   :  { %v811_v7 = vpop.f32.mrf.mxu0  ;;  %1361 = vmatpush.bf16.msra.mxu3 %v3624_v19 }
 0x12d   :  { %v812_v34 = vadd.f32 %v811_v7, %v4728_v10 }
 0x12e   :  { %v633_v13 = vpop.f32.mrf.mxu2 }
 0x12f   :  { %v901_v35 = vadd.f32 %v900_v23, %v812_v34  ;;  %v634_v26 = vadd.f32 %v633_v13, %v4730_v12  ;;  %v722_v37 = vpop.f32.mrf.mxu3 }
 0x131   :  { %v980_v38 = vmax.f32 %v901_v35, 0.0  ;;  %v723_v55 = vadd.f32 %v722_v37, %v634_v26  ;;  %v903_v41 = vpop.f32.mrf.mxu1 }
 0x133   :  { %v979_v47 = vmax.f32 %v723_v55, 0.0  ;;  %675 = vmatmul.bf16.gmra.mxu2 %v407_v43  ;;  %v4783_v49 = vpack.c.bf16 %v980_v38, %v978_v11 }
 0x134   :  { %764 = vmatmul.bf16.gmra.mxu3 %v4608_v6  ;;  %942 = vmatmul.bf16.gmra.mxu1 %v4608_v6  ;;  %v814_v50 = vpop.f32.mrf.mxu0  ;;  %v210_v6 = vadd.f32 %v4578_v44, %v4513_v31  ;;  %v3561_v44 = vld [vmem:[%s6688_s5 + $0x28] sm:$0xf0] }
 0x135   :  { %v815_v54 = vadd.f32 %v814_v50, %v4728_v10  ;;  %v4794_v57 = vpack.c.bf16 %v979_v47, %v977_v45  ;;  %v4813_v21 = vor.u32 %v3827_v20, %v3561_v44 }
 0x136   :  { %v636_v58 = vpop.f32.mrf.mxu2  ;;  %v367_v23 = vmax.f32 %v210_v6, 0.0 }
 0x137   :  { %v904_v59 = vadd.f32 %v903_v41, %v815_v54  ;;  %v637_v63 = vadd.f32 %v636_v58, %v4730_v12  ;;  %v725_v0 = vpop.f32.mrf.mxu3  ;;  %853 = vmatmul.bf16.gmra.mxu0 %v407_v43  ;;  %v215_v54 = vadd.f32 %v4613_v22, %v4513_v31 }
 0x138   :  { %1450 = vmatpush.bf16.msra.mxu0 %v4813_v21  ;;  %v409_v37 = vpack.c.bf16 %v369_v36, %v367_v23 }
 0x139   :  { %v726_v14 = vadd.f32 %v725_v0, %v637_v63  ;;  %v905_v16 = vpop.f32.mrf.mxu1  ;;  %v982_v34 = vmax.f32 %v904_v59, 0.0  ;;  %v3617_v63 = vld [vmem:[%s6688_s5 + $0x98] sm:$0xf0]  ;;  %v371_v4 = vmax.f32 %v215_v54, 0.0 }
 0x13b   :  { %v981_v11 = vmax.f32 %v726_v14, 0.0  ;;  %v373_v14 = vmax.f32 %v217_v56, 0.0 }
 0x13c   :  { %v816_v5 = vpop.f32.mrf.mxu0 }
 0x13d   :  { %v817_v24 = vadd.f32 %v816_v5, %v4728_v10  ;;  %v411_v23 = vpack.c.bf16 %v373_v14, %v371_v4 }
 0x13e   :  { %v638_v7 = vpop.f32.mrf.mxu2 }
 0x13f   :  { %v906_v27 = vadd.f32 %v905_v16, %v817_v24  ;;  %v639_v29 = vadd.f32 %v638_v7, %v4730_v12  ;;  %v727_v33 = vpop.f32.mrf.mxu3 }
 0x141   :  { %v984_v13 = vmax.f32 %v906_v27, 0.0  ;;  %v728_v35 = vadd.f32 %v727_v33, %v639_v29  ;;  %v908_v26 = vpop.f32.mrf.mxu1  ;;  %v3543_v29 = vld [vmem:[%s6688_s5] sm:$0xf]  ;;  %v3824_v33 = vld [vmem:[%s6688_s5 + $0x4] sm:$0xf0] }
 0x143   :  { %v983_v38 = vmax.f32 %v728_v35, 0.0  ;;  %680 = vmatmul.bf16.gmra.mxu2 %v409_v37  ;;  %v4818_v55 = vpack.c.bf16 %v984_v13, %v982_v34  ;;  %v3544_v13 = vor.u32 %v3824_v33, %v3543_v29  ;;  %v3609_v33 = vld [vmem:[%s6688_s5 + $0x88] sm:$0xf0] }
 0x144   :  { %769 = vmatmul.bf16.gmra.mxu3 %v4624_v39  ;;  %947 = vmatmul.bf16.gmra.mxu1 %v4624_v39  ;;  %v819_v41 = vpop.f32.mrf.mxu0  ;;  %v3841_v39 = vld [vmem:[%s6688_s5 + $0x94] sm:$0xf] }
 0x145   :  { %v820_v43 = vadd.f32 %v819_v41, %v4728_v10  ;;  %v4823_v45 = vpack.c.bf16 %v983_v38, %v981_v11  ;;  %v3620_v6 = vor.u32 %v3841_v39, %v3617_v63  ;;  %1274 = vmatpush.bf16.msra.mxu2 %v3544_v13  ;;  %v222_v41 = vadd.f32 %v4660_v28, %v4513_v31 }
 0x146   :  { %v641_v47 = vpop.f32.mrf.mxu2 }
 0x147   :  { %v909_v50 = vadd.f32 %v908_v26, %v820_v43  ;;  %v642_v51 = vadd.f32 %v641_v47, %v4730_v12  ;;  %v730_v52 = vpop.f32.mrf.mxu3  ;;  %858 = vmatmul.bf16.gmra.mxu0 %v409_v37  ;;  %1540 = vmatpush.bf16.msra.mxu1 %v3620_v6 }
 0x149   :  { %v731_v58 = vadd.f32 %v730_v52, %v642_v51  ;;  %v910_v59 = vpop.f32.mrf.mxu1  ;;  %v986_v19 = vmax.f32 %v909_v50, 0.0  ;;  %3857 = vmatpush.bf16.msrb.mxu2 %v4552_v1  ;;  %v3615_v50 = vld [vmem:[%s6688_s5 + $0x90] sm:$0xf]  ;;  %v3842_v51 = vld [vmem:[%s6688_s5 + $0x94] sm:$0xf0] }
 0x14a   :  { %v3616_v52 = vor.u32 %v3842_v51, %v3615_v50  ;;  %v3825_v1 = vld [vmem:[%s6688_s5 + $0x14] sm:$0xf] }
 0x14b   :  { %v985_v36 = vmax.f32 %v731_v58, 0.0  ;;  %v377_v58 = vmax.f32 %v222_v41, 0.0 }
 0x14c   :  { %v821_v0 = vpop.f32.mrf.mxu0  ;;  %1362 = vmatpush.bf16.msra.mxu3 %v3616_v52 }
 0x14d   :  { %v822_v16 = vadd.f32 %v821_v0, %v4728_v10  ;;  %3858 = vmatpush.bf16.msrb.mxu2 %v4601_v62 }
 0x14e   :  { %v643_v22 = vpop.f32.mrf.mxu2 }
 0x14f   :  { %v911_v17 = vadd.f32 %v910_v59, %v822_v16  ;;  %v644_v46 = vadd.f32 %v643_v22, %v4730_v12  ;;  %v732_v18 = vpop.f32.mrf.mxu3 }
 0x151   :  { %v988_v20 = vmax.f32 %v911_v17, 0.0  ;;  %v733_v44 = vadd.f32 %v732_v18, %v644_v46  ;;  %v913_v5 = vpop.f32.mrf.mxu1  ;;  %3859 = vmatpush.bf16.msrb.mxu2 %v4650_v3 }
 0x153   :  { %v987_v24 = vmax.f32 %v733_v44, 0.0  ;;  %685 = vmatmul.bf16.gmra.mxu2 %v411_v23  ;;  %v4838_v7 = vpack.c.bf16 %v988_v20, %v986_v19 }
 0x154   :  { %774 = vmatmul.bf16.gmra.mxu3 %v4657_v15  ;;  %952 = vmatmul.bf16.gmra.mxu1 %v4657_v15  ;;  %v824_v27 = vpop.f32.mrf.mxu0  ;;  %v220_v15 = vadd.f32 %v4653_v8, %v4513_v31  ;;  %v3553_v8 = vld [vmem:[%s6688_s5 + $0x18] sm:$0xf0] }
 0x155   :  { %v825_v34 = vadd.f32 %v824_v27, %v4728_v10  ;;  %v4849_v35 = vpack.c.bf16 %v987_v24, %v985_v36  ;;  %v3556_v54 = vor.u32 %v3825_v1, %v3553_v8  ;;  %3860 = vmatpush.bf16.msrb.mxu2 %v4702_v25  ;;  %v225_v24 = vadd.f32 %v4676_v53, %v4513_v31  ;;  %v3839_v25 = vld [vmem:[%s6688_s5 + $0x84] sm:$0xf]  ;;  %v3545_v8 = vld [vmem:[%s6688_s5 + $0x8] sm:$0xf0] }
 0x156   :  { %v646_v26 = vpop.f32.mrf.mxu2  ;;  %v375_v56 = vmax.f32 %v220_v15, 0.0  ;;  %v227_v27 = vadd.f32 %v4686_v9, %v4513_v31  ;;  %v3612_v13 = vor.u32 %v3839_v25, %v3609_v33  ;;  %v3823_v1 = vld [vmem:[%s6688_s5 + $0x4] sm:$0xf] }
 0x157   :  { %v914_v37 = vadd.f32 %v913_v5, %v825_v34  ;;  %v647_v11 = vadd.f32 %v646_v26, %v4730_v12  ;;  %v735_v38 = vpop.f32.mrf.mxu3  ;;  %863 = vmatmul.bf16.gmra.mxu0 %v411_v23  ;;  %v379_v26 = vmax.f32 %v225_v24, 0.0 }
 0x158   :  { %1451 = vmatpush.bf16.msra.mxu0 %v3556_v54  ;;  %v413_v17 = vpack.c.bf16 %v377_v58, %v375_v56  ;;  %1541 = vmatpush.bf16.msra.mxu1 %v3612_v13  ;;  %v3548_v58 = vor.u32 %v3823_v1, %v3545_v8 }
 0x159   :  { %v736_v43 = vadd.f32 %v735_v38, %v647_v11  ;;  %v915_v47 = vpop.f32.mrf.mxu1  ;;  %v990_v4 = vmax.f32 %v914_v37, 0.0  ;;  %3861 = vmatpush.bf16.msrb.mxu2 %v4758_v40  ;;  %v381_v37 = vmax.f32 %v227_v27, 0.0  ;;  %v3607_v40 = vld [vmem:[%s6688_s5 + $0x80] sm:$0xf]  ;;  %v3840_v11 = vld [vmem:[%s6688_s5 + $0x84] sm:$0xf0] }
 0x15b   :  { %v989_v46 = vmax.f32 %v736_v43, 0.0  ;;  %v3608_v43 = vor.u32 %v3840_v11, %v3607_v40 }
 0x15c   :  { %v826_v28 = vpop.f32.mrf.mxu0  ;;  %1452 = vmatpush.bf16.msra.mxu0 %v3548_v58 }
 0x15d   :  { %v827_v59 = vadd.f32 %v826_v28, %v4728_v10  ;;  %3862 = vmatpush.bf16.msrb.mxu2 %v4813_v21  ;;  %v415_v21 = vpack.c.bf16 %v381_v37, %v379_v26  ;;  %1363 = vmatpush.bf16.msra.mxu3 %v3608_v43 }
 0x15e   :  { %v648_v39 = vpop.f32.mrf.mxu2 }
 0x15f   :  { %v916_v63 = vadd.f32 %v915_v47, %v827_v59  ;;  %v649_v0 = vadd.f32 %v648_v39, %v4730_v12  ;;  %v737_v6 = vpop.f32.mrf.mxu3 }
 0x161   :  { %v992_v14 = vmax.f32 %v916_v63, 0.0  ;;  %v738_v16 = vadd.f32 %v737_v6, %v649_v0  ;;  %v918_v22 = vpop.f32.mrf.mxu1  ;;  %3863 = vmatpush.bf16.msrb.mxu2 %v3556_v54 }
 0x163   :  { %v991_v18 = vmax.f32 %v738_v16, 0.0  ;;  %690 = vmatmul.bf16.gmra.mxu2 %v413_v17  ;;  %v4873_v62 = vpack.c.bf16 %v992_v14, %v990_v4  ;;  %v230_v16 = vadd.f32 %v4709_v42, %v4513_v31 }
 0x164   :  { %779 = vmatmul.bf16.gmra.mxu3 %v4673_v48  ;;  %957 = vmatmul.bf16.gmra.mxu1 %v4673_v48  ;;  %v829_v19 = vpop.f32.mrf.mxu0 }
 0x165   :  { %v830_v20 = vadd.f32 %v829_v19, %v4728_v10  ;;  %v4878_v44 = vpack.c.bf16 %v991_v18, %v989_v46  ;;  %3864 = vmatpush.bf16.msrb.mxu2 %v3548_v58  ;;  %v383_v18 = vmax.f32 %v230_v16, 0.0 }
 0x166   :  { %v651_v3 = vpop.f32.mrf.mxu2 }
 0x167   :  { %v919_v5 = vadd.f32 %v918_v22, %v830_v20  ;;  %v652_v23 = vadd.f32 %v651_v3, %v4730_v12  ;;  %v740_v36 = vpop.f32.mrf.mxu3  ;;  %868 = vmatmul.bf16.gmra.mxu0 %v413_v17  ;;  %v232_v22 = vadd.f32 %v4723_v30, %v4513_v31 }
 0x169   :  { %v741_v48 = vadd.f32 %v740_v36, %v652_v23  ;;  %v920_v29 = vpop.f32.mrf.mxu1  ;;  %v994_v47 = vmax.f32 %v919_v5, 0.0  ;;  %v385_v19 = vmax.f32 %v232_v22, 0.0 }
 0x16b   :  { %v993_v28 = vmax.f32 %v741_v48, 0.0  ;;  %v417_v42 = vpack.c.bf16 %v385_v19, %v383_v18 }
 0x16c   :  { %v831_v34 = vpop.f32.mrf.mxu0 }
 0x16d   :  { %v832_v53 = vadd.f32 %v831_v34, %v4728_v10 }
 0x16e   :  { %v653_v9 = vpop.f32.mrf.mxu2 }
 0x16f   :  { %v921_v38 = vadd.f32 %v920_v29, %v832_v53  ;;  %v654_v15 = vadd.f32 %v653_v9, %v4730_v12  ;;  %v742_v41 = vpop.f32.mrf.mxu3 }
 0x171   :  { %v996_v50 = vmax.f32 %v921_v38, 0.0  ;;  %v743_v51 = vadd.f32 %v742_v41, %v654_v15  ;;  %v923_v52 = vpop.f32.mrf.mxu1 }
 0x173   :  { %v995_v56 = vmax.f32 %v743_v51, 0.0  ;;  %695 = vmatmul.bf16.gmra.mxu2 %v415_v21  ;;  %v4908_v59 = vpack.c.bf16 %v996_v50, %v994_v47 }
 0x174   :  { %784 = vmatmul.bf16.gmra.mxu3 %v4705_v32  ;;  %962 = vmatmul.bf16.gmra.mxu1 %v4705_v32  ;;  %v834_v39 = vpop.f32.mrf.mxu0 }
 0x175   :  { %v835_v54 = vadd.f32 %v834_v39, %v4728_v10  ;;  %v4913_v63 = vpack.c.bf16 %v995_v56, %v993_v28 }
 0x176   :  { %v656_v0 = vpop.f32.mrf.mxu2 }
 0x177   :  { %v924_v6 = vadd.f32 %v923_v52, %v835_v54  ;;  %v657_v4 = vadd.f32 %v656_v0, %v4730_v12  ;;  %v745_v14 = vpop.f32.mrf.mxu3  ;;  %873 = vmatmul.bf16.gmra.mxu0 %v415_v21 }
 0x179   :  { %v746_v32 = vadd.f32 %v745_v14, %v657_v4  ;;  %v925_v17 = vpop.f32.mrf.mxu1  ;;  %v998_v24 = vmax.f32 %v924_v6, 0.0 }
 0x17b   :  { %v997_v25 = vmax.f32 %v746_v32, 0.0 }
 0x17c   :  { %v836_v46 = vpop.f32.mrf.mxu0 }
 0x17d   :  { %v837_v20 = vadd.f32 %v836_v46, %v4728_v10 }
 0x17e   :  { %v658_v3 = vpop.f32.mrf.mxu2 }
 0x17f   :  { %v926_v5 = vadd.f32 %v925_v17, %v837_v20  ;;  %v659_v23 = vadd.f32 %v658_v3, %v4730_v12  ;;  %v747_v36 = vpop.f32.mrf.mxu3 }
 0x181   :  { %v1000_v27 = vmax.f32 %v926_v5, 0.0  ;;  %v748_v48 = vadd.f32 %v747_v36, %v659_v23  ;;  %v928_v29 = vpop.f32.mrf.mxu1 }
 0x183   :  { %v999_v33 = vmax.f32 %v748_v48, 0.0  ;;  %700 = vmatmul.bf16.gmra.mxu2 %v417_v42  ;;  %v4922_v31 = vpack.c.bf16 %v1000_v27, %v998_v24 }
 0x184   :  { %789 = vmatmul.bf16.gmra.mxu3 %v4721_v60  ;;  %967 = vmatmul.bf16.gmra.mxu1 %v4721_v60  ;;  %v839_v30 = vpop.f32.mrf.mxu0 }
 0x185   :  { %v840_v34 = vadd.f32 %v839_v30, %v4728_v10  ;;  %v4927_v13 = vpack.c.bf16 %v999_v33, %v997_v25 }
 0x186   :  { %v661_v26 = vpop.f32.mrf.mxu2 }
 0x187   :  { %v929_v37 = vadd.f32 %v928_v29, %v840_v34  ;;  %v662_v53 = vadd.f32 %v661_v26, %v4730_v12  ;;  %v750_v9 = vpop.f32.mrf.mxu3  ;;  %878 = vmatmul.bf16.gmra.mxu0 %v417_v42 }
 0x189   :  { %v751_v40 = vadd.f32 %v750_v9, %v662_v53  ;;  %v930_v11 = vpop.f32.mrf.mxu1  ;;  %v1002_v50 = vmax.f32 %v929_v37, 0.0 }
 0x18b   :  { %v1001_v1 = vmax.f32 %v751_v40, 0.0 }
 0x18c   :  { %v841_v38 = vpop.f32.mrf.mxu0 }
 0x18d   :  { %v842_v15 = vadd.f32 %v841_v38, %v4728_v10 }
 0x18e   :  { %v663_v41 = vpop.f32.mrf.mxu2 }
 0x18f   :  { %v931_v43 = vadd.f32 %v930_v11, %v842_v15  ;;  %v664_v60 = vadd.f32 %v663_v41, %v4730_v12  ;;  %v752_v47 = vpop.f32.mrf.mxu3 }
 0x191   :  { %v1004_v51 = vmax.f32 %v931_v43, 0.0  ;;  %v753_v52 = vadd.f32 %v752_v47, %v664_v60  ;;  %v933_v21 = vpop.f32.mrf.mxu1 }
 0x193   :  { %v1003_v8 = vmax.f32 %v753_v52, 0.0  ;;  %1275 = vmatmul.bf16.vlgmr.msra.gmra.mxu2 %v4767_v2  ;;  %v4933_v28 = vpack.c.bf16 %v1004_v51, %v1002_v50 }
 0x194   :  { %1364 = vmatmul.bf16.vlgmr.msra.gmra.mxu3 %v4763_v61  ;;  %1542 = vmatmul.bf16.vlgmr.msra.gmra.mxu1 %v4763_v61  ;;  %v844_v56 = vpop.f32.mrf.mxu0 }
 0x195   :  { %v845_v58 = vadd.f32 %v844_v56, %v4728_v10  ;;  %v4938_v39 = vpack.c.bf16 %v1003_v8, %v1001_v1 }
 0x196   :  { %v666_v54 = vpop.f32.mrf.mxu2 }
 0x197   :  { %v934_v0 = vadd.f32 %v933_v21, %v845_v58  ;;  %v667_v6 = vadd.f32 %v666_v54, %v4730_v12  ;;  %v755_v4 = vpop.f32.mrf.mxu3  ;;  %1453 = vmatmul.bf16.vlgmr.msra.gmra.mxu0 %v4767_v2 }
 0x199   :  { %v756_v14 = vadd.f32 %v755_v4, %v667_v6  ;;  %v935_v16 = vpop.f32.mrf.mxu1  ;;  %v1006_v19 = vmax.f32 %v934_v0, 0.0 }
 0x19b   :  { %v1005_v23 = vmax.f32 %v756_v14, 0.0 }
 0x19c   :  { %v846_v22 = vpop.f32.mrf.mxu0 }
 0x19d   :  { %v847_v32 = vadd.f32 %v846_v22, %v4728_v10 }
 0x19e   :  { %v668_v17 = vpop.f32.mrf.mxu2 }
 0x19f   :  { %v936_v46 = vadd.f32 %v935_v16, %v847_v32  ;;  %v669_v61 = vadd.f32 %v668_v17, %v4730_v12  ;;  %v757_v18 = vpop.f32.mrf.mxu3 }
 0x1a1   :  { %v1008_v20 = vmax.f32 %v936_v46, 0.0  ;;  %v758_v3 = vadd.f32 %v757_v18, %v669_v61  ;;  %v938_v5 = vpop.f32.mrf.mxu1 }
 0x1a3   :  { %v1007_v36 = vmax.f32 %v758_v3, 0.0  ;;  %1280 = vmatmul.bf16.gmra.mxu2 %v4794_v57  ;;  %v4945_v24 = vpack.c.bf16 %v1008_v20, %v1006_v19 }
 0x1a4   :  { %1369 = vmatmul.bf16.gmra.mxu3 %v4783_v49  ;;  %1547 = vmatmul.bf16.gmra.mxu1 %v4783_v49  ;;  %v849_v2 = vpop.f32.mrf.mxu0 }
 0x1a5   :  { %v850_v27 = vadd.f32 %v849_v2, %v4728_v10  ;;  %v4950_v48 = vpack.c.bf16 %v1007_v36, %v1005_v23 }
 0x1a6   :  { %v671_v29 = vpop.f32.mrf.mxu2 }
 0x1a7   :  { %v939_v42 = vadd.f32 %v938_v5, %v850_v27  ;;  %v672_v25 = vadd.f32 %v671_v29, %v4730_v12  ;;  %v760_v33 = vpop.f32.mrf.mxu3  ;;  %1458 = vmatmul.bf16.gmra.mxu0 %v4794_v57 }
 0x1a9   :  { %v761_v30 = vadd.f32 %v760_v33, %v672_v25  ;;  %v940_v34 = vpop.f32.mrf.mxu1  ;;  %v1010_v11 = vmax.f32 %v939_v42, 0.0 }
 0x1ab   :  { %v1009_v43 = vmax.f32 %v761_v30, 0.0 }
 0x1ac   :  { %v851_v26 = vpop.f32.mrf.mxu0 }
 0x1ad   :  { %v852_v37 = vadd.f32 %v851_v26, %v4728_v10 }
 0x1ae   :  { %v673_v53 = vpop.f32.mrf.mxu2 }
 0x1af   :  { %v941_v9 = vadd.f32 %v940_v34, %v852_v37  ;;  %v674_v49 = vadd.f32 %v673_v53, %v4730_v12  ;;  %v762_v40 = vpop.f32.mrf.mxu3 }
 0x1b1   :  { %v1012_v38 = vmax.f32 %v941_v9, 0.0  ;;  %v763_v15 = vadd.f32 %v762_v40, %v674_v49  ;;  %v943_v41 = vpop.f32.mrf.mxu1 }
 0x1b3   :  { %v1011_v60 = vmax.f32 %v763_v15, 0.0  ;;  %1285 = vmatmul.bf16.gmra.mxu2 %v4823_v45  ;;  %v4957_v47 = vpack.c.bf16 %v1012_v38, %v1010_v11 }
 0x1b4   :  { %1374 = vmatmul.bf16.gmra.mxu3 %v4818_v55  ;;  %1552 = vmatmul.bf16.gmra.mxu1 %v4818_v55  ;;  %v854_v57 = vpop.f32.mrf.mxu0 }
 0x1b5   :  { %v855_v50 = vadd.f32 %v854_v57, %v4728_v10  ;;  %v4962_v51 = vpack.c.bf16 %v1011_v60, %v1009_v43 }
 0x1b6   :  { %v676_v52 = vpop.f32.mrf.mxu2 }
 0x1b7   :  { %v944_v21 = vadd.f32 %v943_v41, %v855_v50  ;;  %v677_v1 = vadd.f32 %v676_v52, %v4730_v12  ;;  %v765_v8 = vpop.f32.mrf.mxu3  ;;  %1463 = vmatmul.bf16.gmra.mxu0 %v4823_v45 }
 0x1b9   :  { %v766_v56 = vadd.f32 %v765_v8, %v677_v1  ;;  %v945_v58 = vpop.f32.mrf.mxu1  ;;  %v1014_v16 = vmax.f32 %v944_v21, 0.0 }
 0x1bb   :  { %v1013_v46 = vmax.f32 %v766_v56, 0.0 }
 0x1bc   :  { %v856_v54 = vpop.f32.mrf.mxu0 }
 0x1bd   :  { %v857_v0 = vadd.f32 %v856_v54, %v4728_v10 }
 0x1be   :  { %v678_v6 = vpop.f32.mrf.mxu2 }
 0x1bf   :  { %v946_v4 = vadd.f32 %v945_v58, %v857_v0  ;;  %v679_v55 = vadd.f32 %v678_v6, %v4730_v12  ;;  %v767_v14 = vpop.f32.mrf.mxu3 }
 0x1c1   :  { %v1016_v22 = vmax.f32 %v946_v4, 0.0  ;;  %v768_v32 = vadd.f32 %v767_v14, %v679_v55  ;;  %v948_v17 = vpop.f32.mrf.mxu1 }
 0x1c3   :  { %v1015_v61 = vmax.f32 %v768_v32, 0.0  ;;  %1290 = vmatmul.bf16.gmra.mxu2 %v4849_v35  ;;  %v4969_v18 = vpack.c.bf16 %v1016_v22, %v1014_v16 }
 0x1c4   :  { %1379 = vmatmul.bf16.gmra.mxu3 %v4838_v7  ;;  %1557 = vmatmul.bf16.gmra.mxu1 %v4838_v7  ;;  %v859_v45 = vpop.f32.mrf.mxu0 }
 0x1c5   :  { %v860_v19 = vadd.f32 %v859_v45, %v4728_v10  ;;  %v4974_v20 = vpack.c.bf16 %v1015_v61, %v1013_v46 }
 0x1c6   :  { %v681_v3 = vpop.f32.mrf.mxu2 }
 0x1c7   :  { %v949_v5 = vadd.f32 %v948_v17, %v860_v19  ;;  %v682_v23 = vadd.f32 %v681_v3, %v4730_v12  ;;  %v770_v36 = vpop.f32.mrf.mxu3  ;;  %1468 = vmatmul.bf16.gmra.mxu0 %v4849_v35 }
 0x1c9   :  { %v771_v2 = vadd.f32 %v770_v36, %v682_v23  ;;  %v950_v27 = vpop.f32.mrf.mxu1  ;;  %v1018_v34 = vmax.f32 %v949_v5, 0.0 }
 0x1cb   :  { %v1017_v9 = vmax.f32 %v771_v2, 0.0 }
 0x1cc   :  { %v861_v29 = vpop.f32.mrf.mxu0 }
 0x1cd   :  { %v862_v42 = vadd.f32 %v861_v29, %v4728_v10 }
 0x1ce   :  { %v683_v25 = vpop.f32.mrf.mxu2 }
 0x1cf   :  { %v951_v33 = vadd.f32 %v950_v27, %v862_v42  ;;  %v684_v7 = vadd.f32 %v683_v25, %v4730_v12  ;;  %v772_v30 = vpop.f32.mrf.mxu3  ;;  %v1710_v27 = vld [vmem:[%s6691_s7] sm:$0xff] }
 0x1d0   :  { %1715 = vst.msk [vmem:[#allocation3] sm:$0xff] %vm1714_vm1, %v1710_v27 }
 0x1d1   :  { %v1020_v26 = vmax.f32 %v951_v33, 0.0  ;;  %v773_v37 = vadd.f32 %v772_v30, %v684_v7  ;;  %v953_v53 = vpop.f32.mrf.mxu1 }
 0x1d3   :  { %v1019_v49 = vmax.f32 %v773_v37, 0.0  ;;  %1295 = vmatmul.bf16.gmra.mxu2 %v4878_v44  ;;  %v4981_v40 = vpack.c.bf16 %v1020_v26, %v1018_v34 }
 0x1d4   :  { %1384 = vmatmul.bf16.gmra.mxu3 %v4873_v62  ;;  %1562 = vmatmul.bf16.gmra.mxu1 %v4873_v62  ;;  %v864_v35 = vpop.f32.mrf.mxu0 }
 0x1d5   :  { %v865_v11 = vadd.f32 %v864_v35, %v4728_v10  ;;  %v4986_v38 = vpack.c.bf16 %v1019_v49, %v1017_v9 }
 0x1d6   :  { %v686_v15 = vpop.f32.mrf.mxu2 }
 0x1d7   :  { %v954_v41 = vadd.f32 %v953_v53, %v865_v11  ;;  %v687_v43 = vadd.f32 %v686_v15, %v4730_v12  ;;  %v775_v60 = vpop.f32.mrf.mxu3  ;;  %1473 = vmatmul.bf16.gmra.mxu0 %v4878_v44  ;;  %v1711_v11 = vld [vmem:[%s6691_s7 + $0x8] sm:$0xff] }
 0x1d8   :  { %1716 = vst.msk [vmem:[#allocation3 + $0x8] sm:$0xff] %vm1714_vm1, %v1711_v11 }
 0x1d9   :  { %v776_v57 = vadd.f32 %v775_v60, %v687_v43  ;;  %v955_v50 = vpop.f32.mrf.mxu1  ;;  %v1022_v58 = vmax.f32 %v954_v41, 0.0 }
 0x1db   :  { %v1021_v4 = vmax.f32 %v776_v57, 0.0 }
 0x1dc   :  { %v866_v52 = vpop.f32.mrf.mxu0 }
 0x1dd   :  { %v867_v21 = vadd.f32 %v866_v52, %v4728_v10 }
 0x1de   :  { %v688_v1 = vpop.f32.mrf.mxu2 }
 0x1df   :  { %v956_v8 = vadd.f32 %v955_v50, %v867_v21  ;;  %v689_v62 = vadd.f32 %v688_v1, %v4730_v12  ;;  %v777_v56 = vpop.f32.mrf.mxu3 }
 0x1e1   :  { %v1024_v54 = vmax.f32 %v956_v8, 0.0  ;;  %v778_v0 = vadd.f32 %v777_v56, %v689_v62  ;;  %v958_v6 = vpop.f32.mrf.mxu1 }
 0x1e3   :  { %v1023_v55 = vmax.f32 %v778_v0, 0.0  ;;  %1300 = vmatmul.bf16.gmra.mxu2 %v4913_v63  ;;  %v4993_v14 = vpack.c.bf16 %v1024_v54, %v1022_v58 }
 0x1e4   :  { %1389 = vmatmul.bf16.gmra.mxu3 %v4908_v59  ;;  %1567 = vmatmul.bf16.gmra.mxu1 %v4908_v59  ;;  %v869_v44 = vpop.f32.mrf.mxu0 }
 0x1e5   :  { %v870_v16 = vadd.f32 %v869_v44, %v4728_v10  ;;  %v4998_v22 = vpack.c.bf16 %v1023_v55, %v1021_v4 }
 0x1e6   :  { %v691_v32 = vpop.f32.mrf.mxu2 }
 0x1e7   :  { %v959_v17 = vadd.f32 %v958_v6, %v870_v16  ;;  %v692_v46 = vadd.f32 %v691_v32, %v4730_v12  ;;  %v780_v61 = vpop.f32.mrf.mxu3  ;;  %1478 = vmatmul.bf16.gmra.mxu0 %v4913_v63 }
 0x1e9   :  { %v781_v45 = vadd.f32 %v780_v61, %v692_v46  ;;  %v960_v19 = vpop.f32.mrf.mxu1  ;;  %v1026_v29 = vmax.f32 %v959_v17, 0.0  ;;  %v1713_v17 = vld [vmem:[%s6691_s7 + $0x18] sm:$0xff] }
 0x1ea   :  { %1718 = vst.msk [vmem:[#allocation3 + $0x18] sm:$0xff] %vm1714_vm1, %v1713_v17 }
 0x1eb   :  { %v1025_v63 = vmax.f32 %v781_v45, 0.0 }
 0x1ec   :  { %v871_v3 = vpop.f32.mrf.mxu0 }
 0x1ed   :  { %v872_v5 = vadd.f32 %v871_v3, %v4728_v10  ;;  %v1101_v3 = vld [vmem:[%s6692_s6] sm:$0x3] }
 0x1ee   :  { %v693_v23 = vpop.f32.mrf.mxu2 }
 0x1ef   :  { %v961_v36 = vadd.f32 %v960_v19, %v872_v5  ;;  %v694_v59 = vadd.f32 %v693_v23, %v4730_v12  ;;  %v782_v2 = vpop.f32.mrf.mxu3 }
 0x1f1   :  { %v1028_v42 = vmax.f32 %v961_v36, 0.0  ;;  %v783_v25 = vadd.f32 %v782_v2, %v694_v59  ;;  %v963_v33 = vpop.f32.mrf.mxu1  ;;  %v1719_v36 = vld [vmem:[#allocation3] sm:$0xff] }
 0x1f2   :  { %v3677_v59 = vld [vmem:[%s6691_s7 + $0x20] sm:$0xff] }
 0x1f3   :  { %v1027_v7 = vmax.f32 %v783_v25, 0.0  ;;  %1305 = vmatmul.bf16.gmra.mxu2 %v4927_v13  ;;  %v5009_v30 = vpack.c.bf16 %v1028_v42, %v1026_v29  ;;  %v5050_v42 = vperm.slane %v1101_v3, 1  ;;  %1923 = vst.msk [vmem:[#allocation3] sm:$0xff] %vm1714_vm1, %v3677_v59 }
 0x1f4   :  { %1394 = vmatmul.bf16.gmra.mxu3 %v4922_v31  ;;  %1572 = vmatmul.bf16.gmra.mxu1 %v4922_v31  ;;  %v874_v34 = vpop.f32.mrf.mxu0 }
 0x1f5   :  { %v875_v26 = vadd.f32 %v874_v34, %v4728_v10  ;;  %v5014_v37 = vpack.c.bf16 %v1027_v7, %v1025_v63 }
 0x1f6   :  { %v696_v53 = vpop.f32.mrf.mxu2 }
 0x1f7   :  { %v964_v9 = vadd.f32 %v963_v33, %v875_v26  ;;  %v697_v49 = vadd.f32 %v696_v53, %v4730_v12  ;;  %v785_v35 = vpop.f32.mrf.mxu3  ;;  %1483 = vmatmul.bf16.gmra.mxu0 %v4927_v13  ;;  %v1712_v13 = vld [vmem:[%s6691_s7 + $0x10] sm:$0xff] }
 0x1f8   :  { %1717 = vst.msk [vmem:[#allocation3 + $0x10] sm:$0xff] %vm1714_vm1, %v1712_v13 }
 0x1f9   :  { %v786_v15 = vadd.f32 %v785_v35, %v697_v49  ;;  %v965_v41 = vpop.f32.mrf.mxu1  ;;  %v1030_v21 = vmax.f32 %v964_v9, 0.0  ;;  %v1720_v49 = vld [vmem:[#allocation3 + $0x8] sm:$0xff] }
 0x1fa   :  { %v3678_v35 = vld [vmem:[%s6691_s7 + $0x28] sm:$0xff] }
 0x1fb   :  { %v1029_v56 = vmax.f32 %v786_v15, 0.0  ;;  %1924 = vst.msk [vmem:[#allocation3 + $0x8] sm:$0xff] %vm1714_vm1, %v3678_v35 }
 0x1fc   :  { %v876_v31 = vpop.f32.mrf.mxu0 }
 0x1fd   :  { %v877_v43 = vadd.f32 %v876_v31, %v4728_v10 }
 0x1fe   :  { %v698_v60 = vpop.f32.mrf.mxu2 }
 0x1ff   :  { %v966_v57 = vadd.f32 %v965_v41, %v877_v43  ;;  %v699_v50 = vadd.f32 %v698_v60, %v4730_v12  ;;  %v787_v52 = vpop.f32.mrf.mxu3 }
 0x201   :  { %v1032_v1 = vmax.f32 %v966_v57, 0.0  ;;  %v788_v8 = vadd.f32 %v787_v52, %v699_v50  ;;  %v968_v62 = vpop.f32.mrf.mxu1  ;;  %v5070_v57 = vperm.slane %v1101_v3, 0 }
 0x203   :  { %v1031_v58 = vmax.f32 %v788_v8, 0.0  ;;  %1310 = vmatmul.bf16.gmra.mxu2 %v4938_v39  ;;  %v5029_v54 = vpack.c.bf16 %v1032_v1, %v1030_v21  ;;  %v1721_v21 = vld [vmem:[#allocation3 + $0x10] sm:$0xff] }
 0x204   :  { %1399 = vmatmul.bf16.gmra.mxu3 %v4933_v28  ;;  %1577 = vmatmul.bf16.gmra.mxu1 %v4933_v28  ;;  %v879_v0 = vpop.f32.mrf.mxu0  ;;  %v3679_v1 = vld [vmem:[%s6691_s7 + $0x30] sm:$0xff] }
 0x205   :  { %v880_v6 = vadd.f32 %v879_v0, %v4728_v10  ;;  %v5034_v4 = vpack.c.bf16 %v1031_v58, %v1029_v56  ;;  %1925 = vst.msk [vmem:[#allocation3 + $0x10] sm:$0xff] %vm1714_vm1, %v3679_v1 }
 0x206   :  { %v701_v55 = vpop.f32.mrf.mxu2 }
 0x207   :  { %v969_v44 = vadd.f32 %v968_v62, %v880_v6  ;;  %v702_v16 = vadd.f32 %v701_v55, %v4730_v12  ;;  %v790_v32 = vpop.f32.mrf.mxu3  ;;  %1488 = vmatmul.bf16.gmra.mxu0 %v4938_v39 }
 0x209   :  { %v791_v46 = vadd.f32 %v790_v32, %v702_v16  ;;  %v970_v61 = vpop.f32.mrf.mxu1 }
 0x20b   :  { %v1033_v33 = vmax.f32 %v791_v46, 0.0 }
 0x20c   :  { %v881_v28 = vpop.f32.mrf.mxu0 }
 0x20d   :  { %v882_v45 = vadd.f32 %v881_v28, %v4728_v10  ;;  %v1034_v10 = vmax.f32 %v969_v44, 0.0 }
 0x20e   :  { %v703_v19 = vpop.f32.mrf.mxu2 }
 0x20f   :  { %v971_v5 = vadd.f32 %v970_v61, %v882_v45  ;;  %v704_v23 = vadd.f32 %v703_v19, %v4730_v12  ;;  %v792_v39 = vpop.f32.mrf.mxu3  ;;  %v3680_v19 = vld [vmem:[%s6691_s7 + $0x38] sm:$0xff] }
 0x211   :  { %v1036_v2 = vmax.f32 %v971_v5, 0.0  ;;  %v793_v27 = vadd.f32 %v792_v39, %v704_v23  ;;  %v1543_v29 = vpop.f32.mrf.mxu1 }
 0x213   :  { %v1035_v25 = vmax.f32 %v793_v27, 0.0  ;;  %1315 = vmatmul.bf16.gmra.mxu2 %v4950_v48  ;;  %v5056_v63 = vpack.c.bf16 %v1036_v2, %v1034_v10 }
 0x214   :  { %1404 = vmatmul.bf16.gmra.mxu3 %v4945_v24  ;;  %1582 = vmatmul.bf16.gmra.mxu1 %v4945_v24  ;;  %v1454_v12 = vpop.f32.mrf.mxu0  ;;  %v1687_v24 = vlaneseq }
 0x215   :  { %v1455_v7 = vadd.f32 %v1454_v12, %v5050_v42  ;;  %v5059_v26 = vpack.c.bf16 %v1035_v25, %v1033_v33 }
 0x216   :  { %v1276_v34 = vpop.f32.mrf.mxu2 }
 0x217   :  { %v1544_v53 = vadd.f32 %v1543_v29, %v1455_v7  ;;  %v1365_v9 = vpop.f32.mrf.mxu3  ;;  %1493 = vmatmul.bf16.gmra.mxu0 %v4950_v48  ;;  %v5072_v48 = vand.u32 127, %v1687_v24  ;;  %v1277_v56 = vadd.f32 %v1276_v34, %v5070_v57 }
 0x219   :  { %v1702_v11 = vmax.f32 %v1544_v53, -20.0  ;;  %v1545_v15 = vpop.f32.mrf.mxu1  ;;  %vm1689_vm2 = vcmp.lt.s32.totalorder %v5072_v48, 8  ;;  %v1366_v32 = vadd.f32 %v1365_v9, %v1277_v56 }
 0x21a   :  { %v1723_v55 = vsel %vm1689_vm2, %v1719_v36, 0.0  ;;  %v1724_v36 = vsel %vm1689_vm2, %v1720_v49, 0.0  ;;  %v1725_v25 = vsel %vm1689_vm2, %v1721_v21, 0.0 }
 0x21b   :  { %v5066_v41 = vmin.f32 %v1702_v11, 2.0  ;;  %v1812_v49 = vmul.f32 -0.5, %v1724_v36 }
 0x21c   :  { %v1456_v31 = vpop.f32.mrf.mxu0 }
 0x21d   :  { %v1727_v43 = vmul.f32 1.442695, %v5066_v41  ;;  %v1457_v60 = vadd.f32 %v1456_v31, %v5050_v42  ;;  %v1816_v56 = vmul.f32 %v1812_v49, %v1724_v36 }
 0x21e   :  { %v1278_v50 = vpop.f32.mrf.mxu2 }
 0x21f   :  { %3866 = vpow2.f32 %v1727_v43  ;;  %v1546_v52 = vadd.f32 %v1545_v15, %v1457_v60  ;;  %v1367_v13 = vpop.f32.mrf.mxu3  ;;  %v1279_v39 = vadd.f32 %v1278_v50, %v5070_v57  ;;  %v1927_v15 = vld [vmem:[#allocation3] sm:$0xff]  ;;  %v1813_v60 = vmul.f32 -0.5, %v1725_v25 }
 0x220   :  { %v3693_v43 = vld [vmem:[%s6691_s7 + $0x40] sm:$0xff] }
 0x221   :  { %v1703_v8 = vmax.f32 %v1546_v52, -20.0  ;;  %v1548_v62 = vpop.f32.mrf.mxu1  ;;  %v1368_v34 = vadd.f32 %v1367_v13, %v1279_v39  ;;  %2132 = vst.msk [vmem:[#allocation3] sm:$0xff] %vm1714_vm1, %v3693_v43 }
 0x223   :  { %v5080_v58 = vmin.f32 %v1703_v8, 2.0  ;;  %1320 = vmatmul.bf16.gmra.mxu2 %v4962_v51  ;;  %v5123_v8 = vsel %vm1689_vm2, %v1927_v15, 0.0 }
 0x224   :  { %1409 = vmatmul.bf16.gmra.mxu3 %v4957_v47  ;;  %1587 = vmatmul.bf16.gmra.mxu1 %v4957_v47  ;;  %v1459_v0 = vpop.f32.mrf.mxu0  ;;  %v1722_v47 = vld [vmem:[#allocation3 + $0x18] sm:$0xff] }
 0x225   :  { %v3867_v6 = vpop.eup %3866  ;;  %v1729_v44 = vmul.f32 1.442695, %v5080_v58  ;;  %v1460_v16 = vadd.f32 %v1459_v0, %v5050_v42  ;;  %1926 = vst.msk [vmem:[#allocation3 + $0x18] sm:$0xff] %vm1714_vm1, %v3680_v19  ;;  %v5108_v12 = vsel %vm1689_vm2, %v1722_v47, 0.0 }
 0x226   :  { %v1735_v17 = vmul.f32 %v3867_v6, %v1723_v55  ;;  %v1281_v46 = vpop.f32.mrf.mxu2  ;;  %v1814_v50 = vmul.f32 -0.5, %v5108_v12 }
 0x227   :  { %3868 = vpow2.f32 %v1729_v44  ;;  %v1549_v61 = vadd.f32 %v1548_v62, %v1460_v16  ;;  %v1370_v28 = vpop.f32.mrf.mxu3  ;;  %1498 = vmatmul.bf16.gmra.mxu0 %v4962_v51  ;;  %v1811_v51 = vmul.f32 -0.5, %v1723_v55  ;;  %v1282_v1 = vadd.f32 %v1281_v46, %v5070_v57  ;;  %v1928_v62 = vld [vmem:[#allocation3 + $0x8] sm:$0xff] }
 0x228   :  { %v5090_v45 = vadd.f32 %v1735_v17, %v1366_v32  ;;  %v5132_v32 = vmul.f32 %v1813_v60, %v1725_v25  ;;  %v5135_v17 = vmul.f32 %v1814_v50, %v5108_v12  ;;  %v5141_v19 = vsel %vm1689_vm2, %v1928_v62, 0.0 }
 0x229   :  { %v1704_v3 = vmax.f32 %v1549_v61, -20.0  ;;  %v1550_v5 = vpop.f32.mrf.mxu1  ;;  %v1815_v24 = vmul.f32 %v1811_v51, %v1723_v55  ;;  %v2020_v50 = vmul.f32 -0.5, %v5141_v19 }
 0x22a   :  { %v1743_v23 = vand.u32 2147483647, %v5090_v45  ;;  %v1759_v6 = vsub.f32 0.0, %v5090_v45  ;;  %v1827_v60 = vsub.f32 0.6931472, %v5090_v45 }
 0x22b   :  { %v5100_v59 = vmin.f32 %v1704_v3, 2.0  ;;  %v1819_v16 = vsub.f32 %v1815_v24, %v5066_v41  ;;  %v2019_v3 = vmul.f32 -0.5, %v5123_v8  ;;  %v1371_v41 = vadd.f32 %v1370_v28, %v1282_v1 }
 0x22c   :  { %v1747_v2 = vmul.f32 -2.0, %v1743_v23  ;;  %v1461_v27 = vpop.f32.mrf.mxu0 }
 0x22d   :  { %v3869_v29 = vpop.eup %3868  ;;  %v1731_v10 = vmul.f32 1.442695, %v5100_v59  ;;  %v1462_v33 = vadd.f32 %v1461_v27, %v5050_v42  ;;  %v1929_v27 = vld [vmem:[#allocation3 + $0x10] sm:$0xff]  ;;  %v5173_v15 = vmul.f32 %v2019_v3, %v5123_v8  ;;  %v1821_v62 = vsub.f32 %v5132_v32, %v5100_v59 }
 0x22e   :  { %v1751_v7 = vmul.f32 1.442695, %v1747_v2  ;;  %v1736_v53 = vmul.f32 %v3869_v29, %v1724_v36  ;;  %v1283_v9 = vpop.f32.mrf.mxu2  ;;  %v1820_v36 = vsub.f32 %v1816_v56, %v5080_v58  ;;  %v1763_v29 = vmax.f32 %v1759_v6, 0.0  ;;  %v3694_v58 = vld [vmem:[%s6691_s7 + $0x48] sm:$0xff] }
 0x22f   :  { %3870 = vpow2.f32 %v1731_v10  ;;  %v1551_v35 = vadd.f32 %v1550_v5, %v1462_v33  ;;  %v5110_v11 = vpop.f32.mrf.mxu3  ;;  %v1284_v28 = vadd.f32 %v1283_v9, %v5070_v57  ;;  %2133 = vst.msk [vmem:[#allocation3 + $0x8] sm:$0xff] %vm1714_vm1, %v3694_v58  ;;  %v5168_v9 = vsel %vm1689_vm2, %v1929_v27, 0.0 }
 0x230   :  { %3872 = vpow2.f32 %v1751_v7  ;;  %v5112_v31 = vadd.f32 %v1736_v53, %v1368_v34  ;;  %v1767_v1 = vmul.f32 2.0, %v1763_v29 }
 0x231   :  { %v1705_v52 = vmax.f32 %v1551_v35, -20.0  ;;  %v1553_v13 = vpop.f32.mrf.mxu1  ;;  %v5170_v35 = vadd.f32 -0.9189385, %v1820_v36  ;;  %v1930_v36 = vld [vmem:[#allocation3 + $0x18] sm:$0xff] }
 0x232   :  { %v1744_v21 = vand.u32 2147483647, %v5112_v31  ;;  %v1760_v53 = vsub.f32 0.0, %v5112_v31 }
 0x233   :  { %v5125_v0 = vmin.f32 %v1705_v52, 2.0  ;;  %1325 = vmatmul.bf16.gmra.mxu2 %v4974_v20 }
 0x234   :  { %v1748_v55 = vmul.f32 -2.0, %v1744_v21  ;;  %1414 = vmatmul.bf16.gmra.mxu3 %v4969_v18  ;;  %1592 = vmatmul.bf16.gmra.mxu1 %v4969_v18  ;;  %v1464_v44 = vpop.f32.mrf.mxu0 }
 0x235   :  { %v3871_v46 = vpop.eup %3870  ;;  %v1733_v61 = vmul.f32 1.442695, %v5125_v0  ;;  %v1465_v47 = vadd.f32 %v1464_v44, %v5050_v42 }
 0x236   :  { %v5144_v18 = vpop.eup %3872  ;;  %v1753_v5 = vmul.f32 1.442695, %v1748_v55  ;;  %v1737_v23 = vmul.f32 %v3871_v46, %v1725_v25  ;;  %v1286_v39 = vpop.f32.mrf.mxu2 }
 0x237   :  { %3874 = vpow2.f32 %v1733_v61  ;;  %v1554_v51 = vadd.f32 %v1553_v13, %v1465_v47  ;;  %v5147_v2 = vpop.f32.mrf.mxu3  ;;  %1503 = vmatmul.bf16.gmra.mxu0 %v4974_v20  ;;  %v5151_v10 = vadd.f32 1.0, %v5144_v18  ;;  %v1774_v25 = vmul.f32 -0.5, %v5144_v18 }
 0x238   :  { %3876 = vpow2.f32 %v1753_v5  ;;  %v5153_v33 = vadd.f32 %v1737_v23, %v1371_v41  ;;  %v5162_v20 = vadd.f32 -0.9189385, %v1819_v16  ;;  %v1373_v13 = vadd.f32 %v5110_v11, %v1284_v28 }
 0x239   :  { %v1910_v7 = vmax.f32 %v1554_v51, -20.0  ;;  %v1555_v34 = vpop.f32.mrf.mxu1  ;;  %3878 = vlog2.f32 %v5151_v10  ;;  %v1775_v43 = vadd.f32 1.0, %v1774_v25  ;;  %v1777_v44 = vand.u32 2147483647, %v5144_v18 }
 0x23a   :  { %v1745_v49 = vand.u32 2147483647, %v5153_v33  ;;  %v1764_v16 = vmax.f32 %v1760_v53, 0.0  ;;  %v1287_v11 = vadd.f32 %v1286_v39, %v5070_v57  ;;  %v1822_v5 = vsub.f32 %v5135_v17, %v5125_v0 }
 0x23b   :  { %v5175_v24 = vmin.f32 %v1910_v7, 2.0  ;;  %v1776_v23 = vmul.f32 %v5144_v18, %v1775_v43  ;;  %vm1778_vm3 = vcmp.lt.f32.partialorder %v1777_v44, 0.0004427343  ;;  %v5206_v28 = vmul.f32 %v2020_v50, %v5141_v19 }
 0x23c   :  { %v1749_v52 = vmul.f32 -2.0, %v1745_v49  ;;  %v1466_v21 = vpop.f32.mrf.mxu0  ;;  %v5211_v7 = vsel %vm1689_vm2, %v1930_v36, 0.0  ;;  %v1376_v50 = vadd.f32 %v5147_v2, %v1287_v11 }
 0x23d   :  { %v3875_v56 = vpop.eup %3874  ;;  %v1935_v6 = vmul.f32 1.442695, %v5175_v24  ;;  %v1467_v55 = vadd.f32 %v1466_v21, %v5050_v42 }
 0x23e   :  { %v5185_v46 = vpop.eup %3876  ;;  %v1755_v61 = vmul.f32 1.442695, %v1749_v52  ;;  %v1738_v47 = vmul.f32 %v3875_v56, %v5108_v12  ;;  %v1288_v3 = vpop.f32.mrf.mxu2  ;;  %v3695_v12 = vld [vmem:[%s6691_s7 + $0x50] sm:$0xff]  ;;  %v1828_v52 = vsub.f32 0.6931472, %v5112_v31  ;;  %v1768_v56 = vmul.f32 2.0, %v1764_v16 }
 0x23f   :  { %v3879_v59 = vpop.eup %3878  ;;  %3880 = vpow2.f32 %v1935_v6  ;;  %v1556_v32 = vadd.f32 %v1555_v34, %v1467_v55  ;;  %v5191_v41 = vpop.f32.mrf.mxu3  ;;  %v5195_v51 = vadd.f32 1.0, %v5185_v46  ;;  %v1783_v0 = vmul.f32 -0.5, %v5185_v46  ;;  %2134 = vst.msk [vmem:[#allocation3 + $0x10] sm:$0xff] %vm1714_vm1, %v3695_v12 }
 0x240   :  { %3882 = vpow2.f32 %v1755_v61  ;;  %v5197_v27 = vadd.f32 %v1738_v47, %v1373_v13  ;;  %v1773_v39 = vmul.f32 0.6931472, %v3879_v59  ;;  %v5213_v34 = vadd.f32 -0.9189385, %v1821_v62 }
 0x241   :  { %v1911_v17 = vmax.f32 %v1556_v32, -20.0  ;;  %v1558_v29 = vpop.f32.mrf.mxu1  ;;  %3884 = vlog2.f32 %v5195_v51  ;;  %v1784_v43 = vadd.f32 1.0, %v1783_v0  ;;  %v5222_v6 = vadd.f32 -0.9189385, %v1822_v5 }
 0x242   :  { %v1746_v58 = vand.u32 2147483647, %v5197_v27  ;;  %v1779_v25 = vsel %vm1778_vm3, %v1776_v23, %v1773_v39  ;;  %v1786_v61 = vand.u32 2147483647, %v5185_v46  ;;  %v1289_v11 = vadd.f32 %v1288_v3, %v5070_v57  ;;  %v2136_v39 = vld [vmem:[#allocation3] sm:$0xff] }
 0x243   :  { %v5215_v53 = vmin.f32 %v1911_v17, 2.0  ;;  %1330 = vmatmul.bf16.gmra.mxu2 %v4986_v38  ;;  %v1807_v49 = vadd.f32 %v1779_v25, %v1767_v1  ;;  %v1761_v16 = vsub.f32 0.0, %v5153_v33  ;;  %v1785_v36 = vmul.f32 %v5185_v46, %v1784_v43 }
 0x244   :  { %v1750_v13 = vmul.f32 -2.0, %v1746_v58  ;;  %1419 = vmatmul.bf16.gmra.mxu3 %v4981_v40  ;;  %1597 = vmatmul.bf16.gmra.mxu1 %v4981_v40  ;;  %v1469_v21 = vpop.f32.mrf.mxu0  ;;  %vm1787_vm4 = vcmp.lt.f32.partialorder %v1786_v61, 0.0004427343  ;;  %v1762_v43 = vsub.f32 0.0, %v5197_v27  ;;  %v1829_v61 = vsub.f32 0.6931472, %v5153_v33 }
 0x245   :  { %v3881_v62 = vpop.eup %3880  ;;  %v1937_v55 = vmul.f32 1.442695, %v5215_v53  ;;  %v1470_v44 = vadd.f32 %v1469_v21, %v5050_v42  ;;  %v1831_v1 = vsub.f32 %v1827_v60, %v1807_v49  ;;  %vm1855_vm3 = vcmp.ge.f32.partialorder %v5090_v45, 0.0 }
 0x246   :  { %v5227_v47 = vpop.eup %3882  ;;  %v1757_v59 = vmul.f32 1.442695, %v1750_v13  ;;  %v1943_v2 = vmul.f32 %v3881_v62, %v5123_v8  ;;  %v1291_v40 = vpop.f32.mrf.mxu2  ;;  %v3696_v8 = vld [vmem:[%s6691_s7 + $0x58] sm:$0xff] }
 0x247   :  { %v3885_v5 = vpop.eup %3884  ;;  %3886 = vpow2.f32 %v1937_v55  ;;  %v1559_v32 = vadd.f32 %v1558_v29, %v1470_v44  ;;  %v5232_v23 = vpop.f32.mrf.mxu3  ;;  %1508 = vmatmul.bf16.gmra.mxu0 %v4986_v38  ;;  %v1835_v60 = vmul.f32 2.0, %v1831_v1  ;;  %v5242_v0 = vadd.f32 1.0, %v5227_v47  ;;  %2135 = vst.msk [vmem:[#allocation3 + $0x18] sm:$0xff] %vm1714_vm1, %v3696_v8 }
 0x248   :  { %3888 = vpow2.f32 %v1757_v59  ;;  %v5236_v12 = vadd.f32 %v1943_v2, %v1376_v50  ;;  %v1782_v3 = vmul.f32 0.6931472, %v3885_v5  ;;  %v1792_v38 = vmul.f32 -0.5, %v5227_v47 }
 0x249   :  { %v1912_v17 = vmax.f32 %v1559_v32, -20.0  ;;  %v1560_v29 = vpop.f32.mrf.mxu1  ;;  %v1839_v58 = vsub.f32 %v5162_v20, %v1835_v60  ;;  %3890 = vlog2.f32 %v5242_v0  ;;  %v5256_v20 = vsel %vm1689_vm2, %v2136_v39, 0.0 }
 0x24a   :  { %6761 = vst [vmem:[#allocation4_spill] sm:$0xff] %v5236_v12  ;;  %v1951_v25 = vand.u32 2147483647, %v5236_v12  ;;  %v1788_v49 = vsel %vm1787_vm4, %v1785_v36, %v1782_v3  ;;  %v1765_v44 = vmax.f32 %v1761_v16, 0.0  ;;  %v1793_v1 = vadd.f32 1.0, %v1792_v38 }
 0x24b   :  { %v5250_v13 = vmin.f32 %v1912_v17, 2.0  ;;  %v1843_v50 = vsel %vm1689_vm2, %v1839_v58, 0.0  ;;  %v1808_v21 = vadd.f32 %v1788_v49, %v1768_v56  ;;  %v1378_v2 = vadd.f32 %v5191_v41, %v1289_v11 }
 0x24c   :  { %v1955_v62 = vmul.f32 -2.0, %v1951_v25  ;;  %v1471_v55 = vpop.f32.mrf.mxu0  ;;  %1847 = vadd.xlane.f32.xlu0 %v1843_v50  ;;  %v1795_v39 = vand.u32 2147483647, %v5227_v47  ;;  %v1766_v16 = vmax.f32 %v1762_v43, 0.0  ;;  %v1292_v17 = vadd.f32 %v1291_v40, %v5070_v57 }
 0x24d   :  { %v3887_v59 = vpop.eup %3886  ;;  %v1939_v5 = vmul.f32 1.442695, %v5250_v13  ;;  %v1472_v32 = vadd.f32 %v1471_v55, %v5050_v42  ;;  %v1832_v60 = vsub.f32 %v1828_v52, %v1808_v21  ;;  %v3709_v52 = vld [vmem:[%s6691_s7 + $0x60] sm:$0xff]  ;;  %v1769_v55 = vmul.f32 2.0, %v1765_v44 }
 0x24e   :  { %v5262_v56 = vpop.eup %3888  ;;  %v1959_v36 = vmul.f32 1.442695, %v1955_v62  ;;  %v1944_v8 = vmul.f32 %v3887_v59, %v5141_v19  ;;  %v1293_v3 = vpop.f32.mrf.mxu2  ;;  %v1794_v19 = vmul.f32 %v5227_v47, %v1793_v1  ;;  %2341 = vst.msk [vmem:[#allocation3] sm:$0xff] %vm1714_vm1, %v3709_v52  ;;  %vm1796_vm5 = vcmp.lt.f32.partialorder %v1795_v39, 0.0004427343 }
 0x24f   :  { %3892 = vpow2.f32 %v1939_v5  ;;  %v1561_v58 = vadd.f32 %v1560_v29, %v1472_v32  ;;  %v5267_v38 = vpop.f32.mrf.mxu3  ;;  %v1836_v41 = vmul.f32 2.0, %v1832_v60  ;;  %v3891_v11 = vpop.eup %3890  ;;  %v5276_v49 = vadd.f32 1.0, %v5262_v56 }
 0x250   :  { %3894 = vpow2.f32 %v1959_v36  ;;  %v5269_v25 = vadd.f32 %v1944_v8, %v1378_v2  ;;  %v1791_v29 = vmul.f32 0.6931472, %v3891_v11  ;;  %v1801_v21 = vmul.f32 -0.5, %v5262_v56 }
 0x251   :  { %6763 = vst [vmem:[#allocation6_spill] sm:$0xff] %v5276_v49  ;;  %v1913_v43 = vmax.f32 %v1561_v58, -20.0  ;;  %v1563_v50 = vpop.f32.mrf.mxu1  ;;  %v1840_v40 = vsub.f32 %v5170_v35, %v1836_v41  ;;  %3896 = vlog2.f32 %v5276_v49  ;;  %v2027_v35 = vsub.f32 %v5173_v15, %v5175_v24 }
 0x252   :  { %6762 = vst [vmem:[#allocation5_spill] sm:$0xff] %v5269_v25  ;;  %v1952_v62 = vand.u32 2147483647, %v5269_v25  ;;  %v1797_v2 = vsel %vm1796_vm5, %v1794_v19, %v1791_v29  ;;  %v1381_v32 = vadd.f32 %v5232_v23, %v1292_v17  ;;  %v1770_v36 = vmul.f32 2.0, %v1766_v16 }
 0x253   :  { %v5283_v59 = vmin.f32 %v1913_v43, 2.0  ;;  %1335 = vmatmul.bf16.gmra.mxu2 %v4998_v22  ;;  %v1844_v1 = vsel %vm1689_vm2, %v1840_v40, 0.0  ;;  %v1809_v60 = vadd.f32 %v1797_v2, %v1769_v55  ;;  %v1802_v41 = vadd.f32 1.0, %v1801_v21  ;;  %v2137_v55 = vld [vmem:[#allocation3 + $0x8] sm:$0xff] }
 0x254   :  { %v1956_v5 = vmul.f32 -2.0, %v1952_v62  ;;  %1424 = vmatmul.bf16.gmra.mxu3 %v4993_v14  ;;  %1602 = vmatmul.bf16.gmra.mxu1 %v4993_v14  ;;  %v1474_v44 = vpop.f32.mrf.mxu0  ;;  %v1967_v11 = vsub.f32 0.0, %v5236_v12  ;;  %v1804_v14 = vand.u32 2147483647, %v5262_v56  ;;  %v1294_v16 = vadd.f32 %v1293_v3, %v5070_v57 }
 0x255   :  { %v3893_v8 = vpop.eup %3892  ;;  %v1941_v39 = vmul.f32 1.442695, %v5283_v59  ;;  %v1475_v58 = vadd.f32 %v1474_v44, %v5050_v42  ;;  %1849 = vadd.xlane.f32.xlu0 %v1844_v1  ;;  %v1833_v52 = vsub.f32 %v1829_v61, %v1809_v60  ;;  %v3710_v61 = vld [vmem:[%s6691_s7 + $0x68] sm:$0xff]  ;;  %v1803_v2 = vmul.f32 %v5262_v56, %v1802_v41 }
 0x256   :  { %v5296_v15 = vpop.eup %3894  ;;  %v1961_v24 = vmul.f32 1.442695, %v1956_v5  ;;  %v1945_v23 = vmul.f32 %v3893_v8, %v5168_v9  ;;  %v1296_v17 = vpop.f32.mrf.mxu2  ;;  %2342 = vst.msk [vmem:[#allocation3 + $0x8] sm:$0xff] %vm1714_vm1, %v3710_v61  ;;  %vm1805_vm6 = vcmp.lt.f32.partialorder %v1804_v14, 0.0004427343  ;;  %v1971_v44 = vmax.f32 %v1967_v11, 0.0 }
 0x257   :  { %6764 = vst [vmem:[#allocation7_spill] sm:$0xff] %v5296_v15  ;;  %3898 = vpow2.f32 %v1941_v39  ;;  %v1564_v19 = vadd.f32 %v1563_v50, %v1475_v58  ;;  %v5301_v43 = vpop.f32.mrf.mxu3  ;;  %1513 = vmatmul.bf16.gmra.mxu0 %v4998_v22  ;;  %v5305_v40 = vadd.f32 1.0, %v5296_v15  ;;  %v3897_v29 = vpop.eup %3896  ;;  %v1837_v62 = vmul.f32 2.0, %v1833_v52 }
 0x258   :  { %3900 = vpow2.f32 %v1961_v24  ;;  %v5307_v21 = vadd.f32 %v1945_v23, %v1381_v32  ;;  %v1982_v3 = vmul.f32 -0.5, %v5296_v15  ;;  %v1800_v22 = vmul.f32 0.6931472, %v3897_v29 }
 0x259   :  { %6765 = vst [vmem:[#allocation8_spill] sm:$0xff] %v5305_v40  ;;  %v2119_v50 = vmax.f32 %v1564_v19, -20.0  ;;  %v1565_v1 = vpop.f32.mrf.mxu1  ;;  %3902 = vlog2.f32 %v5305_v40  ;;  %v1841_v32 = vsub.f32 %v5213_v34, %v1837_v62  ;;  %v1830_v39 = vsub.f32 0.6931472, %v5197_v27 }
 0x25a   :  { %6766 = vst [vmem:[#allocation9_spill] sm:$0xff] %v5307_v21  ;;  %v1953_v5 = vand.u32 2147483647, %v5307_v21  ;;  %v1806_v8 = vsel %vm1805_vm6, %v1803_v2, %v1800_v22  ;;  %v1983_v58 = vadd.f32 1.0, %v1982_v3  ;;  %v5323_v19 = vadd.f32 -0.9189385, %v2027_v35 }
 0x25b   :  { %v5318_v60 = vmin.f32 %v2119_v50, 2.0  ;;  %v1845_v52 = vsel %vm1689_vm2, %v1841_v32, 0.0  ;;  %v1810_v41 = vadd.f32 %v1806_v8, %v1770_v36  ;;  %v1383_v61 = vadd.f32 %v5267_v38, %v1294_v16 }
 0x25c   :  { %v1957_v24 = vmul.f32 -2.0, %v1953_v5  ;;  %v1476_v23 = vpop.f32.mrf.mxu0  ;;  %1851 = vadd.xlane.f32.xlu1 %v1845_v52  ;;  %v1985_v14 = vand.u32 2147483647, %v5296_v15  ;;  %v1975_v36 = vmul.f32 2.0, %v1971_v44  ;;  %v1984_v38 = vmul.f32 %v5296_v15, %v1983_v58  ;;  %v5338_v52 = vld [vmem:[#allocation3 + $0x10] sm:$0xff] }
 0x25d   :  { %v3899_v29 = vpop.eup %3898  ;;  %v2144_v34 = vmul.f32 1.442695, %v5318_v60  ;;  %v1477_v11 = vadd.f32 %v1476_v23, %v5050_v42  ;;  %v1834_v2 = vsub.f32 %v1830_v39, %v1810_v41  ;;  %v1968_v16 = vsub.f32 0.0, %v5269_v25  ;;  %v3711_v39 = vld [vmem:[%s6691_s7 + $0x70] sm:$0xff] }
 0x25e   :  { %v5329_v62 = vpop.eup %3900  ;;  %v1963_v3 = vmul.f32 1.442695, %v1957_v24  ;;  %v1946_v50 = vmul.f32 %v3899_v29, %v5211_v7  ;;  %v1298_v22 = vpop.f32.mrf.mxu2  ;;  %v1297_v24 = vadd.f32 %v1296_v17, %v5070_v57  ;;  %2343 = vst.msk [vmem:[#allocation3 + $0x10] sm:$0xff] %vm1714_vm1, %v3711_v39  ;;  %vm1986_vm7 = vcmp.lt.f32.partialorder %v1985_v14, 0.0004427343 }
 0x25f   :  { %6767 = vst [vmem:[#allocation10_spill] sm:$0xff] %v5329_v62  ;;  %v3903_v35 = vpop.eup %3902  ;;  %3904 = vpow2.f32 %v2144_v34  ;;  %v1566_v5 = vadd.f32 %v1565_v1, %v1477_v11  ;;  %v5332_v32 = vpop.f32.mrf.mxu3  ;;  %v1838_v23 = vmul.f32 2.0, %v1834_v2  ;;  %v5346_v58 = vadd.f32 1.0, %v5329_v62 }
 0x260   :  { %3906 = vpow2.f32 %v1963_v3  ;;  %v5336_v8 = vadd.f32 %v1946_v50, %v1383_v61  ;;  %v1981_v44 = vmul.f32 0.6931472, %v3903_v35  ;;  %v1991_v11 = vmul.f32 -0.5, %v5329_v62 }
 0x261   :  { %v2120_v1 = vmax.f32 %v1566_v5, -20.0  ;;  %v1568_v41 = vpop.f32.mrf.mxu1  ;;  %6769 = vst [vmem:[#allocation12_spill] sm:$0xff] %v5346_v58  ;;  %v1842_v61 = vsub.f32 %v5222_v6, %v1838_v23  ;;  %v2035_v50 = vsub.f32 0.6931472, %v5236_v12  ;;  %3908 = vlog2.f32 %v5346_v58 }
 0x262   :  { %6768 = vst [vmem:[#allocation11_spill] sm:$0xff] %v5336_v8  ;;  %v1954_v29 = vand.u32 2147483647, %v5336_v8  ;;  %v1987_v34 = vsel %vm1986_vm7, %v1984_v38, %v1981_v44  ;;  %v5358_v2 = vsel %vm1689_vm2, %v2137_v55, 0.0  ;;  %v1972_v5 = vmax.f32 %v1968_v16, 0.0 }
 0x263   :  { %v5351_v3 = vmin.f32 %v2120_v1, 2.0  ;;  %1340 = vmatmul.bf16.gmra.mxu2 %v5014_v37  ;;  %v2015_v17 = vadd.f32 %v1987_v34, %v1975_v36  ;;  %v1846_v35 = vsel %vm1689_vm2, %v1842_v61, 0.0  ;;  %v1994_v44 = vand.u32 2147483647, %v5329_v62 }
 0x264   :  { %v1958_v14 = vmul.f32 -2.0, %v1954_v29  ;;  %1429 = vmatmul.bf16.gmra.mxu3 %v5009_v30  ;;  %1607 = vmatmul.bf16.gmra.mxu1 %v5009_v30  ;;  %v1479_v6 = vpop.f32.mrf.mxu0  ;;  %v1386_v29 = vadd.f32 %v5301_v43, %v1297_v24  ;;  %v1992_v58 = vadd.f32 1.0, %v1991_v11  ;;  %v3712_v43 = vld [vmem:[%s6691_s7 + $0x78] sm:$0xff]  ;;  %v1976_v24 = vmul.f32 2.0, %v1972_v5 }
 0x265   :  { %v3905_v38 = vpop.eup %3904  ;;  %v2146_v36 = vmul.f32 1.442695, %v5351_v3  ;;  %v1480_v23 = vadd.f32 %v1479_v6, %v5050_v42  ;;  %1853 = vadd.xlane.f32.xlu1 %v1846_v35  ;;  %v2039_v39 = vsub.f32 %v2035_v50, %v2015_v17  ;;  %v2028_v17 = vsub.f32 %v5206_v28, %v5215_v53 }
 0x266   :  { %v5367_v55 = vpop.eup %3906  ;;  %v1965_v1 = vmul.f32 1.442695, %v1958_v14  ;;  %v2152_v30 = vmul.f32 %v3905_v38, %v5256_v20  ;;  %v1301_v34 = vpop.f32.mrf.mxu2  ;;  %v1299_v6 = vadd.f32 %v1298_v22, %v5070_v57  ;;  %v5377_v14 = vld [vmem:[#allocation3 + $0x18] sm:$0xff]  ;;  %vm5387_vm8 = vcmp.lt.f32.partialorder %v1994_v44, 0.0004427343 }
 0x267   :  { %6770 = vst [vmem:[#allocation13_spill] sm:$0xff] %v5367_v55  ;;  %3910 = vpow2.f32 %v2146_v36  ;;  %v1569_v16 = vadd.f32 %v1568_v41, %v1480_v23  ;;  %v1390_v61 = vpop.f32.mrf.mxu3  ;;  %1518 = vmatmul.bf16.gmra.mxu0 %v5014_v37  ;;  %v2043_v15 = vmul.f32 2.0, %v2039_v39  ;;  %v5383_v41 = vadd.f32 1.0, %v5367_v55  ;;  %v3909_v11 = vpop.eup %3908 }
 0x268   :  { %v5374_v50 = vadd.f32 %v2152_v30, %v1386_v29  ;;  %2344 = vst.msk [vmem:[#allocation3 + $0x18] sm:$0xff] %vm1714_vm1, %v3712_v43  ;;  %v1969_v53 = vsub.f32 0.0, %v5307_v21  ;;  %3912 = vpow2.f32 %v1965_v1  ;;  %v1990_v5 = vmul.f32 0.6931472, %v3909_v11 }
 0x269   :  { %6772 = vst [vmem:[#allocation15_spill] sm:$0xff] %v5383_v41  ;;  %v2121_v37 = vmax.f32 %v1569_v16, -20.0  ;;  %v1570_v35 = vpop.f32.mrf.mxu1  ;;  %v2047_v38 = vsub.f32 %v5323_v19, %v2043_v15  ;;  %v1993_v36 = vmul.f32 %v5329_v62, %v1992_v58  ;;  %3914 = vlog2.f32 %v5383_v41 }
 0x26a   :  { %6771 = vst [vmem:[#allocation14_spill] sm:$0xff] %v5374_v50  ;;  %v2160_v22 = vand.u32 2147483647, %v5374_v50  ;;  %v2000_v15 = vmul.f32 -0.5, %v5367_v55  ;;  %v1302_v19 = vadd.f32 %v1301_v34, %v5070_v57  ;;  %v2036_v29 = vsub.f32 0.6931472, %v5269_v25 }
 0x26b   :  { %v5394_v23 = vmin.f32 %v2121_v37, 2.0  ;;  %v2051_v39 = vsel %vm1689_vm2, %v2047_v38, 0.0  ;;  %v1996_v1 = vsel %vm5387_vm8, %v1993_v36, %v1990_v5  ;;  %v2021_v58 = vmul.f32 -0.5, %v5168_v9 }
 0x26c   :  { %v1481_v44 = vpop.f32.mrf.mxu0  ;;  %2055 = vadd.xlane.f32.xlu2 %v2051_v39  ;;  %v2016_v11 = vadd.f32 %v1996_v1, %v1976_v24  ;;  %v1973_v37 = vmax.f32 %v1969_v53, 0.0  ;;  %v2164_v38 = vmul.f32 -2.0, %v2160_v22  ;;  %v1388_v41 = vadd.f32 %v5332_v32, %v1299_v6  ;;  %v5421_v6 = vld [vmem:[#allocation3] sm:$0xff] }
 0x26d   :  { %v3911_v30 = vpop.eup %3910  ;;  %v2148_v16 = vmul.f32 1.442695, %v5394_v23  ;;  %v1482_v43 = vadd.f32 %v1481_v44, %v5050_v42  ;;  %v2001_v62 = vadd.f32 1.0, %v2000_v15  ;;  %v2003_v25 = vand.u32 2147483647, %v5367_v55 }
 0x26e   :  { %v2153_v34 = vmul.f32 %v3911_v30, %v5358_v2  ;;  %v1303_v39 = vpop.f32.mrf.mxu2  ;;  %v2040_v36 = vsub.f32 %v2036_v29, %v2016_v11  ;;  %v5412_v40 = vpop.eup %3912  ;;  %v5419_v24 = vsel %vm1689_vm2, %v5338_v52, 0.0  ;;  %v3682_v32 = vadd.f32 -0.9189385, %v2028_v17 }
 0x26f   :  { %3916 = vpow2.f32 %v2148_v16  ;;  %v1571_v28 = vadd.f32 %v1570_v35, %v1482_v43  ;;  %v5409_v5 = vpop.f32.mrf.mxu3  ;;  %6775 = vst [vmem:[#allocation16_spill] sm:$0xff] %v5412_v40  ;;  %v3725_v35 = vld [vmem:[%s6691_s7 + $0x80] sm:$0xff]  ;;  %v2025_v53 = vmul.f32 %v2021_v58, %v5168_v9  ;;  %v3915_v22 = vpop.eup %3914  ;;  %v1391_v15 = vadd.f32 %v1390_v61, %v1302_v19 }
 0x270   :  { %v5414_v12 = vadd.f32 %v2153_v34, %v1388_v41  ;;  %v2044_v41 = vmul.f32 2.0, %v2040_v36  ;;  %2550 = vst.msk [vmem:[#allocation3] sm:$0xff] %vm1714_vm1, %v3725_v35  ;;  %v1977_v29 = vmul.f32 2.0, %v1973_v37  ;;  %v2168_v30 = vmul.f32 1.442695, %v2164_v38 }
 0x271   :  { %v2122_v44 = vmax.f32 %v1571_v28, -20.0  ;;  %v1573_v1 = vpop.f32.mrf.mxu1  ;;  %v1999_v17 = vmul.f32 0.6931472, %v3915_v22  ;;  %v2002_v16 = vmul.f32 %v5367_v55, %v2001_v62  ;;  %vm2004_vm9 = vcmp.lt.f32.partialorder %v2003_v25, 0.0004427343 }
 0x272   :  { %6776 = vst [vmem:[#allocation17_spill] sm:$0xff] %v5414_v12  ;;  %v2161_v52 = vand.u32 2147483647, %v5414_v12  ;;  %v2048_v11 = vsub.f32 %v3682_v32, %v2044_v41  ;;  %v5434_v9 = vadd.f32 1.0, %v5412_v40  ;;  %v2029_v58 = vsub.f32 %v2025_v53, %v5250_v13 }
 0x273   :  { %v5430_v43 = vmin.f32 %v2122_v44, 2.0  ;;  %1345 = vmatmul.bf16.gmra.mxu2 %v5034_v4  ;;  %v2005_v19 = vsel %vm2004_vm9, %v2002_v16, %v1999_v17  ;;  %v2037_v37 = vsub.f32 0.6931472, %v5307_v21  ;;  %v2009_v62 = vmul.f32 -0.5, %v5412_v40  ;;  %v3726_v17 = vld [vmem:[%s6691_s7 + $0x88] sm:$0xff] }
 0x274   :  { %6777 = vst [vmem:[#allocation18_spill] sm:$0xff] %v5434_v9  ;;  %1434 = vmatmul.bf16.gmra.mxu3 %v5029_v54  ;;  %1612 = vmatmul.bf16.gmra.mxu1 %v5029_v54  ;;  %v1484_v61 = vpop.f32.mrf.mxu0  ;;  %v2052_v28 = vsel %vm1689_vm2, %v2048_v11, 0.0  ;;  %v2017_v36 = vadd.f32 %v2005_v19, %v1977_v29  ;;  %v2165_v32 = vmul.f32 -2.0, %v2161_v52  ;;  %v1970_v13 = vsub.f32 0.0, %v5336_v8  ;;  %v5454_v52 = vld [vmem:[#allocation3 + $0x8] sm:$0xff] }
 0x275   :  { %v3917_v38 = vpop.eup %3916  ;;  %v2150_v34 = vmul.f32 1.442695, %v5430_v43  ;;  %v1485_v25 = vadd.f32 %v1484_v61, %v5050_v42  ;;  %2057 = vadd.xlane.f32.xlu2 %v2052_v28  ;;  %3918 = vlog2.f32 %v5434_v9  ;;  %v1304_v29 = vadd.f32 %v1303_v39, %v5070_v57  ;;  %2551 = vst.msk [vmem:[#allocation3 + $0x8] sm:$0xff] %vm1714_vm1, %v3726_v17 }
 0x276   :  { %v2154_v54 = vmul.f32 %v3917_v38, %v5419_v24  ;;  %v1306_v35 = vpop.f32.mrf.mxu2  ;;  %v2041_v44 = vsub.f32 %v2037_v37, %v2017_v36  ;;  %v2010_v16 = vadd.f32 1.0, %v2009_v62  ;;  %v1974_v37 = vmax.f32 %v1970_v13, 0.0 }
 0x277   :  { %3920 = vpow2.f32 %v2150_v34  ;;  %v1574_v53 = vadd.f32 %v1573_v1, %v1485_v25  ;;  %v5448_v22 = vpop.f32.mrf.mxu3  ;;  %1523 = vmatmul.bf16.gmra.mxu0 %v5034_v4  ;;  %v3683_v1 = vadd.f32 -0.9189385, %v2029_v58  ;;  %v2170_v4 = vmul.f32 1.442695, %v2165_v32 }
 0x278   :  { %3922 = vpow2.f32 %v2168_v30  ;;  %v5451_v41 = vadd.f32 %v2154_v54, %v1391_v15  ;;  %v2045_v19 = vmul.f32 2.0, %v2041_v44  ;;  %v2012_v15 = vand.u32 2147483647, %v5412_v40 }
 0x279   :  { %v2328_v11 = vmax.f32 %v1574_v53, -20.0  ;;  %v1575_v61 = vpop.f32.mrf.mxu1  ;;  %v2022_v30 = vmul.f32 -0.5, %v5211_v7  ;;  %v1393_v62 = vadd.f32 %v5409_v5, %v1304_v29  ;;  %v5469_v58 = vsel %vm1689_vm2, %v5377_v14, 0.0 }
 0x27a   :  { %6778 = vst [vmem:[#allocation19_spill] sm:$0xff] %v5451_v41  ;;  %v2162_v39 = vand.u32 2147483647, %v5451_v41  ;;  %v2049_v34 = vsub.f32 %v3683_v1, %v2045_v19  ;;  %v2011_v36 = vmul.f32 %v5412_v40, %v2010_v16  ;;  %3924 = vpow2.f32 %v2170_v4  ;;  %v5486_v4 = vld [vmem:[#allocation3 + $0x10] sm:$0xff] }
 0x27b   :  { %v5463_v38 = vmin.f32 %v2328_v11, 2.0  ;;  %v3919_v25 = vpop.eup %3918  ;;  %v2026_v32 = vmul.f32 %v2022_v30, %v5211_v7  ;;  %v1978_v11 = vmul.f32 2.0, %v1974_v37  ;;  %vm2013_vm10 = vcmp.lt.f32.partialorder %v2012_v15, 0.0004427343  ;;  %v3727_v37 = vld [vmem:[%s6691_s7 + $0x90] sm:$0xff] }
 0x27c   :  { %v1486_v28 = vpop.f32.mrf.mxu0  ;;  %v2053_v44 = vsel %vm1689_vm2, %v2049_v34, 0.0  ;;  %v2008_v17 = vmul.f32 0.6931472, %v3919_v25  ;;  %v2166_v16 = vmul.f32 -2.0, %v2162_v39  ;;  %v2038_v30 = vsub.f32 0.6931472, %v5336_v8 }
 0x27d   :  { %v3921_v54 = vpop.eup %3920  ;;  %v2353_v13 = vmul.f32 1.442695, %v5463_v38  ;;  %v1487_v53 = vadd.f32 %v1486_v28, %v5050_v42  ;;  %2059 = vadd.xlane.f32.xlu0 %v2053_v44  ;;  %v2030_v25 = vsub.f32 %v2026_v32, %v5283_v59  ;;  %2552 = vst.msk [vmem:[#allocation3 + $0x10] sm:$0xff] %vm1714_vm1, %v3727_v37  ;;  %vm1690_vm5 = vcmp.eq.s32.totalorder %v5072_v48, 8 }
 0x27e   :  { %v5477_v5 = vpop.eup %3922  ;;  %v2155_v14 = vmul.f32 %v3921_v54, %v5469_v58  ;;  %v1308_v29 = vpop.f32.mrf.mxu2  ;;  %v2014_v19 = vsel %vm2013_vm10, %v2011_v36, %v2008_v17  ;;  %v2172_v32 = vmul.f32 1.442695, %v2166_v16  ;;  %v5511_v16 = vsel %vm1689_vm2, %v5421_v6, 0.0 }
 0x27f   :  { %6779 = vst [vmem:[#allocation20_spill] sm:$0xff] %v5477_v5  ;;  %v1576_v7 = vadd.f32 %v1575_v61, %v1487_v53  ;;  %v5480_v1 = vpop.f32.mrf.mxu3  ;;  %3926 = vpow2.f32 %v2353_v13  ;;  %v2018_v34 = vadd.f32 %v2014_v19, %v1978_v11  ;;  %v2176_v61 = vsub.f32 0.0, %v5374_v50 }
 0x280   :  { %v5483_v28 = vadd.f32 %v2155_v14, %v1393_v62  ;;  %v5494_v36 = vadd.f32 1.0, %v5477_v5  ;;  %v1307_v62 = vadd.f32 %v1306_v35, %v5070_v57  ;;  %v2191_v59 = vmul.f32 -0.5, %v5477_v5  ;;  %v5502_v53 = vpop.eup %3924 }
 0x281   :  { %v2329_v15 = vmax.f32 %v1576_v7, -20.0  ;;  %v1578_v39 = vpop.f32.mrf.mxu1  ;;  %v2042_v54 = vsub.f32 %v2038_v30, %v2018_v34  ;;  %6782 = vst [vmem:[#allocation23_spill] sm:$0xff] %v5502_v53  ;;  %v3684_v35 = vadd.f32 -0.9189385, %v2030_v25  ;;  %v2228_v11 = vmul.f32 -0.5, %v5256_v20 }
 0x282   :  { %6780 = vst [vmem:[#allocation21_spill] sm:$0xff] %v5483_v28  ;;  %3928 = vlog2.f32 %v5494_v36  ;;  %v2163_v44 = vand.u32 2147483647, %v5483_v28  ;;  %v2180_v30 = vmax.f32 %v2176_v61, 0.0  ;;  %v1396_v37 = vadd.f32 %v5448_v22, %v1307_v62  ;;  %v5526_v62 = vld [vmem:[#allocation3 + $0x18] sm:$0xff] }
 0x283   :  { %6781 = vst [vmem:[#allocation22_spill] sm:$0xff] %v5494_v36  ;;  %v5498_v13 = vmin.f32 %v2329_v15, 2.0  ;;  %1350 = vmatmul.bf16.gmra.mxu2 %v5059_v26  ;;  %v2046_v14 = vmul.f32 2.0, %v2042_v54  ;;  %v2192_v54 = vadd.f32 1.0, %v2191_v59  ;;  %v1309_v6 = vadd.f32 %v1308_v29, %v5070_v57 }
 0x284   :  { %1439 = vmatmul.bf16.gmra.mxu3 %v5056_v63  ;;  %1617 = vmatmul.bf16.gmra.mxu1 %v5056_v63  ;;  %v1489_v17 = vpop.f32.mrf.mxu0  ;;  %v5519_v63 = vsel %vm1689_vm2, %v5454_v52, 0.0  ;;  %v2194_v40 = vand.u32 2147483647, %v5477_v5  ;;  %v2232_v22 = vmul.f32 %v2228_v11, %v5256_v20  ;;  %v3728_v52 = vld [vmem:[%s6691_s7 + $0x98] sm:$0xff]  ;;  %vm1856_vm7 = vcmp.ge.f32.partialorder %v5112_v31, 0.0 }
 0x285   :  { %v2355_v7 = vmul.f32 1.442695, %v5498_v13  ;;  %v1490_v19 = vadd.f32 %v1489_v17, %v5050_v42  ;;  %v3927_v34 = vpop.eup %3926  ;;  %v2050_v25 = vsub.f32 %v3684_v35, %v2046_v14  ;;  %v2167_v17 = vmul.f32 -2.0, %v2163_v44  ;;  %2553 = vst.msk [vmem:[#allocation3 + $0x18] sm:$0xff] %vm1714_vm1, %v3728_v52 }
 0x286   :  { %v1311_v15 = vpop.f32.mrf.mxu2  ;;  %v2361_v35 = vmul.f32 %v3927_v34, %v5511_v16  ;;  %v2184_v44 = vmul.f32 2.0, %v2180_v30  ;;  %v5536_v14 = vadd.f32 1.0, %v5502_v53  ;;  %v2193_v11 = vmul.f32 %v5477_v5, %v2192_v54 }
 0x287   :  { %3930 = vpow2.f32 %v2355_v7  ;;  %v1579_v36 = vadd.f32 %v1578_v39, %v1490_v19  ;;  %v2054_v61 = vsel %vm1689_vm2, %v2050_v25, 0.0  ;;  %v5532_v39 = vpop.f32.mrf.mxu3  ;;  %v2177_v7 = vsub.f32 0.0, %v5414_v12 }
 0x288   :  { %3932 = vpow2.f32 %v2172_v32  ;;  %v3929_v59 = vpop.eup %3928  ;;  %2061 = vadd.xlane.f32.xlu1 %v2054_v61  ;;  %6783 = vst [vmem:[#allocation24_spill] sm:$0xff] %v5536_v14  ;;  %v2200_v19 = vmul.f32 -0.5, %v5502_v53  ;;  %vm2195_vm11 = vcmp.lt.f32.partialorder %v2194_v40, 0.0004427343  ;;  %v2174_v30 = vmul.f32 1.442695, %v2167_v17 }
 0x289   :  { %v2330_v29 = vmax.f32 %v1579_v36, -20.0  ;;  %v1580_v32 = vpop.f32.mrf.mxu1  ;;  %v2190_v20 = vmul.f32 0.6931472, %v3929_v59  ;;  %v2244_v36 = vsub.f32 0.6931472, %v5374_v50  ;;  %3934 = vlog2.f32 %v5536_v14 }
 0x28a   :  { %v2236_v52 = vsub.f32 %v2232_v22, %v5318_v60  ;;  %v2229_v59 = vmul.f32 -0.5, %v5358_v2  ;;  %v5547_v54 = vadd.f32 %v2361_v35, %v1396_v37  ;;  %v5556_v17 = vsel %vm1689_vm2, %v5486_v4, 0.0  ;;  %v5565_v4 = vld [vmem:[#allocation3] sm:$0xff] }
 0x28b   :  { %v5541_v25 = vmin.f32 %v2330_v29, 2.0  ;;  %v2196_v61 = vsel %vm2195_vm11, %v2193_v11, %v2190_v20  ;;  %v2181_v60 = vmax.f32 %v2177_v7, 0.0  ;;  %v2201_v22 = vadd.f32 1.0, %v2200_v19  ;;  %v3741_v7 = vld [vmem:[%s6691_s7 + $0xa0] sm:$0xff] }
 0x28c   :  { %v1491_v34 = vpop.f32.mrf.mxu0  ;;  %v2224_v8 = vadd.f32 %v2196_v61, %v2184_v44  ;;  %v2203_v11 = vand.u32 2147483647, %v5502_v53  ;;  %v1398_v44 = vadd.f32 %v5480_v1, %v1309_v6  ;;  %v3697_v61 = vadd.f32 -0.9189385, %v2236_v52  ;;  %2759 = vst.msk [vmem:[#allocation3] sm:$0xff] %vm1714_vm1, %v3741_v7 }
 0x28d   :  { %v3931_v9 = vpop.eup %3930  ;;  %v2357_v5 = vmul.f32 1.442695, %v5541_v25  ;;  %v1492_v29 = vadd.f32 %v1491_v34, %v5050_v42  ;;  %v1312_v34 = vadd.f32 %v1311_v15, %v5070_v57  ;;  %v2233_v50 = vmul.f32 %v2229_v59, %v5358_v2 }
 0x28e   :  { %v5551_v40 = vpop.eup %3932  ;;  %v5558_v20 = vpop.f32.mrf.mxu2  ;;  %v2362_v37 = vmul.f32 %v3931_v9, %v5519_v63  ;;  %v2248_v14 = vsub.f32 %v2244_v36, %v2224_v8  ;;  %v2369_v9 = vand.u32 2147483647, %v5547_v54  ;;  %v2185_v1 = vmul.f32 2.0, %v2181_v60 }
 0x28f   :  { %6784 = vst [vmem:[#allocation25_spill] sm:$0xff] %v5551_v40  ;;  %3936 = vpow2.f32 %v2357_v5  ;;  %v1581_v35 = vadd.f32 %v1580_v32, %v1492_v29  ;;  %v3935_v19 = vpop.eup %3934  ;;  %v2202_v6 = vmul.f32 %v5502_v53, %v2201_v22  ;;  %vm5573_vm12 = vcmp.lt.f32.partialorder %v2203_v11, 0.0004427343  ;;  %v5581_v59 = vpop.f32.mrf.mxu3 }
 0x290   :  { %3938 = vpow2.f32 %v2174_v30  ;;  %v2252_v32 = vmul.f32 2.0, %v2248_v14  ;;  %v2199_v15 = vmul.f32 0.6931472, %v3935_v19  ;;  %v5577_v36 = vadd.f32 %v2362_v37, %v1398_v44 }
 0x291   :  { %v2331_v5 = vmax.f32 %v1581_v35, -20.0  ;;  %v1583_v8 = vpop.f32.mrf.mxu1  ;;  %v5585_v14 = vadd.f32 1.0, %v5551_v40  ;;  %v2237_v22 = vsub.f32 %v2233_v50, %v5351_v3  ;;  %v2245_v11 = vsub.f32 0.6931472, %v5414_v12 }
 0x292   :  { %6787 = vst [vmem:[#allocation26_spill] sm:$0xff] %v5577_v36  ;;  %v2256_v30 = vsub.f32 %v3697_v61, %v2252_v32  ;;  %v2205_v60 = vsel %vm5573_vm12, %v2202_v6, %v2199_v15  ;;  %v2209_v37 = vmul.f32 -0.5, %v5551_v40  ;;  %v2373_v6 = vmul.f32 -2.0, %v2369_v9 }
 0x293   :  { %v5579_v52 = vmin.f32 %v2331_v5, 2.0  ;;  %1528 = vmatmul.bf16.vlgmr.msrb.gmra.mxu2 %v5059_v26  ;;  %6788 = vst [vmem:[#allocation27_spill] sm:$0xff] %v5585_v14  ;;  %v2225_v7 = vadd.f32 %v2205_v60, %v2185_v1  ;;  %v2178_v5 = vsub.f32 0.0, %v5451_v41  ;;  %3940 = vlog2.f32 %v5585_v14  ;;  %v5603_v1 = vld [vmem:[#allocation3 + $0x8] sm:$0xff] }
 0x294   :  { %v1494_v29 = vpop.f32.mrf.mxu0  ;;  %v2260_v61 = vsel %vm1689_vm2, %v2256_v30, 0.0  ;;  %v2370_v2 = vand.u32 2147483647, %v5577_v36  ;;  %v1401_v30 = vadd.f32 %v5532_v39, %v1312_v34  ;;  %v3742_v60 = vld [vmem:[%s6691_s7 + $0xa8] sm:$0xff]  ;;  %v2230_v39 = vmul.f32 -0.5, %v5419_v24 }
 0x295   :  { %v3937_v35 = vpop.eup %3936  ;;  %v2359_v44 = vmul.f32 1.442695, %v5579_v52  ;;  %v1495_v26 = vadd.f32 %v1494_v29, %v5050_v42  ;;  %2264 = vadd.xlane.f32.xlu2 %v2260_v61  ;;  %v2249_v32 = vsub.f32 %v2245_v11, %v2225_v7  ;;  %v2210_v29 = vadd.f32 1.0, %v2209_v37  ;;  %2760 = vst.msk [vmem:[#allocation3 + $0x8] sm:$0xff] %vm1714_vm1, %v3742_v60 }
 0x296   :  { %v2363_v19 = vmul.f32 %v3937_v35, %v5556_v17  ;;  %v5599_v3 = vpop.eup %3938  ;;  %v1316_v15 = vpop.f32.mrf.mxu2  ;;  %v3698_v61 = vadd.f32 -0.9189385, %v2237_v22  ;;  %v2182_v9 = vmax.f32 %v2178_v5, 0.0  ;;  %v2212_v11 = vand.u32 2147483647, %v5551_v40 }
 0x297   :  { %6789 = vst [vmem:[#allocation28_spill] sm:$0xff] %v5599_v3  ;;  %3942 = vpow2.f32 %v2359_v44  ;;  %v1584_v50 = vadd.f32 %v1583_v8, %v1495_v26  ;;  %v2253_v14 = vmul.f32 2.0, %v2249_v32  ;;  %v2377_v26 = vmul.f32 1.442695, %v2373_v6  ;;  %v1405_v60 = vpop.f32.mrf.mxu3 }
 0x298   :  { %v5609_v8 = vadd.f32 %v2363_v19, %v1401_v30  ;;  %v1314_v7 = vadd.f32 %v5558_v20, %v5070_v57  ;;  %v2234_v32 = vmul.f32 %v2230_v39, %v5419_v24  ;;  %v2186_v20 = vmul.f32 2.0, %v2182_v9  ;;  %v3743_v9 = vld [vmem:[%s6691_s7 + $0xb0] sm:$0xff] }
 0x299   :  { %v2537_v35 = vmax.f32 %v1584_v50, -20.0  ;;  %v1585_v53 = vpop.f32.mrf.mxu1  ;;  %v2257_v37 = vsub.f32 %v3698_v61, %v2253_v14  ;;  %v3941_v44 = vpop.eup %3940  ;;  %v2211_v50 = vmul.f32 %v5551_v40, %v2210_v29  ;;  %v2374_v61 = vmul.f32 -2.0, %v2370_v2 }
 0x29a   :  { %v2208_v14 = vmul.f32 0.6931472, %v3941_v44  ;;  %v2371_v6 = vand.u32 2147483647, %v5609_v8  ;;  %vm2213_vm13 = vcmp.lt.f32.partialorder %v2212_v11, 0.0004427343  ;;  %v2238_v2 = vsub.f32 %v2234_v32, %v5394_v23 }
 0x29b   :  { %v5613_v34 = vmin.f32 %v2537_v35, 2.0  ;;  %v2261_v30 = vsel %vm1689_vm2, %v2257_v37, 0.0  ;;  %v5627_v24 = vsel %vm1689_vm2, %v5526_v62, 0.0  ;;  %v2246_v40 = vsub.f32 0.6931472, %v5451_v41  ;;  %v5632_v44 = vld [vmem:[#allocation3 + $0x10] sm:$0xff] }
 0x29c   :  { %v1496_v22 = vpop.f32.mrf.mxu0  ;;  %2266 = vadd.xlane.f32.xlu0 %v2261_v30  ;;  %v2214_v39 = vsel %vm2213_vm13, %v2211_v50, %v2208_v14  ;;  %v1403_v62 = vadd.f32 %v5581_v59, %v1314_v7  ;;  %v5639_v30 = vadd.f32 1.0, %v5599_v3  ;;  %2761 = vst.msk [vmem:[#allocation3 + $0x10] sm:$0xff] %vm1714_vm1, %v3743_v9  ;;  %v2218_v32 = vmul.f32 -0.5, %v5599_v3 }
 0x29d   :  { %v3943_v19 = vpop.eup %3942  ;;  %v2562_v5 = vmul.f32 1.442695, %v5613_v34  ;;  %v1497_v35 = vadd.f32 %v1496_v22, %v5050_v42  ;;  %v2226_v22 = vadd.f32 %v2214_v39, %v2186_v20  ;;  %v2179_v59 = vsub.f32 0.0, %v5483_v28 }
 0x29e   :  { %v2364_v37 = vmul.f32 %v3943_v19, %v5627_v24  ;;  %6790 = vst [vmem:[#allocation29_spill] sm:$0xff] %v5639_v30  ;;  %v2379_v19 = vmul.f32 1.442695, %v2374_v61  ;;  %v1317_v14 = vadd.f32 %v1316_v15, %v5070_v57  ;;  %v3699_v61 = vadd.f32 -0.9189385, %v2238_v2 }
 0x29f   :  { %v1586_v29 = vadd.f32 %v1585_v53, %v1497_v35  ;;  %3944 = vpow2.f32 %v2562_v5  ;;  %v1318_v53 = vpop.f32.mrf.mxu2  ;;  %v2375_v5 = vmul.f32 -2.0, %v2371_v6  ;;  %v2250_v23 = vsub.f32 %v2246_v40, %v2226_v22  ;;  %v1407_v15 = vpop.f32.mrf.mxu3 }
 0x2a0   :  { %3946 = vpow2.f32 %v2377_v26  ;;  %v5646_v35 = vsel %vm1689_vm2, %v5565_v4, 0.0  ;;  %v5652_v7 = vadd.f32 %v2364_v37, %v1403_v62  ;;  %v2231_v39 = vmul.f32 -0.5, %v5469_v58 }
 0x2a1   :  { %v2538_v11 = vmax.f32 %v1586_v29, -20.0  ;;  %v1588_v50 = vpop.f32.mrf.mxu1  ;;  %3948 = vlog2.f32 %v5639_v30  ;;  %v2254_v6 = vmul.f32 2.0, %v2250_v23  ;;  %v1319_v29 = vadd.f32 %v1318_v53, %v5070_v57 }
 0x2a2   :  { %6791 = vst [vmem:[#allocation30_spill] sm:$0xff] %v5652_v7  ;;  %3950 = vpow2.f32 %v2379_v19  ;;  %v2381_v9 = vmul.f32 1.442695, %v2375_v5  ;;  %v2219_v30 = vadd.f32 1.0, %v2218_v32  ;;  %v2183_v62 = vmax.f32 %v2179_v59, 0.0  ;;  %v5670_v5 = vld [vmem:[#allocation3 + $0x18] sm:$0xff] }
 0x2a3   :  { %v5648_v26 = vmin.f32 %v2538_v11, 2.0  ;;  %v2258_v11 = vsub.f32 %v3699_v61, %v2254_v6  ;;  %v2221_v23 = vand.u32 2147483647, %v5599_v3  ;;  %v2372_v41 = vand.u32 2147483647, %v5652_v7 }
 0x2a4   :  { %v1499_v40 = vpop.f32.mrf.mxu0  ;;  %v1406_v53 = vadd.f32 %v1405_v60, %v1317_v14  ;;  %v5668_v19 = vsel %vm1689_vm2, %v5603_v1, 0.0  ;;  %v1408_v61 = vadd.f32 %v1407_v15, %v1319_v29  ;;  %v2235_v14 = vmul.f32 %v2231_v39, %v5469_v58 }
 0x2a5   :  { %v2564_v20 = vmul.f32 1.442695, %v5648_v26  ;;  %v1500_v4 = vadd.f32 %v1499_v40, %v5050_v42  ;;  %v3945_v22 = vpop.eup %3944  ;;  %v2262_v40 = vsel %vm1689_vm2, %v2258_v11, 0.0  ;;  %v2220_v1 = vmul.f32 %v5599_v3, %v2219_v30 }
 0x2a6   :  { %v5659_v37 = vpop.eup %3946  ;;  %v2570_v59 = vmul.f32 %v3945_v22, %v5646_v35  ;;  %2268 = vadd.xlane.f32.xlu1 %v2262_v40  ;;  %v2187_v55 = vmul.f32 2.0, %v2183_v62  ;;  %vm2222_vm14 = vcmp.lt.f32.partialorder %v2221_v23, 0.0004427343  ;;  %v2376_v58 = vmul.f32 -2.0, %v2372_v41 }
 0x2a7   :  { %6792 = vst [vmem:[#allocation31_spill] sm:$0xff] %v5659_v37  ;;  %3952 = vpow2.f32 %v2564_v20  ;;  %v1589_v2 = vadd.f32 %v1588_v50, %v1500_v4  ;;  %v3744_v50 = vld [vmem:[%s6691_s7 + $0xb8] sm:$0xff]  ;;  %v3949_v32 = vpop.eup %3948  ;;  %v2385_v4 = vsub.f32 0.0, %v5547_v54  ;;  %v5681_v11 = vadd.f32 1.0, %v5659_v37  ;;  %v1321_v22 = vpop.f32.mrf.mxu2 }
 0x2a8   :  { %2762 = vst.msk [vmem:[#allocation3 + $0x18] sm:$0xff] %vm1714_vm1, %v3744_v50  ;;  %v2217_v6 = vmul.f32 0.6931472, %v3949_v32  ;;  %v2400_v29 = vmul.f32 -0.5, %v5659_v37  ;;  %v5686_v15 = vpop.eup %3950  ;;  %v5693_v23 = vadd.f32 %v2570_v59, %v1406_v53  ;;  %v2437_v41 = vmul.f32 -0.5, %v5511_v16 }
 0x2a9   :  { %v2539_v60 = vmax.f32 %v1589_v2, -20.0  ;;  %v1590_v20 = vpop.f32.mrf.mxu1  ;;  %6793 = vst [vmem:[#allocation32_spill] sm:$0xff] %v5681_v11  ;;  %v2247_v2 = vsub.f32 0.6931472, %v5483_v28  ;;  %3954 = vlog2.f32 %v5681_v11  ;;  %v2389_v21 = vmax.f32 %v2385_v4, 0.0 }
 0x2aa   :  { %6794 = vst [vmem:[#allocation33_spill] sm:$0xff] %v5686_v15  ;;  %v2223_v39 = vsel %vm2222_vm14, %v2220_v1, %v2217_v6  ;;  %v2401_v28 = vadd.f32 1.0, %v2400_v29  ;;  %v2383_v49 = vmul.f32 1.442695, %v2376_v58  ;;  %v2441_v58 = vmul.f32 %v2437_v41, %v5511_v16 }
 0x2ab   :  { %v5683_v12 = vmin.f32 %v2539_v60, 2.0  ;;  %v2227_v32 = vadd.f32 %v2223_v39, %v2187_v55  ;;  %v2239_v60 = vsub.f32 %v2235_v14, %v5430_v43  ;;  %v2403_v55 = vand.u32 2147483647, %v5659_v37  ;;  %v5700_v39 = vld [vmem:[#allocation3] sm:$0xff]  ;;  %v1410_v14 = vpop.f32.mrf.mxu3 }
 0x2ac   :  { %v1501_v30 = vpop.f32.mrf.mxu0  ;;  %v3757_v43 = vld [vmem:[%s6691_s7 + $0xc0] sm:$0xff]  ;;  %v2393_v29 = vmul.f32 2.0, %v2389_v21  ;;  %vm1857_vm8 = vcmp.ge.f32.partialorder %v5153_v33, 0.0  ;;  %v3774_v33 = vld [vmem:[%s6691_s7 + $0xe8] sm:$0xff]  ;;  %vm1858_vm11 = vcmp.ge.f32.partialorder %v5197_v27, 0.0 }
 0x2ad   :  { %v3953_v40 = vpop.eup %3952  ;;  %v2566_v50 = vmul.f32 1.442695, %v5683_v12  ;;  %v1502_v62 = vadd.f32 %v1501_v30, %v5050_v42  ;;  %v2251_v6 = vsub.f32 %v2247_v2, %v2227_v32  ;;  %v3700_v53 = vadd.f32 -0.9189385, %v2239_v60  ;;  %2968 = vst.msk [vmem:[#allocation3] sm:$0xff] %vm1714_vm1, %v3757_v43  ;;  %v6820_v27 = vld [vmem:[#allocation4_spill] sm:$0xff] }
 0x2ae   :  { %v2571_v3 = vmul.f32 %v3953_v40, %v5668_v19  ;;  %vm2404_vm15 = vcmp.lt.f32.partialorder %v2403_v55, 0.0004427343  ;;  %v2445_v43 = vsub.f32 %v2441_v58, %v5463_v38  ;;  %v3758_v38 = vld [vmem:[%s6691_s7 + $0xc8] sm:$0xff]  ;;  %vm2063_vm12 = vcmp.ge.f32.partialorder %v6820_v27, 0.0 }
 0x2af   :  { %v1591_v1 = vadd.f32 %v1590_v20, %v1502_v62  ;;  %3956 = vpow2.f32 %v2566_v50  ;;  %v2255_v59 = vmul.f32 2.0, %v2251_v6  ;;  %v3955_v20 = vpop.eup %3954  ;;  %v2386_v62 = vsub.f32 0.0, %v5577_v36  ;;  %v1323_v41 = vpop.f32.mrf.mxu2 }
 0x2b0   :  { %v5697_v11 = vadd.f32 %v2571_v3, %v1408_v61  ;;  %3958 = vpow2.f32 %v2381_v9  ;;  %v2578_v3 = vand.u32 2147483647, %v5693_v23  ;;  %v1322_v61 = vadd.f32 %v1321_v22, %v5070_v57 }
 0x2b1   :  { %v2540_v4 = vmax.f32 %v1591_v1, -20.0  ;;  %v2259_v2 = vsub.f32 %v3700_v53, %v2255_v59  ;;  %v2399_v40 = vmul.f32 0.6931472, %v3955_v20  ;;  %v2402_v9 = vmul.f32 %v5659_v37, %v2401_v28  ;;  %v1593_v32 = vpop.f32.mrf.mxu1 }
 0x2b2   :  { %v2579_v50 = vand.u32 2147483647, %v5697_v11  ;;  %v5715_v6 = vadd.f32 1.0, %v5686_v15  ;;  %3960 = vpow2.f32 %v2383_v49  ;;  %v2453_v53 = vsub.f32 0.6931472, %v5547_v54 }
 0x2b3   :  { %v5709_v30 = vmin.f32 %v2540_v4, 2.0  ;;  %v2263_v21 = vsel %vm1689_vm2, %v2259_v2, 0.0  ;;  %v2405_v22 = vsel %vm2404_vm15, %v2402_v9, %v2399_v40  ;;  %v2582_v4 = vmul.f32 -2.0, %v2578_v3  ;;  %v5732_v9 = vld [vmem:[#allocation3 + $0x8] sm:$0xff] }
 0x2b4   :  { %v1504_v60 = vpop.f32.mrf.mxu0  ;;  %6795 = vst [vmem:[#allocation34_spill] sm:$0xff] %v5715_v6  ;;  %2270 = vadd.xlane.f32.xlu2 %v2263_v21  ;;  %v2433_v55 = vadd.f32 %v2405_v22, %v2393_v29  ;;  %v2409_v2 = vmul.f32 -0.5, %v5686_v15  ;;  %v2583_v37 = vmul.f32 -2.0, %v2579_v50  ;;  %v5729_v40 = vsel %vm1689_vm2, %v5632_v44, 0.0  ;;  %v1412_v22 = vpop.f32.mrf.mxu3 }
 0x2b5   :  { %v2568_v16 = vmul.f32 1.442695, %v5709_v30  ;;  %v1505_v1 = vadd.f32 %v1504_v60, %v5050_v42  ;;  %v3957_v28 = vpop.eup %3956  ;;  %v1324_v29 = vadd.f32 %v1323_v41, %v5070_v57  ;;  %2969 = vst.msk [vmem:[#allocation3 + $0x8] sm:$0xff] %vm1714_vm1, %v3758_v38  ;;  %v1411_v50 = vadd.f32 %v1410_v14, %v1322_v61 }
 0x2b6   :  { %v5723_v59 = vpop.eup %3958  ;;  %v2457_v49 = vsub.f32 %v2453_v53, %v2433_v55  ;;  %v2572_v3 = vmul.f32 %v3957_v28, %v5729_v40  ;;  %v3713_v44 = vadd.f32 -0.9189385, %v2445_v43  ;;  %v2438_v21 = vmul.f32 -0.5, %v5519_v63 }
 0x2b7   :  { %6796 = vst [vmem:[#allocation35_spill] sm:$0xff] %v5723_v59  ;;  %3962 = vpow2.f32 %v2568_v16  ;;  %v1594_v20 = vadd.f32 %v1593_v32, %v1505_v1  ;;  %v2390_v32 = vmax.f32 %v2386_v62, 0.0  ;;  %v2586_v16 = vmul.f32 1.442695, %v2582_v4 }
 0x2b8   :  { %3964 = vlog2.f32 %v5715_v6  ;;  %v2461_v60 = vmul.f32 2.0, %v2457_v49  ;;  %v2410_v1 = vadd.f32 1.0, %v2409_v2  ;;  %v2412_v55 = vand.u32 2147483647, %v5686_v15  ;;  %v5744_v53 = vpop.eup %3960 }
 0x2b9   :  { %v2746_v58 = vmax.f32 %v1594_v20, -20.0  ;;  %6797 = vst [vmem:[#allocation36_spill] sm:$0xff] %v5744_v53  ;;  %v2588_v28 = vmul.f32 1.442695, %v2583_v37  ;;  %v1413_v20 = vadd.f32 %v1412_v22, %v1324_v29  ;;  %v5749_v14 = vsel %vm1689_vm2, %v5670_v5, 0.0 }
 0x2ba   :  { %v2465_v62 = vsub.f32 %v3713_v44, %v2461_v60  ;;  %v5751_v49 = vadd.f32 %v2572_v3, %v1411_v50  ;;  %v2394_v38 = vmul.f32 2.0, %v2390_v32  ;;  %v2442_v29 = vmul.f32 %v2438_v21, %v5519_v63  ;;  %v1595_v44 = vpop.f32.mrf.mxu1  ;;  %v1326_v32 = vpop.f32.mrf.mxu2 }
 0x2bb   :  { %v5741_v41 = vmin.f32 %v2746_v58, 2.0  ;;  %v2387_v5 = vsub.f32 0.0, %v5609_v8  ;;  %v2411_v3 = vmul.f32 %v5686_v15, %v2410_v1  ;;  %vm5761_vm0 = vcmp.lt.f32.partialorder %v2412_v55, 0.0004427343 }
 0x2bc   :  { %v1506_v61 = vpop.f32.mrf.mxu0  ;;  %6798 = vst [vmem:[#allocation37_spill] sm:$0xff] %v5751_v49  ;;  %v2469_v58 = vsel %vm1689_vm2, %v2465_v62, 0.0  ;;  %v2418_v21 = vmul.f32 -0.5, %v5723_v59  ;;  %v2439_v6 = vmul.f32 -0.5, %v5556_v17  ;;  %v1415_v50 = vpop.f32.mrf.mxu3  ;;  %v2430_v45 = vand.u32 2147483647, %v5744_v53 }
 0x2bd   :  { %v3963_v43 = vpop.eup %3962  ;;  %v2771_v4 = vmul.f32 1.442695, %v5741_v41  ;;  %v1507_v2 = vadd.f32 %v1506_v61, %v5050_v42  ;;  %2473 = vadd.xlane.f32.xlu0 %v2469_v58  ;;  %v5766_v61 = vadd.f32 1.0, %v5723_v59  ;;  %v2454_v58 = vsub.f32 0.6931472, %v5577_v36 }
 0x2be   :  { %v2573_v37 = vmul.f32 %v3963_v43, %v5749_v14  ;;  %v3965_v60 = vpop.eup %3964  ;;  %v2580_v43 = vand.u32 2147483647, %v5751_v49  ;;  %v2419_v15 = vadd.f32 1.0, %v2418_v21  ;;  %v5793_v21 = vsel %vm1689_vm2, %v5700_v39, 0.0 }
 0x2bf   :  { %v1596_v22 = vadd.f32 %v1595_v44, %v1507_v2  ;;  %6801 = vst [vmem:[#allocation38_spill] sm:$0xff] %v5766_v61  ;;  %3966 = vpow2.f32 %v2771_v4  ;;  %v2408_v63 = vmul.f32 0.6931472, %v3965_v60  ;;  %v2446_v2 = vsub.f32 %v2442_v29, %v5498_v13  ;;  %v5785_v29 = vld [vmem:[#allocation3 + $0x10] sm:$0xff] }
 0x2c0   :  { %v5768_v62 = vadd.f32 %v2573_v37, %v1413_v20  ;;  %3968 = vlog2.f32 %v5766_v61  ;;  %v1327_v44 = vadd.f32 %v1326_v32, %v5070_v57  ;;  %v2391_v20 = vmax.f32 %v2387_v5, 0.0 }
 0x2c1   :  { %v2747_v1 = vmax.f32 %v1596_v22, -20.0  ;;  %v2414_v55 = vsel %vm5761_vm0, %v2411_v3, %v2408_v63  ;;  %v2421_v60 = vand.u32 2147483647, %v5723_v59  ;;  %3970 = vpow2.f32 %v2586_v16 }
 0x2c2   :  { %6802 = vst [vmem:[#allocation39_spill] sm:$0xff] %v5768_v62  ;;  %v2434_v37 = vadd.f32 %v2414_v55, %v2394_v38  ;;  %v2581_v22 = vand.u32 2147483647, %v5768_v62  ;;  %3972 = vpow2.f32 %v2588_v28  ;;  %v3759_v38 = vld [vmem:[%s6691_s7 + $0xd0] sm:$0xff]  ;;  %v2584_v32 = vmul.f32 -2.0, %v2580_v43  ;;  %v1328_v36 = vpop.f32.mrf.mxu2 }
 0x2c3   :  { %v5778_v4 = vmin.f32 %v2747_v1, 2.0  ;;  %v3714_v63 = vadd.f32 -0.9189385, %v2446_v2  ;;  %v1416_v16 = vadd.f32 %v1415_v50, %v1327_v44  ;;  %2970 = vst.msk [vmem:[#allocation3 + $0x10] sm:$0xff] %vm1714_vm1, %v3759_v38  ;;  %v2395_v1 = vmul.f32 2.0, %v2391_v20 }
 0x2c4   :  { %v2458_v3 = vsub.f32 %v2454_v58, %v2434_v37  ;;  %vm5796_vm4 = vcmp.lt.f32.partialorder %v2421_v60, 0.0004427343  ;;  %v2443_v37 = vmul.f32 %v2439_v6, %v5556_v17  ;;  %v1509_v61 = vpop.f32.mrf.mxu0  ;;  %v2585_v43 = vmul.f32 -2.0, %v2581_v22 }
 0x2c5   :  { %v2773_v13 = vmul.f32 1.442695, %v5778_v4  ;;  %v3967_v5 = vpop.eup %3966  ;;  %v2420_v44 = vmul.f32 %v5723_v59, %v2419_v15  ;;  %v2455_v38 = vsub.f32 0.6931472, %v5609_v8  ;;  %v1863_v17 = vsub.f32 1.0, %v5144_v18 }
 0x2c6   :  { %v3969_v28 = vpop.eup %3968  ;;  %v2462_v58 = vmul.f32 2.0, %v2458_v3  ;;  %v2779_v39 = vmul.f32 %v3967_v5, %v5793_v21  ;;  %v1510_v6 = vadd.f32 %v1509_v61, %v5050_v42  ;;  %v1598_v5 = vpop.f32.mrf.mxu1  ;;  %v5819_v18 = vadd.f32 1.0, %v5744_v53 }
 0x2c7   :  { %3974 = vpow2.f32 %v2773_v13  ;;  %v2417_v2 = vmul.f32 0.6931472, %v3969_v28  ;;  %v5805_v20 = vpop.eup %3970  ;;  %v2447_v13 = vsub.f32 %v2443_v37, %v5541_v25  ;;  %v1329_v28 = vadd.f32 %v1328_v36, %v5070_v57 }
 0x2c8   :  { %v2466_v50 = vsub.f32 %v3714_v63, %v2462_v58  ;;  %3976 = vrcp.f32 %v5151_v10  ;;  %v5811_v22 = vpop.eup %3972  ;;  %v2388_v10 = vsub.f32 0.0, %v5652_v7  ;;  %v2590_v63 = vmul.f32 1.442695, %v2584_v32  ;;  %6806 = vst [vmem:[#allocation41_spill] sm:$0xff] %v5819_v18 }
 0x2c9   :  { %v2423_v60 = vsel %vm5796_vm4, %v2420_v44, %v2417_v2  ;;  %6805 = vst [vmem:[#allocation40_spill] sm:$0xff] %v5811_v22  ;;  %v1599_v58 = vadd.f32 %v1598_v5, %v1510_v6  ;;  %v5824_v55 = vsel %vm1689_vm2, %v5732_v9, 0.0  ;;  %v2427_v32 = vmul.f32 -0.5, %v5744_v53 }
 0x2ca   :  { %v2470_v15 = vsel %vm1689_vm2, %v2466_v50, 0.0  ;;  %v2435_v3 = vadd.f32 %v2423_v60, %v2395_v1  ;;  %v6734_v1 = vmov -1.0   ;;  %v2592_v2 = vmul.f32 1.442695, %v2585_v43 }
 0x2cb   :  { %2475 = vadd.xlane.f32.xlu1 %v2470_v15  ;;  %v1859_v25 = vsel %vm1855_vm3, 1.0, %v6734_v1  ;;  %v2748_v44 = vmax.f32 %v1599_v58, -20.0  ;;  %3978 = vlog2.f32 %v5819_v18  ;;  %v3715_v60 = vadd.f32 -0.9189385, %v2447_v13 }
 0x2cc   :  { %v2459_v61 = vsub.f32 %v2455_v38, %v2435_v3  ;;  %v1867_v36 = vmul.f32 %v1863_v17, %v1859_v25  ;;  %v5831_v38 = vadd.f32 %v2779_v39, %v1416_v16  ;;  %v2392_v9 = vmax.f32 %v2388_v10, 0.0  ;;  %v1848_v17 = vpop.xlane.xlu0 %1847  ;;  %v3760_v16 = vld [vmem:[%s6691_s7 + $0xd8] sm:$0xff]  ;;  %v1417_v39 = vpop.f32.mrf.mxu3 }
 0x2cd   :  { %v3975_v37 = vpop.eup %3974  ;;  %v5833_v3 = vmin.f32 %v2748_v44, 2.0  ;;  %v2440_v5 = vmul.f32 -0.5, %v5627_v24  ;;  %v2428_v58 = vadd.f32 1.0, %v2427_v32  ;;  %3980 = vpow2.f32 %v2590_v63  ;;  %v1331_v44 = vpop.f32.mrf.mxu2 }
 0x2ce   :  { %v3977_v50 = vpop.eup %3976  ;;  %6807 = vst [vmem:[#allocation42_spill] sm:$0xff] %v5831_v38  ;;  %v2463_v6 = vmul.f32 2.0, %v2459_v61  ;;  %v2780_v43 = vmul.f32 %v3975_v37, %v5824_v55  ;;  %v5843_v61 = vld [vmem:[#allocation3 + $0x18] sm:$0xff]  ;;  %3982 = vpow2.f32 %v2592_v2  ;;  %v2787_v25 = vand.u32 2147483647, %v5831_v38  ;;  %v1511_v32 = vpop.f32.mrf.mxu0 }
 0x2cf   :  { %v1879_v15 = vmul.f32 %v3977_v50, %v1867_v36  ;;  %v2775_v10 = vmul.f32 1.442695, %v5833_v3  ;;  %v1418_v36 = vadd.f32 %v1417_v39, %v1329_v28  ;;  %2971 = vst.msk [vmem:[#allocation3 + $0x18] sm:$0xff] %vm1714_vm1, %v3760_v16  ;;  %vm5851_vm6 = vcmp.lt.f32.partialorder %v2430_v45, 0.0004427343 }
 0x2d0   :  { %v2467_v1 = vsub.f32 %v3715_v60, %v2463_v6  ;;  %v2396_v60 = vmul.f32 2.0, %v2392_v9  ;;  %v2444_v2 = vmul.f32 %v2440_v5, %v5627_v24  ;;  %v2456_v16 = vsub.f32 0.6931472, %v5652_v7  ;;  %v1600_v5 = vpop.f32.mrf.mxu1 }
 0x2d1   :  { %v3673_v13 = vclamps-f32 %v1879_v15, 1.0  ;;  %v3979_v50 = vpop.eup %3978  ;;  %v5856_v15 = vadd.f32 %v2780_v43, %v1418_v36  ;;  %3984 = vpow2.f32 %v2775_v10  ;;  %v1512_v9 = vadd.f32 %v1511_v32, %v5050_v42 }
 0x2d2   :  { %v2471_v37 = vsel %vm1689_vm2, %v2467_v1, 0.0  ;;  %v2426_v28 = vmul.f32 0.6931472, %v3979_v50  ;;  %v2429_v1 = vmul.f32 %v5744_v53, %v2428_v58  ;;  %3986 = vrcp.f32 %v5195_v51 }
 0x2d3   :  { %2477 = vadd.xlane.f32.xlu2 %v2471_v37  ;;  %v1891_v63 = vsel %vm1690_vm5, %v1848_v17, %v3673_v13  ;;  %6810 = vst [vmem:[#allocation43_spill] sm:$0xff] %v5856_v15  ;;  %v1864_v45 = vsub.f32 1.0, %v5185_v46  ;;  %v2594_v43 = vsub.f32 0.0, %v5693_v23  ;;  %v5871_v17 = vadd.f32 1.0, %v5805_v20  ;;  %v5873_v58 = vpop.eup %3980 }
 0x2d4   :  { %1895 = vst [vmem:[%s6693_s8] sm:$0xff] %v1891_v63  ;;  %v2432_v24 = vsel %vm5851_vm6, %v2429_v1, %v2426_v28  ;;  %v2448_v13 = vsub.f32 %v2444_v2, %v5579_v52  ;;  %v1601_v10 = vadd.f32 %v1600_v5, %v1512_v9  ;;  %v2609_v51 = vmul.f32 -0.5, %v5805_v20  ;;  %v5877_v37 = vpop.eup %3982 }
 0x2d5   :  { %6811 = vst [vmem:[#allocation44_spill] sm:$0xff] %v5871_v17  ;;  %v2436_v39 = vadd.f32 %v2432_v24, %v2396_v60  ;;  %v2788_v36 = vand.u32 2147483647, %v5856_v15  ;;  %3988 = vlog2.f32 %v5871_v17  ;;  %v1332_v32 = vadd.f32 %v1331_v44, %v5070_v57  ;;  %v1420_v44 = vpop.f32.mrf.mxu3 }
 0x2d6   :  { %6812 = vst [vmem:[#allocation45_spill] sm:$0xff] %v5873_v58  ;;  %v6814_v50 = vmov -1.0   ;;  %v2749_v60 = vmax.f32 %v1601_v10, -20.0  ;;  %v5886_v6 = vmul.f32 -2.0, %v2787_v25  ;;  %v2598_v28 = vmax.f32 %v2594_v43, 0.0  ;;  %v5897_v43 = vld [vmem:[#allocation3] sm:$0xff]  ;;  %v1514_v59 = vpop.f32.mrf.mxu0 }
 0x2d7   :  { %6813 = vst [vmem:[#allocation46_spill] sm:$0xff] %v5877_v37  ;;  %v2460_v46 = vsub.f32 %v2456_v16, %v2436_v39  ;;  %v1860_v63 = vsel %vm1856_vm7, 1.0, %v6814_v50  ;;  %v3985_v52 = vpop.eup %3984  ;;  %v2646_v1 = vmul.f32 -0.5, %v5646_v35  ;;  %v3716_v24 = vadd.f32 -0.9189385, %v2448_v13  ;;  %v3773_v13 = vld [vmem:[%s6691_s7 + $0xe0] sm:$0xff] }
 0x2d8   :  { %v1868_v2 = vmul.f32 %v1864_v45, %v1860_v63  ;;  %v3987_v9 = vpop.eup %3986  ;;  %v5889_v17 = vmin.f32 %v2749_v60, 2.0  ;;  %v2610_v16 = vadd.f32 1.0, %v2609_v51  ;;  %v2792_v39 = vmul.f32 -2.0, %v2788_v36  ;;  %v1333_v45 = vpop.f32.mrf.mxu2  ;;  %3177 = vst.msk [vmem:[#allocation3] sm:$0xff] %vm1714_vm1, %v3773_v13 }
 0x2d9   :  { %v2464_v5 = vmul.f32 2.0, %v2460_v46  ;;  %v5894_v31 = vsel %vm1689_vm2, %v5785_v29, 0.0  ;;  %v2612_v25 = vand.u32 2147483647, %v5805_v20  ;;  %v1421_v63 = vadd.f32 %v1420_v44, %v1332_v32  ;;  %v1850_v51 = vpop.xlane.xlu0 %1849 }
 0x2da   :  { %v1880_v10 = vmul.f32 %v3987_v9, %v1868_v2  ;;  %v2777_v36 = vmul.f32 1.442695, %v5889_v17  ;;  %v2662_v60 = vsub.f32 0.6931472, %v5693_v23  ;;  %v2781_v2 = vmul.f32 %v3985_v52, %v5894_v31 }
 0x2db   :  { %v2468_v46 = vsub.f32 %v3716_v24, %v2464_v5  ;;  %v3989_v29 = vpop.eup %3988  ;;  %v2602_v53 = vmul.f32 2.0, %v2598_v28  ;;  %v2650_v18 = vmul.f32 %v2646_v1, %v5646_v35  ;;  %v2611_v24 = vmul.f32 %v5805_v20, %v2610_v16 }
 0x2dc   :  { %v3674_v9 = vclamps-f32 %v1880_v10, 1.0  ;;  %3990 = vpow2.f32 %v2777_v36  ;;  %v2608_v32 = vmul.f32 0.6931472, %v3989_v29  ;;  %vm2613_vm9 = vcmp.lt.f32.partialorder %v2612_v25, 0.0004427343 }
 0x2dd   :  { %v2472_v7 = vsel %vm1689_vm2, %v2468_v46, 0.0  ;;  %v1865_v44 = vsub.f32 1.0, %v5227_v47  ;;  %3992 = vrcp.f32 %v5242_v0  ;;  %v1515_v52 = vadd.f32 %v1514_v59, %v5050_v42  ;;  %v1603_v47 = vpop.f32.mrf.mxu1 }
 0x2de   :  { %2479 = vadd.xlane.f32.xlu0 %v2472_v7  ;;  %v1892_v5 = vsel %vm1690_vm5, %v1850_v51, %v3674_v9  ;;  %v2614_v35 = vsel %vm2613_vm9, %v2611_v24, %v2608_v32  ;;  %v2595_v28 = vsub.f32 0.0, %v5697_v11  ;;  %v5920_v1 = vadd.f32 1.0, %v5811_v22 }
 0x2df   :  { %1896 = vst [vmem:[%s6693_s8 + $0x8] sm:$0xff] %v1892_v5  ;;  %v2642_v7 = vadd.f32 %v2614_v35, %v2602_v53  ;;  %v2654_v16 = vsub.f32 %v2650_v18, %v5613_v34  ;;  %v1334_v10 = vadd.f32 %v1333_v45, %v5070_v57  ;;  %v2618_v0 = vmul.f32 -0.5, %v5811_v22  ;;  %v5940_v5 = vld [vmem:[#allocation3 + $0x8] sm:$0xff] }
 0x2e0   :  { %v5925_v25 = vadd.f32 %v2781_v2, %v1421_v63  ;;  %v1604_v13 = vadd.f32 %v1603_v47, %v1515_v52  ;;  %3994 = vlog2.f32 %v5920_v1  ;;  %v2647_v59 = vmul.f32 -0.5, %v5668_v19  ;;  %v1422_v52 = vpop.f32.mrf.mxu3  ;;  %3178 = vst.msk [vmem:[#allocation3 + $0x8] sm:$0xff] %vm1714_vm1, %v3774_v33 }
 0x2e1   :  { %v2666_v46 = vsub.f32 %v2662_v60, %v2642_v7  ;;  %v5932_v51 = vsel %vm1689_vm2, %v5843_v61, 0.0  ;;  %v1861_v34 = vsel %vm1857_vm8, 1.0, %v6814_v50  ;;  %v2621_v53 = vand.u32 2147483647, %v5811_v22  ;;  %v1336_v61 = vpop.f32.mrf.mxu2 }
 0x2e2   :  { %6815 = vst [vmem:[#allocation47_spill] sm:$0xff] %v5925_v25  ;;  %v3991_v18 = vpop.eup %3990  ;;  %v1869_v45 = vmul.f32 %v1865_v44, %v1861_v34  ;;  %v2955_v63 = vmax.f32 %v1604_v13, -20.0  ;;  %v2599_v36 = vmax.f32 %v2595_v28, 0.0  ;;  %v2619_v29 = vadd.f32 1.0, %v2618_v0  ;;  %v1852_v0 = vpop.xlane.xlu1 %1851 }
 0x2e3   :  { %v3993_v2 = vpop.eup %3992  ;;  %v3729_v9 = vadd.f32 -0.9189385, %v2654_v16  ;;  %v2670_v32 = vmul.f32 2.0, %v2666_v46  ;;  %v2782_v60 = vmul.f32 %v3991_v18, %v5932_v51  ;;  %v2651_v24 = vmul.f32 %v2647_v59, %v5668_v19  ;;  %v1516_v59 = vpop.f32.mrf.mxu0 }
 0x2e4   :  { %v2795_v35 = vmul.f32 1.442695, %v5886_v6  ;;  %v2797_v44 = vmul.f32 1.442695, %v2792_v39  ;;  %v1881_v28 = vmul.f32 %v3993_v2, %v1869_v45  ;;  %v5946_v7 = vmin.f32 %v2955_v63, 2.0 }
 0x2e5   :  { %v2789_v16 = vand.u32 2147483647, %v5925_v25  ;;  %v2674_v47 = vsub.f32 %v3729_v9, %v2670_v32  ;;  %v1423_v19 = vadd.f32 %v1422_v52, %v1334_v10  ;;  %vm5950_vm10 = vcmp.lt.f32.partialorder %v2621_v53, 0.0004427343  ;;  %v6818_v32 = vld [vmem:[#allocation6_spill] sm:$0xff] }
 0x2e6   :  { %v3995_v46 = vpop.eup %3994  ;;  %v3675_v34 = vclamps-f32 %v1881_v28, 1.0  ;;  %v2980_v6 = vmul.f32 1.442695, %v5946_v7  ;;  %v2603_v39 = vmul.f32 2.0, %v2599_v36  ;;  %v2620_v18 = vmul.f32 %v5811_v22, %v2619_v29 }
 0x2e7   :  { %v2678_v45 = vsel %vm1689_vm2, %v2674_v47, 0.0  ;;  %v5958_v63 = vadd.f32 %v2782_v60, %v1423_v19  ;;  %v2617_v2 = vmul.f32 0.6931472, %v3995_v46  ;;  %v2655_v10 = vsub.f32 %v2651_v24, %v5648_v26  ;;  %v1605_v26 = vpop.f32.mrf.mxu1 }
 0x2e8   :  { %2682 = vadd.xlane.f32.xlu1 %v2678_v45  ;;  %v1893_v53 = vsel %vm1690_vm5, %v1852_v0, %v3675_v34  ;;  %3996 = vpow2.f32 %v2980_v6  ;;  %v1517_v9 = vadd.f32 %v1516_v59, %v5050_v42  ;;  %v1866_v29 = vsub.f32 1.0, %v5262_v56 }
 0x2e9   :  { %1897 = vst [vmem:[%s6693_s8 + $0x10] sm:$0xff] %v1893_v53  ;;  %v2623_v36 = vsel %vm5950_vm10, %v2620_v18, %v2617_v2  ;;  %3998 = vrcp.f32 %v6818_v32  ;;  %v2596_v60 = vsub.f32 0.0, %v5751_v49  ;;  %v2663_v33 = vsub.f32 0.6931472, %v5697_v11 }
 0x2ea   :  { %v2643_v24 = vadd.f32 %v2623_v36, %v2603_v39  ;;  %v1606_v52 = vadd.f32 %v1605_v26, %v1517_v9  ;;  %v5975_v28 = vadd.f32 1.0, %v5873_v58  ;;  %v2793_v47 = vmul.f32 -2.0, %v2789_v16  ;;  %v1338_v39 = vpop.f32.mrf.mxu2  ;;  %v5995_v26 = vld [vmem:[#allocation3 + $0x10] sm:$0xff] }
 0x2eb   :  { %v1337_v19 = vadd.f32 %v1336_v61, %v5070_v57  ;;  %v5981_v0 = vsel %vm1689_vm2, %v5897_v43, 0.0  ;;  %v2627_v56 = vmul.f32 -0.5, %v5873_v58  ;;  %v1862_v59 = vsel %vm1858_vm11, 1.0, %v6814_v50 }
 0x2ec   :  { %6819 = vst [vmem:[#allocation6_spill] sm:$0xff] %v5975_v28  ;;  %v2667_v13 = vsub.f32 %v2663_v33, %v2643_v24  ;;  %v2956_v46 = vmax.f32 %v1606_v52, -20.0  ;;  %4000 = vlog2.f32 %v5975_v28  ;;  %v2790_v34 = vand.u32 2147483647, %v5958_v63 }
 0x2ed   :  { %v3730_v16 = vadd.f32 -0.9189385, %v2655_v10  ;;  %v1870_v6 = vmul.f32 %v1866_v29, %v1862_v59  ;;  %v2600_v61 = vmax.f32 %v2596_v60, 0.0  ;;  %v2630_v2 = vand.u32 2147483647, %v5873_v58  ;;  %v3775_v10 = vld [vmem:[%s6691_s7 + $0xf0] sm:$0xff]  ;;  %v1425_v60 = vpop.f32.mrf.mxu3  ;;  %v1854_v59 = vpop.xlane.xlu1 %1853 }
 0x2ee   :  { %v3997_v18 = vpop.eup %3996  ;;  %v2671_v45 = vmul.f32 2.0, %v2667_v13  ;;  %v5989_v43 = vmin.f32 %v2956_v46, 2.0  ;;  %v2648_v53 = vmul.f32 -0.5, %v5729_v40  ;;  %4002 = vpow2.f32 %v2795_v35  ;;  %3179 = vst.msk [vmem:[#allocation3 + $0x10] sm:$0xff] %vm1714_vm1, %v3775_v10 }
 0x2ef   :  { %v3999_v9 = vpop.eup %3998  ;;  %v2988_v36 = vmul.f32 %v3997_v18, %v5981_v0  ;;  %v2628_v32 = vadd.f32 1.0, %v2627_v56  ;;  %4004 = vpow2.f32 %v2797_v44  ;;  %v2799_v52 = vmul.f32 1.442695, %v2793_v47  ;;  %v1519_v56 = vpop.f32.mrf.mxu0 }
 0x2f0   :  { %v2675_v29 = vsub.f32 %v3730_v16, %v2671_v45  ;;  %v1882_v24 = vmul.f32 %v3999_v9, %v1870_v6  ;;  %v2982_v33 = vmul.f32 1.442695, %v5989_v43  ;;  %v2794_v13 = vmul.f32 -2.0, %v2790_v34 }
 0x2f1   :  { %v1426_v35 = vadd.f32 %v1425_v60, %v1337_v19  ;;  %v2604_v46 = vmul.f32 2.0, %v2600_v61  ;;  %vm6004_vm13 = vcmp.lt.f32.partialorder %v2630_v2, 0.0004427343  ;;  %v2652_v16 = vmul.f32 %v2648_v53, %v5729_v40  ;;  %v6823_v61 = vld [vmem:[#allocation8_spill] sm:$0xff]  ;;  %v6825_v53 = vld [vmem:[#allocation7_spill] sm:$0xff] }
 0x2f2   :  { %v4001_v18 = vpop.eup %4000  ;;  %v2679_v28 = vsel %vm1689_vm2, %v2675_v29, 0.0  ;;  %v3676_v22 = vclamps-f32 %v1882_v24, 1.0  ;;  %4006 = vpow2.f32 %v2982_v33  ;;  %v2629_v19 = vmul.f32 %v5873_v58, %v2628_v32 }
 0x2f3   :  { %2684 = vadd.xlane.f32.xlu2 %v2679_v28  ;;  %v6009_v6 = vadd.f32 %v2988_v36, %v1426_v35  ;;  %v2626_v47 = vmul.f32 0.6931472, %v4001_v18  ;;  %4008 = vrcp.f32 %v6823_v61  ;;  %v1520_v45 = vadd.f32 %v1519_v56, %v5050_v42  ;;  %v1341_v18 = vpop.f32.mrf.mxu2 }
 0x2f4   :  { %v1894_v34 = vsel %vm1690_vm5, %v1854_v59, %v3676_v22  ;;  %v2597_v2 = vsub.f32 0.0, %v5768_v62  ;;  %v6017_v9 = vpop.eup %4002  ;;  %v2664_v28 = vsub.f32 0.6931472, %v5751_v49  ;;  %v2071_v36 = vsub.f32 1.0, %v6825_v53  ;;  %v1608_v22 = vpop.f32.mrf.mxu1 }
 0x2f5   :  { %6824 = vst [vmem:[#allocation4_spill] sm:$0xff] %v6017_v9  ;;  %v2632_v40 = vsel %vm6004_vm13, %v2629_v19, %v2626_v47  ;;  %v6027_v32 = vadd.f32 1.0, %v5877_v37  ;;  %v6029_v10 = vpop.eup %4004  ;;  %v2656_v60 = vsub.f32 %v2652_v16, %v5683_v12  ;;  %v1609_v24 = vadd.f32 %v1608_v22, %v1520_v45  ;;  %v1427_v27 = vpop.f32.mrf.mxu3 }
 0x2f6   :  { %1898 = vst [vmem:[%s6693_s8 + $0x18] sm:$0xff] %v1894_v34  ;;  %v2644_v29 = vadd.f32 %v2632_v40, %v2604_v46  ;;  %v2636_v33 = vmul.f32 -0.5, %v5877_v37  ;;  %v2801_v35 = vmul.f32 1.442695, %v2794_v13  ;;  %v1339_v59 = vadd.f32 %v1338_v39, %v5070_v57 }
 0x2f7   :  { %6826 = vst [vmem:[#allocation8_spill] sm:$0xff] %v6027_v32  ;;  %v2067_v56 = vsel %vm2063_vm12, 1.0, %v6814_v50  ;;  %4010 = vlog2.f32 %v6027_v32  ;;  %v2996_v44 = vand.u32 2147483647, %v6009_v6  ;;  %v2957_v19 = vmax.f32 %v1609_v24, -20.0  ;;  %v2056_v24 = vpop.xlane.xlu2 %2055 }
 0x2f8   :  { %6827 = vst [vmem:[#allocation7_spill] sm:$0xff] %v6029_v10  ;;  %v2668_v47 = vsub.f32 %v2664_v28, %v2644_v29  ;;  %v2601_v46 = vmax.f32 %v2597_v2, 0.0  ;;  %v4007_v34 = vpop.eup %4006  ;;  %4012 = vpow2.f32 %v2799_v52  ;;  %v2075_v12 = vmul.f32 %v2071_v36, %v2067_v56  ;;  %v6048_v28 = vld [vmem:[#allocation3 + $0x18] sm:$0xff] }
 0x2f9   :  { %v2639_v16 = vand.u32 2147483647, %v5877_v37  ;;  %v2649_v13 = vmul.f32 -0.5, %v5749_v14  ;;  %v4009_v39 = vpop.eup %4008  ;;  %v3731_v61 = vadd.f32 -0.9189385, %v2656_v60  ;;  %v6041_v40 = vmin.f32 %v2957_v19, 2.0 }
 0x2fa   :  { %v2672_v45 = vmul.f32 2.0, %v2668_v47  ;;  %v2637_v53 = vadd.f32 1.0, %v2636_v33  ;;  %4014 = vpow2.f32 %v2801_v35  ;;  %v1428_v22 = vadd.f32 %v1427_v27, %v1339_v59  ;;  %v3776_v36 = vld [vmem:[%s6691_s7 + $0xf8] sm:$0xff] }
 0x2fb   :  { %v6046_v2 = vsel %vm1689_vm2, %v5940_v5, 0.0  ;;  %v2087_v52 = vmul.f32 %v4009_v39, %v2075_v12  ;;  %v3000_v29 = vmul.f32 -2.0, %v2996_v44  ;;  %v2984_v56 = vmul.f32 1.442695, %v6041_v40  ;;  %3180 = vst.msk [vmem:[#allocation3 + $0x18] sm:$0xff] %vm1714_vm1, %v3776_v36  ;;  %v1521_v12 = vpop.f32.mrf.mxu0 }
 0x2fc   :  { %v2676_v60 = vsub.f32 %v3731_v61, %v2672_v45  ;;  %v2605_v33 = vmul.f32 2.0, %v2601_v46  ;;  %v2989_v59 = vmul.f32 %v4007_v34, %v6046_v2  ;;  %vm6056_vm14 = vcmp.lt.f32.partialorder %v2639_v16, 0.0004427343  ;;  %v6831_v16 = vld [vmem:[#allocation5_spill] sm:$0xff]  ;;  %v6832_v45 = vld [vmem:[#allocation10_spill] sm:$0xff] }
 0x2fd   :  { %v4011_v35 = vpop.eup %4010  ;;  %v3685_v5 = vclamps-f32 %v2087_v52, 1.0  ;;  %v2653_v19 = vmul.f32 %v2649_v13, %v5749_v14  ;;  %4016 = vpow2.f32 %v2984_v56  ;;  %v2638_v46 = vmul.f32 %v5877_v37, %v2637_v53  ;;  %v6833_v52 = vld [vmem:[#allocation12_spill] sm:$0xff] }
 0x2fe   :  { %v2680_v44 = vsel %vm1689_vm2, %v2676_v60, 0.0  ;;  %v2635_v39 = vmul.f32 0.6931472, %v4011_v35  ;;  %v6064_v61 = vpop.eup %4012  ;;  %vm2064_vm1 = vcmp.ge.f32.partialorder %v6831_v16, 0.0  ;;  %v2072_v27 = vsub.f32 1.0, %v6832_v45 }
 0x2ff   :  { %6830 = vst [vmem:[#allocation48_spill] sm:$0xff] %v6064_v61  ;;  %2686 = vadd.xlane.f32.xlu0 %v2680_v44  ;;  %v2099_v34 = vsel %vm1690_vm5, %v2056_v24, %v3685_v5  ;;  %4018 = vrcp.f32 %v6833_v52  ;;  %v1522_v13 = vadd.f32 %v1521_v12, %v5050_v42  ;;  %v2803_v53 = vsub.f32 0.0, %v5831_v38  ;;  %v1610_v5 = vpop.f32.mrf.mxu1 }
 0x300   :  { %3689 = vst [vmem:[%s6693_s8 + $0x20] sm:$0xff] %v2099_v34  ;;  %v2641_v14 = vsel %vm6056_vm14, %v2638_v46, %v2635_v39  ;;  %v6079_v36 = vadd.f32 1.0, %v6017_v9  ;;  %v6081_v60 = vpop.eup %4014  ;;  %v2657_v56 = vsub.f32 %v2653_v19, %v5709_v30  ;;  %v2665_v35 = vsub.f32 0.6931472, %v5768_v62  ;;  %v1343_v34 = vpop.f32.mrf.mxu2  ;;  %v6835_v46 = vld [vmem:[#allocation9_spill] sm:$0xff] }
 0x301   :  { %v2645_v24 = vadd.f32 %v2641_v14, %v2605_v33  ;;  %v2818_v44 = vmul.f32 -0.5, %v6017_v9  ;;  %v3004_v47 = vmul.f32 1.442695, %v3000_v29  ;;  %v1342_v39 = vadd.f32 %v1341_v18, %v5070_v57  ;;  %v1430_v14 = vpop.f32.mrf.mxu3 }
 0x302   :  { %6834 = vst [vmem:[#allocation5_spill] sm:$0xff] %v6079_v36  ;;  %v1611_v12 = vadd.f32 %v1610_v5, %v1522_v13  ;;  %4020 = vlog2.f32 %v6079_v36  ;;  %vm2065_vm15 = vcmp.ge.f32.partialorder %v6835_v46, 0.0  ;;  %v6089_v45 = vadd.f32 %v2989_v59, %v1428_v22 }
 0x303   :  { %v2669_v52 = vsub.f32 %v2665_v35, %v2645_v24  ;;  %v2068_v30 = vsel %vm2064_vm1, 1.0, %v6814_v50  ;;  %v2855_v33 = vmul.f32 -0.5, %v5793_v21  ;;  %v4017_v19 = vpop.eup %4016  ;;  %v2807_v62 = vmax.f32 %v2803_v53, 0.0 }
 0x304   :  { %v2076_v37 = vmul.f32 %v2072_v27, %v2068_v30  ;;  %v2958_v29 = vmax.f32 %v1611_v12, -20.0  ;;  %v2821_v18 = vand.u32 2147483647, %v6017_v9  ;;  %v3732_v5 = vadd.f32 -0.9189385, %v2657_v56  ;;  %v2058_v56 = vpop.xlane.xlu2 %2057 }
 0x305   :  { %v4019_v13 = vpop.eup %4018  ;;  %v2673_v36 = vmul.f32 2.0, %v2669_v52  ;;  %v6099_v22 = vsel %vm1689_vm2, %v5995_v26, 0.0  ;;  %v2819_v59 = vadd.f32 1.0, %v2818_v44  ;;  %v2859_v27 = vmul.f32 %v2855_v33, %v5793_v21 }
 0x306   :  { %v2990_v16 = vmul.f32 %v4017_v19, %v6099_v22  ;;  %v2088_v24 = vmul.f32 %v4019_v13, %v2076_v37  ;;  %v6102_v35 = vmin.f32 %v2958_v29, 2.0  ;;  %4022 = vpow2.f32 %v3004_v47  ;;  %v1524_v37 = vpop.f32.mrf.mxu0  ;;  %v6838_v29 = vld [vmem:[#allocation13_spill] sm:$0xff]  ;;  %v6839_v13 = vld [vmem:[#allocation15_spill] sm:$0xff] }
 0x307   :  { %v2997_v53 = vand.u32 2147483647, %v6089_v45  ;;  %v2677_v12 = vsub.f32 %v3732_v5, %v2673_v36  ;;  %v1431_v30 = vadd.f32 %v1430_v14, %v1342_v39  ;;  %v2811_v26 = vmul.f32 2.0, %v2807_v62 }
 0x308   :  { %v4021_v52 = vpop.eup %4020  ;;  %v3686_v32 = vclamps-f32 %v2088_v24, 1.0  ;;  %v2986_v58 = vmul.f32 1.442695, %v6102_v35  ;;  %vm6107_vm0 = vcmp.lt.f32.partialorder %v2821_v18, 0.0004427343  ;;  %v2820_v47 = vmul.f32 %v6017_v9, %v2819_v59  ;;  %v1346_v59 = vpop.f32.mrf.mxu2 }
 0x309   :  { %v2681_v19 = vsel %vm1689_vm2, %v2677_v12, 0.0  ;;  %v2817_v21 = vmul.f32 0.6931472, %v4021_v52  ;;  %v2871_v36 = vsub.f32 0.6931472, %v5831_v38  ;;  %v6115_v39 = vadd.f32 %v2990_v16, %v1431_v30  ;;  %v1613_v24 = vpop.f32.mrf.mxu1 }
 0x30a   :  { %2688 = vadd.xlane.f32.xlu1 %v2681_v19  ;;  %v2100_v33 = vsel %vm1690_vm5, %v2058_v56, %v3686_v32  ;;  %4024 = vpow2.f32 %v2986_v58  ;;  %v2863_v62 = vsub.f32 %v2859_v27, %v5741_v41  ;;  %v2073_v18 = vsub.f32 1.0, %v6838_v29 }
 0x30b   :  { %3690 = vst [vmem:[%s6693_s8 + $0x28] sm:$0xff] %v2100_v33  ;;  %v2823_v14 = vsel %vm6107_vm0, %v2820_v47, %v2817_v21  ;;  %4026 = vrcp.f32 %v6839_v13  ;;  %v1525_v5 = vadd.f32 %v1524_v37, %v5050_v42  ;;  %v2804_v58 = vsub.f32 0.0, %v5856_v15 }
 0x30c   :  { %v2851_v16 = vadd.f32 %v2823_v14, %v2811_v26  ;;  %v6130_v41 = vadd.f32 1.0, %v6029_v10  ;;  %v2827_v32 = vmul.f32 -0.5, %v6029_v10  ;;  %v6133_v27 = vpop.eup %4022  ;;  %v3001_v12 = vmul.f32 -2.0, %v2997_v53  ;;  %v1432_v26 = vpop.f32.mrf.mxu3 }
 0x30d   :  { %v1344_v30 = vadd.f32 %v1343_v34, %v5070_v57  ;;  %v1614_v56 = vadd.f32 %v1613_v24, %v1525_v5  ;;  %v2856_v52 = vmul.f32 -0.5, %v5824_v55  ;;  %v2998_v44 = vand.u32 2147483647, %v6115_v39 }
 0x30e   :  { %6840 = vst [vmem:[#allocation10_spill] sm:$0xff] %v6130_v41  ;;  %v2875_v37 = vsub.f32 %v2871_v36, %v2851_v16  ;;  %v2069_v19 = vsel %vm2065_vm15, 1.0, %v6814_v50  ;;  %4028 = vlog2.f32 %v6130_v41  ;;  %v2808_v47 = vmax.f32 %v2804_v58, 0.0 }
 0x30f   :  { %v3164_v21 = vmax.f32 %v1614_v56, -20.0  ;;  %v2828_v33 = vadd.f32 1.0, %v2827_v32  ;;  %v2830_v53 = vand.u32 2147483647, %v6029_v10  ;;  %v3745_v34 = vadd.f32 -0.9189385, %v2863_v62  ;;  %v2060_v62 = vpop.xlane.xlu0 %2059 }
 0x310   :  { %v4025_v14 = vpop.eup %4024  ;;  %v2879_v29 = vmul.f32 2.0, %v2875_v37  ;;  %v2077_v13 = vmul.f32 %v2073_v18, %v2069_v19  ;;  %v2860_v5 = vmul.f32 %v2856_v52, %v5824_v55  ;;  %v3006_v36 = vmul.f32 1.442695, %v3001_v12 }
 0x311   :  { %v4027_v24 = vpop.eup %4026  ;;  %v1433_v16 = vadd.f32 %v1432_v26, %v1344_v30  ;;  %v6147_v46 = vsel %vm1689_vm2, %v6048_v28, 0.0  ;;  %v6149_v41 = vmin.f32 %v3164_v21, 2.0  ;;  %v3002_v58 = vmul.f32 -2.0, %v2998_v44  ;;  %v1526_v30 = vpop.f32.mrf.mxu0 }
 0x312   :  { %v2883_v32 = vsub.f32 %v3745_v34, %v2879_v29  ;;  %v2991_v56 = vmul.f32 %v4025_v14, %v6147_v46  ;;  %v2089_v9 = vmul.f32 %v4027_v24, %v2077_v13  ;;  %v2812_v37 = vmul.f32 2.0, %v2808_v47  ;;  %v1348_v14 = vpop.f32.mrf.mxu2  ;;  %v6844_v13 = vld [vmem:[#allocation18_spill] sm:$0xff]  ;;  %v1615_v24 = vpop.f32.mrf.mxu1 }
 0x313   :  { %v3189_v18 = vmul.f32 1.442695, %v6149_v41  ;;  %v2829_v55 = vmul.f32 %v6029_v10, %v2828_v33  ;;  %vm6154_vm3 = vcmp.lt.f32.partialorder %v2830_v53, 0.0004427343  ;;  %v2864_v26 = vsub.f32 %v2860_v5, %v5778_v4  ;;  %v3181_v33 = vld [vmem:[#allocation3] sm:$0xff]  ;;  %v6843_v53 = vld [vmem:[#allocation11_spill] sm:$0xff] }
 0x314   :  { %v4029_v28 = vpop.eup %4028  ;;  %v2887_v52 = vsel %vm1689_vm2, %v2883_v32, 0.0  ;;  %v3687_v44 = vclamps-f32 %v2089_v9, 1.0  ;;  %v2872_v19 = vsub.f32 0.6931472, %v5856_v15  ;;  %v1347_v47 = vadd.f32 %v1346_v59, %v5070_v57  ;;  %v6845_v59 = vld [vmem:[#allocation16_spill] sm:$0xff]  ;;  %v6848_v10 = vld [vmem:[#allocation17_spill] sm:$0xff] }
 0x315   :  { %2891 = vadd.xlane.f32.xlu2 %v2887_v52  ;;  %4030 = vpow2.f32 %v3189_v18  ;;  %v2826_v21 = vmul.f32 0.6931472, %v4029_v28  ;;  %vm2066_vm4 = vcmp.ge.f32.partialorder %v6843_v53, 0.0  ;;  %v6164_v34 = vadd.f32 %v2991_v56, %v1433_v16 }
 0x316   :  { %v2101_v29 = vsel %vm1690_vm5, %v2060_v62, %v3687_v44  ;;  %4032 = vrcp.f32 %v6844_v13  ;;  %v1527_v4 = vadd.f32 %v1526_v30, %v5050_v42  ;;  %v2074_v5 = vsub.f32 1.0, %v6845_v59  ;;  %v1435_v62 = vpop.f32.mrf.mxu3 }
 0x317   :  { %3691 = vst [vmem:[%s6693_s8 + $0x30] sm:$0xff] %v2101_v29  ;;  %v2832_v9 = vsel %vm6154_vm3, %v2829_v55, %v2826_v21  ;;  %v2805_v16 = vsub.f32 0.0, %v5925_v25  ;;  %v6178_v32 = vadd.f32 1.0, %v6064_v61  ;;  %v6182_v18 = vsel %vm1689_vm2, %v3181_v33, 0.0 }
 0x318   :  { %v2852_v56 = vadd.f32 %v2832_v9, %v2812_v37  ;;  %v1616_v30 = vadd.f32 %v1615_v24, %v1527_v4  ;;  %v2836_v28 = vmul.f32 -0.5, %v6064_v61  ;;  %v3746_v52 = vadd.f32 -0.9189385, %v2864_v26 }
 0x319   :  { %6846 = vst [vmem:[#allocation12_spill] sm:$0xff] %v6178_v32  ;;  %v1436_v12 = vadd.f32 %v1435_v62, %v1347_v47  ;;  %4034 = vlog2.f32 %v6178_v32  ;;  %v2857_v55 = vmul.f32 -0.5, %v5894_v31  ;;  %v2999_v44 = vand.u32 2147483647, %v6164_v34 }
 0x31a   :  { %v2876_v21 = vsub.f32 %v2872_v19, %v2852_v56  ;;  %v2070_v37 = vsel %vm2066_vm4, 1.0, %v6814_v50  ;;  %v3165_v29 = vmax.f32 %v1616_v30, -20.0  ;;  %v2809_v9 = vmax.f32 %v2805_v16, 0.0  ;;  %v6847_v19 = vld [vmem:[#allocation14_spill] sm:$0xff] }
 0x31b   :  { %v4031_v13 = vpop.eup %4030  ;;  %v2078_v33 = vmul.f32 %v2074_v5, %v2070_v37  ;;  %v2837_v4 = vadd.f32 1.0, %v2836_v28  ;;  %v2839_v59 = vand.u32 2147483647, %v6064_v61  ;;  %v2861_v32 = vmul.f32 %v2857_v55, %v5894_v31  ;;  %v2062_v28 = vpop.xlane.xlu1 %2061 }
 0x31c   :  { %v4033_v26 = vpop.eup %4032  ;;  %v2880_v47 = vmul.f32 2.0, %v2876_v21  ;;  %v3197_v24 = vmul.f32 %v4031_v13, %v6182_v18  ;;  %v6193_v62 = vmin.f32 %v3165_v29, 2.0  ;;  %vm2272_vm6 = vcmp.ge.f32.partialorder %v6847_v19, 0.0  ;;  %v6857_v19 = vld [vmem:[#allocation24_spill] sm:$0xff] }
 0x31d   :  { %4036 = vpow2.f32 %v3006_v36  ;;  %v6197_v53 = vmul.f32 1.442695, %v3002_v58  ;;  %v2090_v56 = vmul.f32 %v4033_v26, %v2078_v33  ;;  %v3003_v30 = vmul.f32 -2.0, %v2999_v44  ;;  %v6208_v36 = vpop.f32.mrf.mxu2  ;;  %v3182_v26 = vld [vmem:[#allocation3 + $0x8] sm:$0xff] }
 0x31e   :  { %v2884_v5 = vsub.f32 %v3746_v52, %v2880_v47  ;;  %v6199_v16 = vadd.f32 %v3197_v24, %v1436_v12  ;;  %v3191_v37 = vmul.f32 1.442695, %v6193_v62  ;;  %vm2273_vm7 = vcmp.ge.f32.partialorder %v6848_v10, 0.0  ;;  %v6852_v47 = vld [vmem:[#allocation20_spill] sm:$0xff]  ;;  %v6860_v10 = vld [vmem:[#allocation21_spill] sm:$0xff] }
 0x31f   :  { %v4035_v21 = vpop.eup %4034  ;;  %v3688_v29 = vclamps-f32 %v2090_v56, 1.0  ;;  %v2813_v13 = vmul.f32 2.0, %v2809_v9  ;;  %v2838_v31 = vmul.f32 %v6064_v61, %v2837_v4  ;;  %vm6204_vm8 = vcmp.lt.f32.partialorder %v2839_v59, 0.0004427343  ;;  %v6851_v4 = vld [vmem:[#allocation22_spill] sm:$0xff] }
 0x320   :  { %v2888_v58 = vsel %vm1689_vm2, %v2884_v5, 0.0  ;;  %v3205_v52 = vand.u32 2147483647, %v6199_v16  ;;  %4038 = vpow2.f32 %v3191_v37  ;;  %v2865_v12 = vsub.f32 %v2861_v32, %v5833_v3 }
 0x321   :  { %2893 = vadd.xlane.f32.xlu0 %v2888_v58  ;;  %v2102_v44 = vsel %vm1690_vm5, %v2062_v28, %v3688_v29  ;;  %v2835_v33 = vmul.f32 0.6931472, %v4035_v21  ;;  %v1349_v9 = vadd.f32 %v1348_v14, %v5070_v57  ;;  %4040 = vrcp.f32 %v6851_v4  ;;  %v1437_v4 = vpop.f32.mrf.mxu3 }
 0x322   :  { %v3209_v59 = vmul.f32 -2.0, %v3205_v52  ;;  %3692 = vst [vmem:[%s6693_s8 + $0x38] sm:$0xff] %v2102_v44  ;;  %v2280_v24 = vsub.f32 1.0, %v6852_v47  ;;  %v2806_v56 = vsub.f32 0.0, %v5958_v63  ;;  %v6224_v3 = vadd.f32 1.0, %v6081_v60 }
 0x323   :  { %v6226_v32 = vpop.eup %4036  ;;  %v2841_v14 = vsel %vm6204_vm8, %v2838_v31, %v2835_v33  ;;  %v2845_v5 = vmul.f32 -0.5, %v6081_v60  ;;  %v2848_v28 = vand.u32 2147483647, %v6081_v60  ;;  %v2858_v37 = vmul.f32 -0.5, %v5932_v51 }
 0x324   :  { %6853 = vst [vmem:[#allocation9_spill] sm:$0xff] %v6224_v3  ;;  %v2853_v21 = vadd.f32 %v2841_v14, %v2813_v13  ;;  %v2873_v29 = vsub.f32 0.6931472, %v5925_v25  ;;  %v2810_v58 = vmax.f32 %v2806_v56, 0.0  ;;  %4042 = vlog2.f32 %v6224_v3 }
 0x325   :  { %6854 = vst [vmem:[#allocation13_spill] sm:$0xff] %v6226_v32  ;;  %v3010_v52 = vmul.f32 1.442695, %v3003_v30  ;;  %v3747_v44 = vadd.f32 -0.9189385, %v2865_v12  ;;  %v6237_v47 = vsel %vm1689_vm2, %v3182_v26, 0.0  ;;  %v1438_v13 = vadd.f32 %v1437_v4, %v1349_v9 }
 0x326   :  { %v2276_v31 = vsel %vm2272_vm6, 1.0, %v6814_v50  ;;  %v4039_v55 = vpop.eup %4038  ;;  %v3213_v33 = vmul.f32 1.442695, %v3209_v59  ;;  %v2877_v61 = vsub.f32 %v2873_v29, %v2853_v21  ;;  %v2846_v3 = vadd.f32 1.0, %v2845_v5  ;;  %v2265_v59 = vpop.xlane.xlu2 %2264  ;;  %v6858_v9 = vld [vmem:[#allocation23_spill] sm:$0xff] }
 0x327   :  { %v2284_v14 = vmul.f32 %v2280_v24, %v2276_v31  ;;  %v4041_v25 = vpop.eup %4040  ;;  %v3198_v56 = vmul.f32 %v4039_v55, %v6237_v47  ;;  %vm6243_vm9 = vcmp.lt.f32.partialorder %v2848_v28, 0.0004427343  ;;  %v2862_v12 = vmul.f32 %v2858_v37, %v5932_v51  ;;  %v6256_v28 = vpop.f32.mrf.mxu2  ;;  %v6859_v4 = vld [vmem:[#allocation19_spill] sm:$0xff] }
 0x328   :  { %v2881_v26 = vmul.f32 2.0, %v2877_v61  ;;  %v2814_v38 = vmul.f32 2.0, %v2810_v58  ;;  %4044 = vrcp.f32 %v6857_v19  ;;  %v2281_v24 = vsub.f32 1.0, %v6858_v9 }
 0x329   :  { %v2296_v15 = vmul.f32 %v4041_v25, %v2284_v14  ;;  %v6249_v49 = vadd.f32 %v3198_v56, %v1438_v13  ;;  %v3012_v21 = vsub.f32 0.0, %v6009_v6  ;;  %v6254_v5 = vadd.f32 1.0, %v6133_v27 }
 0x32a   :  { %v4043_v29 = vpop.eup %4042  ;;  %vm2274_vm10 = vcmp.ge.f32.partialorder %v6859_v4, 0.0  ;;  %v2885_v51 = vsub.f32 %v3747_v44, %v2881_v26  ;;  %v2277_v61 = vsel %vm2273_vm7, 1.0, %v6814_v50  ;;  %v3027_v37 = vmul.f32 -0.5, %v6133_v27 }
 0x32b   :  { %v3701_v25 = vclamps-f32 %v2296_v15, 1.0  ;;  %v3206_v58 = vand.u32 2147483647, %v6249_v49  ;;  %v2844_v31 = vmul.f32 0.6931472, %v4043_v29  ;;  %v2847_v55 = vmul.f32 %v6081_v60, %v2846_v3 }
 0x32c   :  { %v2866_v13 = vsub.f32 %v2862_v12, %v5889_v17  ;;  %v2889_v14 = vsel %vm1689_vm2, %v2885_v51, 0.0  ;;  %v3016_v15 = vmax.f32 %v3012_v21, 0.0  ;;  %4046 = vlog2.f32 %v6254_v5  ;;  %v2267_v51 = vpop.xlane.xlu0 %2266 }
 0x32d   :  { %v2308_v44 = vsel %vm1690_vm5, %v2265_v59, %v3701_v25  ;;  %vm2275_vm11 = vcmp.ge.f32.partialorder %v6860_v10, 0.0  ;;  %4048 = vpow2.f32 %v6197_v53  ;;  %2895 = vadd.xlane.f32.xlu1 %v2889_v14  ;;  %v2850_v17 = vsel %vm6243_vm9, %v2847_v55, %v2844_v31  ;;  %v6861_v55 = vld [vmem:[#allocation25_spill] sm:$0xff]  ;;  %v6862_v14 = vld [vmem:[#allocation27_spill] sm:$0xff] }
 0x32e   :  { %3705 = vst [vmem:[%s6693_s8 + $0x40] sm:$0xff] %v2308_v44  ;;  %v2285_v3 = vmul.f32 %v2281_v24, %v2277_v61  ;;  %v3028_v56 = vadd.f32 1.0, %v3027_v37  ;;  %v4045_v12 = vpop.eup %4044  ;;  %4050 = vpow2.f32 %v3010_v52  ;;  %v2854_v26 = vadd.f32 %v2850_v17, %v2814_v38 }
 0x32f   :  { %v2874_v19 = vsub.f32 0.6931472, %v5958_v63  ;;  %v3064_v59 = vmul.f32 -0.5, %v5981_v0  ;;  %4052 = vpow2.f32 %v3213_v33  ;;  %v6280_v9 = vmul.f32 -2.0, %v3206_v58 }
 0x330   :  { %v3748_v53 = vadd.f32 -0.9189385, %v2866_v13  ;;  %v2297_v21 = vmul.f32 %v4045_v12, %v2285_v3  ;;  %v3020_v25 = vmul.f32 2.0, %v3016_v15  ;;  %v3030_v30 = vand.u32 2147483647, %v6133_v27 }
 0x331   :  { %v2878_v29 = vsub.f32 %v2874_v19, %v2854_v26  ;;  %v3068_v24 = vmul.f32 %v3064_v59, %v5981_v0  ;;  %v3029_v52 = vmul.f32 %v6133_v27, %v3028_v56  ;;  %v3080_v38 = vsub.f32 0.6931472, %v6009_v6  ;;  %v1529_v56 = vpop.f32.mrf.mxu2 }
 0x332   :  { %v3702_v61 = vclamps-f32 %v2297_v21, 1.0  ;;  %v3013_v37 = vsub.f32 0.0, %v6089_v45  ;;  %v4047_v31 = vpop.eup %4046  ;;  %v2282_v13 = vsub.f32 1.0, %v6861_v55  ;;  %4054 = vrcp.f32 %v6862_v14 }
 0x333   :  { %v2882_v33 = vmul.f32 2.0, %v2878_v29  ;;  %v3072_v58 = vsub.f32 %v3068_v24, %v5946_v7  ;;  %v6290_v44 = vpop.eup %4048  ;;  %v3026_v15 = vmul.f32 0.6931472, %v4047_v31  ;;  %v6295_v3 = vadd.f32 1.0, %v6226_v32 }
 0x334   :  { %v2309_v0 = vsel %vm1690_vm5, %v2267_v51, %v3702_v61  ;;  %v3017_v17 = vmax.f32 %v3013_v37, 0.0  ;;  %v6297_v12 = vpop.eup %4050  ;;  %vm3031_vm12 = vcmp.lt.f32.partialorder %v3030_v30, 0.0004427343  ;;  %v3036_v7 = vmul.f32 -0.5, %v6226_v32  ;;  %v1618_v37 = vpop.f32.mrf.mxu1 }
 0x335   :  { %v2886_v26 = vsub.f32 %v3748_v53, %v2882_v33  ;;  %3706 = vst [vmem:[%s6693_s8 + $0x48] sm:$0xff] %v2309_v0  ;;  %v3039_v19 = vand.u32 2147483647, %v6226_v32  ;;  %v6304_v59 = vpop.eup %4052  ;;  %v3032_v21 = vsel %vm3031_vm12, %v3029_v52, %v3026_v15  ;;  %v2278_v29 = vsel %vm2274_vm10, 1.0, %v6814_v50 }
 0x336   :  { %4056 = vlog2.f32 %v6295_v3  ;;  %v3065_v53 = vmul.f32 -0.5, %v6046_v2  ;;  %v3060_v24 = vadd.f32 %v3032_v21, %v3020_v25  ;;  %v2286_v30 = vmul.f32 %v2282_v13, %v2278_v29  ;;  %v6865_v13 = vld [vmem:[#allocation29_spill] sm:$0xff] }
 0x337   :  { %v2890_v51 = vsel %vm1689_vm2, %v2886_v26, 0.0  ;;  %v3037_v61 = vadd.f32 1.0, %v3036_v7  ;;  %v3761_v31 = vadd.f32 -0.9189385, %v3072_v58  ;;  %v3021_v33 = vmul.f32 2.0, %v3017_v17  ;;  %v6866_v58 = vld [vmem:[#allocation28_spill] sm:$0xff] }
 0x338   :  { %2897 = vadd.xlane.f32.xlu2 %v2890_v51  ;;  %v3069_v52 = vmul.f32 %v3065_v53, %v6046_v2  ;;  %v1530_v55 = vadd.f32 %v1529_v56, %v5050_v42  ;;  %v4055_v4 = vpop.eup %4054  ;;  %v3084_v14 = vsub.f32 %v3080_v38, %v3060_v24  ;;  %vm6315_vm13 = vcmp.lt.f32.partialorder %v3039_v19, 0.0004427343  ;;  %v2269_v56 = vpop.xlane.xlu1 %2268 }
 0x339   :  { %v2279_v25 = vsel %vm2275_vm11, 1.0, %v6814_v50  ;;  %4058 = vrcp.f32 %v6865_v13  ;;  %v2298_v15 = vmul.f32 %v4055_v4, %v2286_v30  ;;  %v2283_v17 = vsub.f32 1.0, %v6866_v58  ;;  %v1531_v58 = vpop.f32.mrf.mxu2 }
 0x33a   :  { %v1619_v26 = vadd.f32 %v1618_v37, %v1530_v55  ;;  %v3014_v2 = vsub.f32 0.0, %v6115_v39  ;;  %v3088_v7 = vmul.f32 2.0, %v3084_v14  ;;  %v3038_v38 = vmul.f32 %v6226_v32, %v3037_v61 }
 0x33b   :  { %v6327_v19 = vadd.f32 1.0, %v6290_v44  ;;  %v3045_v21 = vmul.f32 -0.5, %v6290_v44  ;;  %vm2481_vm14 = vcmp.ge.f32.partialorder %v5547_v54, 0.0  ;;  %v3703_v10 = vclamps-f32 %v2298_v15, 1.0 }
 0x33c   :  { %v4057_v29 = vpop.eup %4056  ;;  %v3073_v53 = vsub.f32 %v3069_v52, %v5989_v43  ;;  %v3166_v51 = vmax.f32 %v1619_v26, -20.0  ;;  %v3018_v24 = vmax.f32 %v3014_v2, 0.0  ;;  %v3092_v30 = vsub.f32 %v3761_v31, %v3088_v7  ;;  %v2271_v7 = vpop.xlane.xlu2 %2270 }
 0x33d   :  { %v3035_v37 = vmul.f32 0.6931472, %v4057_v29  ;;  %4060 = vlog2.f32 %v6327_v19  ;;  %v3046_v55 = vadd.f32 1.0, %v3045_v21  ;;  %v2310_v61 = vsel %vm1690_vm5, %v2269_v56, %v3703_v10  ;;  %v1620_v10 = vpop.f32.mrf.mxu1 }
 0x33e   :  { %v6335_v4 = vmin.f32 %v3166_v51, 2.0  ;;  %v2287_v14 = vmul.f32 %v2283_v17, %v2279_v25  ;;  %v3048_v13 = vand.u32 2147483647, %v6290_v44  ;;  %v3215_v15 = vmul.f32 1.442695, %v6280_v9  ;;  %3707 = vst [vmem:[%s6693_s8 + $0x50] sm:$0xff] %v2310_v61 }
 0x33f   :  { %v4059_v32 = vpop.eup %4058  ;;  %v3096_v43 = vsel %vm1689_vm2, %v3092_v30, 0.0  ;;  %v3041_v31 = vsel %vm6315_vm13, %v3038_v38, %v3035_v37  ;;  %v3066_v52 = vmul.f32 -0.5, %v6099_v22  ;;  %v3762_v26 = vadd.f32 -0.9189385, %v3073_v53 }
 0x340   :  { %3100 = vadd.xlane.f32.xlu0 %v3096_v43  ;;  %v3061_v25 = vadd.f32 %v3041_v31, %v3021_v33  ;;  %v3081_v17 = vsub.f32 0.6931472, %v6089_v45  ;;  %v2299_v2 = vmul.f32 %v4059_v32, %v2287_v14  ;;  %v3022_v9 = vmul.f32 2.0, %v3018_v24  ;;  %v6869_v24 = vld [vmem:[#allocation32_spill] sm:$0xff]  ;;  %v6871_v14 = vld [vmem:[#allocation31_spill] sm:$0xff] }
 0x341   :  { %v3047_v56 = vmul.f32 %v6290_v44, %v3046_v55  ;;  %v3070_v21 = vmul.f32 %v3066_v52, %v6099_v22  ;;  %v1532_v29 = vadd.f32 %v1531_v58, %v5050_v42  ;;  %v3193_v0 = vmul.f32 1.442695, %v6335_v4  ;;  %v6870_v22 = vld [vmem:[#allocation26_spill] sm:$0xff] }
 0x342   :  { %v3085_v51 = vsub.f32 %v3081_v17, %v3061_v25  ;;  %v3704_v38 = vclamps-f32 %v2299_v2, 1.0  ;;  %vm6352_vm1 = vcmp.lt.f32.partialorder %v3048_v13, 0.0004427343  ;;  %v3082_v32 = vsub.f32 0.6931472, %v6115_v39 }
 0x343   :  { %v4061_v33 = vpop.eup %4060  ;;  %v1621_v53 = vadd.f32 %v1620_v10, %v1532_v29  ;;  %4062 = vrcp.f32 %v6869_v24  ;;  %v3015_v37 = vsub.f32 0.0, %v6164_v34  ;;  %vm2482_vm15 = vcmp.ge.f32.partialorder %v6870_v22, 0.0 }
 0x344   :  { %v3089_v42 = vmul.f32 2.0, %v3085_v51  ;;  %v2311_v55 = vsel %vm1690_vm5, %v2271_v7, %v3704_v38  ;;  %v3044_v61 = vmul.f32 0.6931472, %v4061_v33  ;;  %v2489_v13 = vsub.f32 1.0, %v6871_v14  ;;  %v6874_v14 = vld [vmem:[#allocation33_spill] sm:$0xff] }
 0x345   :  { %3708 = vst [vmem:[%s6693_s8 + $0x58] sm:$0xff] %v2311_v55  ;;  %v3074_v58 = vsub.f32 %v3070_v21, %v6041_v40  ;;  %v3167_v43 = vmax.f32 %v1621_v53, -20.0  ;;  %v3019_v31 = vmax.f32 %v3015_v37, 0.0  ;;  %v6368_v52 = vadd.f32 1.0, %v6297_v12 }
 0x346   :  { %v3093_v25 = vsub.f32 %v3762_v26, %v3089_v42  ;;  %v3050_v17 = vsel %vm6352_vm1, %v3047_v56, %v3044_v61  ;;  %v3054_v2 = vmul.f32 -0.5, %v6297_v12  ;;  %v3057_v7 = vand.u32 2147483647, %v6297_v12  ;;  %v2474_v42 = vpop.xlane.xlu0 %2473 }
 0x347   :  { %v3062_v29 = vadd.f32 %v3050_v17, %v3022_v9  ;;  %v6374_v10 = vmin.f32 %v3167_v43, 2.0  ;;  %v2485_v40 = vsel %vm2481_vm14, 1.0, %v6814_v50  ;;  %4064 = vlog2.f32 %v6368_v52 }
 0x348   :  { %4066 = vpow2.f32 %v3215_v15  ;;  %v3097_v26 = vsel %vm1689_vm2, %v3093_v25, 0.0  ;;  %v2493_v21 = vmul.f32 %v2489_v13, %v2485_v40  ;;  %v3067_v56 = vmul.f32 -0.5, %v6147_v46 }
 0x349   :  { %v4063_v51 = vpop.eup %4062  ;;  %3102 = vadd.xlane.f32.xlu1 %v3097_v26  ;;  %4068 = vpow2.f32 %v3193_v0  ;;  %v3763_v38 = vadd.f32 -0.9189385, %v3074_v58  ;;  %v3086_v9 = vsub.f32 %v3082_v32, %v3062_v29  ;;  %v3023_v30 = vmul.f32 2.0, %v3019_v31  ;;  %v6875_v58 = vld [vmem:[#allocation34_spill] sm:$0xff] }
 0x34a   :  { %vm2483_vm0 = vcmp.ge.f32.partialorder %v5609_v8, 0.0  ;;  %v2505_v33 = vmul.f32 %v4063_v51, %v2493_v21  ;;  %v3055_v54 = vadd.f32 1.0, %v3054_v2  ;;  %vm6384_vm3 = vcmp.lt.f32.partialorder %v3057_v7, 0.0004427343 }
 0x34b   :  { %v3071_v15 = vmul.f32 %v3067_v56, %v6147_v46  ;;  %v3090_v24 = vmul.f32 2.0, %v3086_v9  ;;  %v6390_v37 = vmul.f32 1.442695, %v6374_v10  ;;  %v3221_v0 = vsub.f32 0.0, %v6199_v16 }
 0x34c   :  { %v6394_v32 = vadd.f32 1.0, %v6304_v59  ;;  %v3717_v55 = vclamps-f32 %v2505_v33, 1.0  ;;  %v2490_v13 = vsub.f32 1.0, %v6874_v14  ;;  %4070 = vrcp.f32 %v6875_v58  ;;  %v6879_v14 = vld [vmem:[#allocation38_spill] sm:$0xff] }
 0x34d   :  { %v3075_v61 = vsub.f32 %v3071_v15, %v6102_v35  ;;  %v4065_v43 = vpop.eup %4064  ;;  %v3094_v31 = vsub.f32 %v3763_v38, %v3090_v24  ;;  %v3225_v46 = vmax.f32 %v3221_v0, 0.0  ;;  %v3236_v25 = vmul.f32 -0.5, %v6304_v59  ;;  %v6876_v15 = vld [vmem:[#allocation30_spill] sm:$0xff] }
 0x34e   :  { %4072 = vlog2.f32 %v6394_v32  ;;  %v6401_v17 = vpop.eup %4066  ;;  %v2517_v2 = vsel %vm1690_vm5, %v2474_v42, %v3717_v55  ;;  %v3053_v7 = vmul.f32 0.6931472, %v4065_v43  ;;  %v3056_v29 = vmul.f32 %v6297_v12, %v3055_v54 }
 0x34f   :  { %v3239_v35 = vand.u32 2147483647, %v6304_v59  ;;  %v6407_v40 = vpop.eup %4068  ;;  %v3098_v26 = vsel %vm1689_vm2, %v3094_v31, 0.0  ;;  %3721 = vst [vmem:[%s6693_s8 + $0x60] sm:$0xff] %v2517_v2  ;;  %v3083_v21 = vsub.f32 0.6931472, %v6164_v34  ;;  %4074 = vrcp.f32 %v6879_v14 }
 0x350   :  { %v2486_v56 = vsel %vm2482_vm15, 1.0, %v6814_v50  ;;  %v3273_v51 = vmul.f32 -0.5, %v6182_v18  ;;  %3104 = vadd.xlane.f32.xlu2 %v3098_v26  ;;  %v3059_v38 = vsel %vm6384_vm3, %v3056_v29, %v3053_v7  ;;  %v3764_v9 = vadd.f32 -0.9189385, %v3075_v61 }
 0x351   :  { %v2494_v33 = vmul.f32 %v2490_v13, %v2486_v56  ;;  %v3237_v54 = vadd.f32 1.0, %v3236_v25  ;;  %vm2484_vm4 = vcmp.ge.f32.partialorder %v6876_v15, 0.0  ;;  %v3063_v24 = vadd.f32 %v3059_v38, %v3023_v30  ;;  %v6886_v15 = vld [vmem:[#allocation40_spill] sm:$0xff] }
 0x352   :  { %v3229_v42 = vmul.f32 2.0, %v3225_v46  ;;  %vm6422_vm6 = vcmp.lt.f32.partialorder %v3239_v35, 0.0004427343  ;;  %v3277_v22 = vmul.f32 %v3273_v51, %v6182_v18  ;;  %v4071_v55 = vpop.eup %4070  ;;  %v3222_v58 = vsub.f32 0.0, %v6249_v49  ;;  %v6880_v46 = vld [vmem:[#allocation35_spill] sm:$0xff]  ;;  %v2476_v18 = vpop.xlane.xlu1 %2475 }
 0x353   :  { %v6430_v53 = vadd.f32 1.0, %v6401_v17  ;;  %v3245_v61 = vmul.f32 -0.5, %v6401_v17  ;;  %v3087_v43 = vsub.f32 %v3083_v21, %v3063_v24  ;;  %v2506_v30 = vmul.f32 %v4071_v55, %v2494_v33 }
 0x354   :  { %v4073_v13 = vpop.eup %4072  ;;  %v3289_v31 = vsub.f32 0.6931472, %v6199_v16  ;;  %v2491_v25 = vsub.f32 1.0, %v6880_v46  ;;  %vm2690_vm7 = vcmp.ge.f32.partialorder %v5693_v23, 0.0  ;;  %v3238_v7 = vmul.f32 %v6304_v59, %v3237_v54 }
 0x355   :  { %v3235_v2 = vmul.f32 0.6931472, %v4073_v13  ;;  %v3281_v29 = vsub.f32 %v3277_v22, %v6149_v41  ;;  %4076 = vlog2.f32 %v6430_v53  ;;  %v3091_v35 = vmul.f32 2.0, %v3087_v43  ;;  %v4075_v14 = vpop.eup %4074 }
 0x356   :  { %v3718_v26 = vclamps-f32 %v2506_v30, 1.0  ;;  %v2487_v21 = vsel %vm2483_vm0, 1.0, %v6814_v50  ;;  %v3226_v56 = vmax.f32 %v3222_v58, 0.0  ;;  %vm2691_vm8 = vcmp.ge.f32.partialorder %v5697_v11, 0.0  ;;  %v2478_v30 = vpop.xlane.xlu2 %2477 }
 0x357   :  { %v3241_v51 = vsel %vm6422_vm6, %v3238_v7, %v3235_v2  ;;  %v3246_v38 = vadd.f32 1.0, %v3245_v61  ;;  %v3248_v33 = vand.u32 2147483647, %v6401_v17  ;;  %v3274_v54 = vmul.f32 -0.5, %v6237_v47 }
 0x358   :  { %v3095_v41 = vsub.f32 %v3764_v9, %v3091_v35  ;;  %v2518_v24 = vsel %vm1690_vm5, %v2476_v18, %v3718_v26  ;;  %v3269_v22 = vadd.f32 %v3241_v51, %v3229_v42  ;;  %v2495_v55 = vmul.f32 %v2491_v25, %v2487_v21  ;;  %v6881_v42 = vld [vmem:[#allocation41_spill] sm:$0xff]  ;;  %v6884_v25 = vld [vmem:[#allocation36_spill] sm:$0xff]  ;;  %v1440_v35 = vpop.f32.mrf.mxu3 }
 0x359   :  { %v1352_v8 = vadd.f32 %v6208_v36, %v5070_v57  ;;  %4078 = vpow2.f32 %v6390_v37  ;;  %3722 = vst [vmem:[%s6693_s8 + $0x68] sm:$0xff] %v2518_v24  ;;  %v3777_v0 = vadd.f32 -0.9189385, %v3281_v29  ;;  %v3278_v58 = vmul.f32 %v3274_v54, %v6237_v47  ;;  %v6885_v29 = vld [vmem:[#allocation44_spill] sm:$0xff] }
 0x35a   :  { %v3099_v9 = vsel %vm1689_vm2, %v3095_v41, 0.0  ;;  %v3293_v61 = vsub.f32 %v3289_v31, %v3269_v22  ;;  %v2507_v13 = vmul.f32 %v4075_v14, %v2495_v55  ;;  %4080 = vrcp.f32 %v6881_v42  ;;  %v3183_v31 = vld [vmem:[#allocation3 + $0x10] sm:$0xff] }
 0x35b   :  { %v4077_v43 = vpop.eup %4076  ;;  %3106 = vadd.xlane.f32.xlu0 %v3099_v9  ;;  %v3230_v36 = vmul.f32 2.0, %v3226_v56  ;;  %v3247_v37 = vmul.f32 %v6401_v17, %v3246_v38  ;;  %vm6460_vm9 = vcmp.lt.f32.partialorder %v3248_v33, 0.0004427343  ;;  %v2492_v18 = vsub.f32 1.0, %v6884_v25 }
 0x35c   :  { %v3297_v47 = vmul.f32 2.0, %v3293_v61  ;;  %v3719_v2 = vclamps-f32 %v2507_v13, 1.0  ;;  %v3244_v7 = vmul.f32 0.6931472, %v4077_v43  ;;  %4082 = vrcp.f32 %v6885_v29 }
 0x35d   :  { %v3282_v26 = vsub.f32 %v3278_v58, %v6193_v62  ;;  %v3290_v21 = vsub.f32 0.6931472, %v6249_v49  ;;  %v2488_v56 = vsel %vm2484_vm4, 1.0, %v6814_v50  ;;  %v2698_v51 = vsub.f32 1.0, %v5805_v20 }
 0x35e   :  { %v3301_v38 = vsub.f32 %v3777_v0, %v3297_v47  ;;  %v2519_v33 = vsel %vm1690_vm5, %v2478_v30, %v3719_v2  ;;  %v3250_v54 = vsel %vm6460_vm9, %v3247_v37, %v3244_v7  ;;  %4084 = vrcp.f32 %v5920_v1  ;;  %v2480_v30 = vpop.xlane.xlu0 %2479  ;;  %v2683_v47 = vpop.xlane.xlu1 %2682 }
 0x35f   :  { %v4079_v41 = vpop.eup %4078  ;;  %3723 = vst [vmem:[%s6693_s8 + $0x70] sm:$0xff] %v2519_v33  ;;  %v3270_v62 = vadd.f32 %v3250_v54, %v3230_v36  ;;  %v2496_v24 = vmul.f32 %v2492_v18, %v2488_v56  ;;  %v2699_v22 = vsub.f32 1.0, %v6886_v15  ;;  %v6483_v20 = vsel %vm1689_vm2, %v3183_v31, 0.0  ;;  %v6888_v15 = vld [vmem:[#allocation37_spill] sm:$0xff] }
 0x360   :  { %v4081_v55 = vpop.eup %4080  ;;  %v1441_v14 = vadd.f32 %v1440_v35, %v1352_v8  ;;  %v3305_v0 = vsel %vm1689_vm2, %v3301_v38, 0.0  ;;  %v2694_v1 = vsel %vm2690_vm7, 1.0, %v6814_v50  ;;  %v3199_v58 = vmul.f32 %v6407_v40, %v6483_v20  ;;  %v1442_v56 = vpop.f32.mrf.mxu3 }
 0x361   :  { %3309 = vadd.xlane.f32.xlu1 %v3305_v0  ;;  %v3294_v9 = vsub.f32 %v3290_v21, %v3270_v62  ;;  %v2508_v61 = vmul.f32 %v4081_v55, %v2496_v24  ;;  %v2702_v13 = vmul.f32 %v2698_v51, %v2694_v1  ;;  %v3778_v43 = vadd.f32 -0.9189385, %v3282_v26  ;;  %v6887_v26 = vld [vmem:[#allocation6_spill] sm:$0xff]  ;;  %v3184_v21 = vld [vmem:[#allocation3 + $0x18] sm:$0xff]  ;;  %v6889_v55 = vld [vmem:[#allocation45_spill] sm:$0xff] }
 0x362   :  { %v4083_v42 = vpop.eup %4082  ;;  %v2695_v8 = vsel %vm2691_vm8, 1.0, %v6814_v50  ;;  %v6495_v36 = vadd.f32 %v3199_v58, %v1441_v14  ;;  %v1354_v40 = vadd.f32 %v6256_v28, %v5070_v57  ;;  %4086 = vrcp.f32 %v6887_v26 }
 0x363   :  { %v3298_v37 = vmul.f32 2.0, %v3294_v9  ;;  %v3720_v46 = vclamps-f32 %v2508_v61, 1.0  ;;  %v2714_v23 = vmul.f32 %v4083_v42, %v2702_v13  ;;  %v2703_v25 = vmul.f32 %v2699_v22, %v2695_v8  ;;  %v6890_v8 = vld [vmem:[#allocation8_spill] sm:$0xff] }
 0x364   :  { %v4085_v18 = vpop.eup %4084  ;;  %v3207_v2 = vand.u32 2147483647, %v6495_v36  ;;  %v6512_v38 = vsel %vm1689_vm2, %v3184_v21, 0.0  ;;  %v1443_v33 = vadd.f32 %v1442_v56, %v1354_v40  ;;  %vm2692_vm10 = vcmp.ge.f32.partialorder %v6888_v15, 0.0  ;;  %v6892_v40 = vld [vmem:[#allocation46_spill] sm:$0xff] }
 0x365   :  { %v3302_v7 = vsub.f32 %v3778_v43, %v3298_v37  ;;  %v2520_v29 = vsel %vm1690_vm5, %v2480_v30, %v3720_v46  ;;  %v3733_v31 = vclamps-f32 %v2714_v23, 1.0  ;;  %v2715_v11 = vmul.f32 %v4085_v18, %v2703_v25  ;;  %v6891_v25 = vld [vmem:[#allocation39_spill] sm:$0xff] }
 0x366   :  { %3724 = vst [vmem:[%s6693_s8 + $0x78] sm:$0xff] %v2520_v29  ;;  %v3211_v35 = vmul.f32 -2.0, %v3207_v2  ;;  %v2685_v54 = vpop.xlane.xlu2 %2684  ;;  %v3200_v24 = vmul.f32 %v4079_v41, %v6512_v38  ;;  %v2700_v14 = vsub.f32 1.0, %v6889_v55  ;;  %v2696_v58 = vsel %vm2692_vm10, 1.0, %v6814_v50 }
 0x367   :  { %v3306_v57 = vsel %vm1689_vm2, %v3302_v7, 0.0  ;;  %v2726_v28 = vsel %vm1690_vm5, %v2683_v47, %v3733_v31  ;;  %v3734_v51 = vclamps-f32 %v2715_v11, 1.0  ;;  %v3223_v46 = vsub.f32 0.0, %v6495_v36 }
 0x368   :  { %3311 = vadd.xlane.f32.xlu2 %v3306_v57  ;;  %3737 = vst [vmem:[%s6693_s8 + $0x80] sm:$0xff] %v2726_v28  ;;  %v3217_v62 = vmul.f32 1.442695, %v3211_v35  ;;  %v6525_v0 = vadd.f32 %v3200_v24, %v1443_v33  ;;  %v4087_v1 = vpop.eup %4086  ;;  %v2704_v41 = vmul.f32 %v2700_v14, %v2696_v58  ;;  %vm2693_vm11 = vcmp.ge.f32.partialorder %v6891_v25, 0.0  ;;  %v6893_v14 = vld [vmem:[#allocation5_spill] sm:$0xff] }
 0x369   :  { %v2727_v22 = vsel %vm1690_vm5, %v2685_v54, %v3734_v51  ;;  %v2701_v47 = vsub.f32 1.0, %v6892_v40  ;;  %v3275_v2 = vmul.f32 -0.5, %v6483_v20  ;;  %v3227_v11 = vmax.f32 %v3223_v46, 0.0 }
 0x36a   :  { %3738 = vst [vmem:[%s6693_s8 + $0x88] sm:$0xff] %v2727_v22  ;;  %4088 = vpow2.f32 %v3217_v62  ;;  %v3208_v9 = vand.u32 2147483647, %v6525_v0  ;;  %v2716_v13 = vmul.f32 %v4087_v1, %v2704_v41  ;;  %v2697_v26 = vsel %vm2693_vm11, 1.0, %v6814_v50  ;;  %v6894_v41 = vld [vmem:[#allocation42_spill] sm:$0xff] }
 0x36b   :  { %4090 = vrcp.f32 %v6890_v8  ;;  %v2705_v56 = vmul.f32 %v2701_v47, %v2697_v26  ;;  %v3279_v28 = vmul.f32 %v3275_v2, %v6483_v20  ;;  %v3231_v15 = vmul.f32 2.0, %v3227_v11 }
 0x36c   :  { %v3212_v61 = vmul.f32 -2.0, %v3208_v9  ;;  %v3735_v23 = vclamps-f32 %v2716_v13, 1.0  ;;  %v3224_v22 = vsub.f32 0.0, %v6525_v0  ;;  %v3291_v58 = vsub.f32 0.6931472, %v6495_v36 }
 0x36d   :  { %v3283_v20 = vsub.f32 %v3279_v28, %v6335_v4  ;;  %v3276_v9 = vmul.f32 -0.5, %v6512_v38  ;;  %vm2899_vm13 = vcmp.ge.f32.partialorder %v6894_v41, 0.0  ;;  %v3292_v28 = vsub.f32 0.6931472, %v6525_v0  ;;  %v6898_v41 = vld [vmem:[#allocation7_spill] sm:$0xff] }
 0x36e   :  { %v3219_v43 = vmul.f32 1.442695, %v3212_v61  ;;  %v3228_v8 = vmax.f32 %v3224_v22, 0.0  ;;  %v2903_v11 = vsel %vm2899_vm13, 1.0, %v6814_v50  ;;  %vm3108_vm0 = vcmp.ge.f32.partialorder %v6009_v6, 0.0  ;;  %v6903_v6 = vld [vmem:[#allocation13_spill] sm:$0xff] }
 0x36f   :  { %v3779_v4 = vadd.f32 -0.9189385, %v3283_v20  ;;  %v3280_v2 = vmul.f32 %v3276_v9, %v6512_v38  ;;  %v6897_v20 = vld [vmem:[#allocation43_spill] sm:$0xff]  ;;  %vm3109_vm3 = vcmp.ge.f32.partialorder %v6089_v45, 0.0  ;;  %vm3110_vm4 = vcmp.ge.f32.partialorder %v6115_v39, 0.0 }
 0x370   :  { %v6529_v42 = vpop.eup %4088  ;;  %4092 = vpow2.f32 %v3219_v43  ;;  %v3232_v26 = vmul.f32 2.0, %v3228_v8  ;;  %vm2900_vm1 = vcmp.ge.f32.partialorder %v6897_v20, 0.0  ;;  %v3118_v45 = vsub.f32 1.0, %v6290_v44 }
 0x371   :  { %v6532_v30 = vadd.f32 1.0, %v6529_v42  ;;  %v3254_v37 = vmul.f32 -0.5, %v6529_v42  ;;  %v4091_v31 = vpop.eup %4090  ;;  %v3257_v35 = vand.u32 2147483647, %v6529_v42  ;;  %vm3111_vm6 = vcmp.ge.f32.partialorder %v6164_v34, 0.0 }
 0x372   :  { %v2687_v18 = vpop.xlane.xlu0 %2686  ;;  %v2717_v24 = vmul.f32 %v4091_v31, %v2705_v56  ;;  %v3119_v44 = vsub.f32 1.0, %v6297_v12  ;;  %vm3317_vm7 = vcmp.ge.f32.partialorder %v6199_v16, 0.0  ;;  %vm3318_vm8 = vcmp.ge.f32.partialorder %v6249_v49, 0.0 }
 0x373   :  { %4094 = vlog2.f32 %v6532_v30  ;;  %v2728_v7 = vsel %vm1690_vm5, %v2687_v18, %v3735_v23  ;;  %v3255_v29 = vadd.f32 1.0, %v3254_v37  ;;  %vm3258_vm12 = vcmp.lt.f32.partialorder %v3257_v35, 0.0004427343  ;;  %v6895_v23 = vld [vmem:[#allocation4_spill] sm:$0xff] }
 0x374   :  { %3739 = vst [vmem:[%s6693_s8 + $0x90] sm:$0xff] %v2728_v7  ;;  %v3736_v13 = vclamps-f32 %v2717_v24, 1.0  ;;  %v2907_v25 = vsub.f32 1.0, %v6895_v23  ;;  %v3326_v16 = vsub.f32 1.0, %v6401_v17  ;;  %vm3319_vm9 = vcmp.ge.f32.partialorder %v6495_v36, 0.0 }
 0x375   :  { %v3256_v54 = vmul.f32 %v6529_v42, %v3255_v29  ;;  %v3327_v17 = vsub.f32 1.0, %v6529_v42  ;;  %vm3320_vm10 = vcmp.ge.f32.partialorder %v6525_v0, 0.0 }
 0x376   :  { %v6548_v21 = vpop.eup %4092  ;;  %v2911_v56 = vmul.f32 %v2907_v25, %v2903_v11  ;;  %v6902_v11 = vld [vmem:[#allocation9_spill] sm:$0xff] }
 0x377   :  { %v6552_v51 = vadd.f32 1.0, %v6548_v21  ;;  %v3263_v62 = vmul.f32 -0.5, %v6548_v21  ;;  %v3266_v37 = vand.u32 2147483647, %v6548_v21 }
 0x379   :  { %v4095_v57 = vpop.eup %4094  ;;  %4096 = vlog2.f32 %v6552_v51  ;;  %v3264_v61 = vadd.f32 1.0, %v3263_v62  ;;  %vm3267_vm14 = vcmp.lt.f32.partialorder %v3266_v37, 0.0004427343 }
 0x37a   :  { %v3253_v33 = vmul.f32 0.6931472, %v4095_v57  ;;  %4098 = vrcp.f32 %v6893_v14 }
 0x37b   :  { %v3265_v31 = vmul.f32 %v6548_v21, %v3264_v61  ;;  %v2908_v61 = vsub.f32 1.0, %v6898_v41 }
 0x37c   :  { %v3259_v55 = vsel %vm3258_vm12, %v3256_v54, %v3253_v33  ;;  %v3284_v54 = vsub.f32 %v3280_v2, %v6374_v10 }
 0x37d   :  { %v3271_v1 = vadd.f32 %v3259_v55, %v3231_v15  ;;  %v2689_v46 = vpop.xlane.xlu1 %2688  ;;  %v6896_v15 = vld [vmem:[#allocation10_spill] sm:$0xff] }
 0x37e   :  { %v2729_v18 = vsel %vm1690_vm5, %v2689_v46, %v3736_v13  ;;  %4100 = vrcp.f32 %v6896_v15  ;;  %v3780_v22 = vadd.f32 -0.9189385, %v3284_v54  ;;  %v6899_v46 = vld [vmem:[#allocation12_spill] sm:$0xff]  ;;  %v3112_v15 = vsel %vm3108_vm0, 1.0, %v6814_v50 }
 0x37f   :  { %v3295_v43 = vsub.f32 %v3291_v58, %v3271_v1  ;;  %v4097_v40 = vpop.eup %4096  ;;  %3740 = vst [vmem:[%s6693_s8 + $0x98] sm:$0xff] %v2729_v18  ;;  %4102 = vrcp.f32 %v6899_v46  ;;  %v6900_v18 = vld [vmem:[#allocation47_spill] sm:$0xff] }
 0x380   :  { %v4099_v7 = vpop.eup %4098  ;;  %v3262_v29 = vmul.f32 0.6931472, %v4097_v40  ;;  %vm2901_vm15 = vcmp.ge.f32.partialorder %v6900_v18, 0.0  ;;  %4104 = vrcp.f32 %v6902_v11  ;;  %v3115_v18 = vsel %vm3111_vm6, 1.0, %v6814_v50 }
 0x381   :  { %v3299_v47 = vmul.f32 2.0, %v3295_v43  ;;  %v2923_v62 = vmul.f32 %v4099_v7, %v2911_v56  ;;  %v2904_v43 = vsel %vm2900_vm1, 1.0, %v6814_v50  ;;  %v2905_v7 = vsel %vm2901_vm15, 1.0, %v6814_v50 }
 0x382   :  { %v3268_v57 = vsel %vm3267_vm14, %v3265_v31, %v3262_v29  ;;  %v2912_v8 = vmul.f32 %v2908_v61, %v2904_v43  ;;  %4106 = vrcp.f32 %v6254_v5  ;;  %v3322_v11 = vsel %vm3318_vm8, 1.0, %v6814_v50 }
 0x383   :  { %v3303_v35 = vsub.f32 %v3779_v4, %v3299_v47  ;;  %v3272_v33 = vadd.f32 %v3268_v57, %v3232_v26  ;;  %v3749_v14 = vclamps-f32 %v2923_v62, 1.0  ;;  %v6901_v4 = vld [vmem:[#allocation48_spill] sm:$0xff]  ;;  %v2910_v26 = vsub.f32 1.0, %v6081_v60 }
 0x384   :  { %v4101_v13 = vpop.eup %4100  ;;  %v2909_v47 = vsub.f32 1.0, %v6901_v4  ;;  %4108 = vrcp.f32 %v6295_v3  ;;  %v3321_v4 = vsel %vm3317_vm7, 1.0, %v6814_v50 }
 0x385   :  { %v3307_v38 = vsel %vm1689_vm2, %v3303_v35, 0.0  ;;  %v3296_v24 = vsub.f32 %v3292_v28, %v3272_v33  ;;  %v2924_v37 = vmul.f32 %v4101_v13, %v2912_v8  ;;  %v4103_v2 = vpop.eup %4102  ;;  %4110 = vrcp.f32 %v6327_v19 }
 0x386   :  { %3313 = vadd.xlane.f32.xlu0 %v3307_v38  ;;  %v2913_v29 = vmul.f32 %v2909_v47, %v2905_v7  ;;  %v4105_v28 = vpop.eup %4104  ;;  %v3114_v13 = vsel %vm3110_vm4, 1.0, %v6814_v50  ;;  %4112 = vrcp.f32 %v6368_v52  ;;  %v3325_v52 = vsub.f32 1.0, %v6304_v59 }
 0x387   :  { %v3300_v55 = vmul.f32 2.0, %v3296_v24  ;;  %v3750_v23 = vclamps-f32 %v2924_v37, 1.0  ;;  %v3122_v8 = vmul.f32 %v3118_v45, %v3114_v13  ;;  %4114 = vrcp.f32 %v6394_v32 }
 0x388   :  { %v2892_v1 = vpop.xlane.xlu2 %2891  ;;  %v2925_v31 = vmul.f32 %v4103_v2, %v2913_v29  ;;  %v4107_v62 = vpop.eup %4106  ;;  %v3329_v2 = vmul.f32 %v3325_v52, %v3321_v4  ;;  %4116 = vrcp.f32 %v6430_v53 }
 0x389   :  { %v3304_v58 = vsub.f32 %v3780_v22, %v3300_v55  ;;  %v2935_v9 = vsel %vm1690_vm5, %v2892_v1, %v3749_v14  ;;  %4118 = vrcp.f32 %v6532_v30  ;;  %v3324_v30 = vsel %vm3320_vm10, 1.0, %v6814_v50 }
 0x38a   :  { %3753 = vst [vmem:[%s6693_s8 + $0xa0] sm:$0xff] %v2935_v9  ;;  %v3751_v35 = vclamps-f32 %v2925_v31, 1.0  ;;  %v4109_v20 = vpop.eup %4108  ;;  %v3113_v9 = vsel %vm3109_vm3, 1.0, %v6814_v50  ;;  %4120 = vrcp.f32 %v6552_v51 }
 0x38b   :  { %v3308_v10 = vsel %vm1689_vm2, %v3304_v58, 0.0  ;;  %vm2902_vm2 = vcmp.ge.f32.partialorder %v5958_v63, 0.0  ;;  %v3116_v63 = vsub.f32 1.0, %v6133_v27  ;;  %v3117_v27 = vsub.f32 1.0, %v6903_v6  ;;  %v4111_v61 = vpop.eup %4110 }
 0x38c   :  { %3315 = vadd.xlane.f32.xlu1 %v3308_v10  ;;  %v2906_v38 = vsel %vm2902_vm2, 1.0, %v6814_v50  ;;  %v3134_v46 = vmul.f32 %v4111_v61, %v3122_v8 }
 0x38d   :  { %v2914_v33 = vmul.f32 %v2910_v26, %v2906_v38  ;;  %v3120_v55 = vmul.f32 %v3116_v63, %v3112_v15  ;;  %v3121_v41 = vmul.f32 %v3117_v27, %v3113_v9  ;;  %v3330_v26 = vmul.f32 %v3326_v16, %v3322_v11 }
 0x38e   :  { %v3767_v39 = vclamps-f32 %v3134_v46, 1.0 }
 0x38f   :  { %v2926_v54 = vmul.f32 %v4105_v28, %v2914_v33  ;;  %v3132_v14 = vmul.f32 %v4107_v62, %v3120_v55  ;;  %v3133_v3 = vmul.f32 %v4109_v20, %v3121_v41  ;;  %v3323_v33 = vsel %vm3319_vm9, 1.0, %v6814_v50 }
 0x391   :  { %v3752_v60 = vclamps-f32 %v2926_v54, 1.0  ;;  %v3765_v5 = vclamps-f32 %v3132_v14, 1.0  ;;  %v3766_v10 = vclamps-f32 %v3133_v3, 1.0  ;;  %v3331_v54 = vmul.f32 %v3327_v17, %v3323_v33 }
 0x394   :  { %v2894_v25 = vpop.xlane.xlu0 %2893 }
 0x395   :  { %v2936_v40 = vsel %vm1690_vm5, %v2894_v25, %v3750_v23  ;;  %v4113_v25 = vpop.eup %4112 }
 0x396   :  { %3754 = vst [vmem:[%s6693_s8 + $0xa8] sm:$0xff] %v2936_v40  ;;  %v3123_v40 = vmul.f32 %v3119_v44, %v3115_v18  ;;  %v4115_v12 = vpop.eup %4114 }
 0x397   :  { %v3341_v31 = vmul.f32 %v4115_v12, %v3329_v2  ;;  %v4117_v59 = vpop.eup %4116 }
 0x398   :  { %v3135_v34 = vmul.f32 %v4113_v25, %v3123_v40  ;;  %v3342_v49 = vmul.f32 %v4117_v59, %v3330_v26  ;;  %v4119_v38 = vpop.eup %4118 }
 0x399   :  { %v3781_v32 = vclamps-f32 %v3341_v31, 1.0  ;;  %v3343_v63 = vmul.f32 %v4119_v38, %v3331_v54 }
 0x39a   :  { %v3768_v47 = vclamps-f32 %v3135_v34, 1.0 }
 0x39b   :  { %v3783_v62 = vclamps-f32 %v3343_v63, 1.0 }
 0x3a0   :  { %v2896_v56 = vpop.xlane.xlu1 %2895 }
 0x3a1   :  { %v2937_v57 = vsel %vm1690_vm5, %v2896_v56, %v3751_v35  ;;  %v3782_v56 = vclamps-f32 %v3342_v49, 1.0 }
 0x3a2   :  { %3755 = vst [vmem:[%s6693_s8 + $0xb0] sm:$0xff] %v2937_v57 }
 0x3ab   :  { %v2898_v24 = vpop.xlane.xlu2 %2897 }
 0x3ac   :  { %v2938_v22 = vsel %vm1690_vm5, %v2898_v24, %v3752_v60  ;;  %v3328_v60 = vsub.f32 1.0, %v6548_v21  ;;  %v4121_v24 = vpop.eup %4120 }
 0x3ad   :  { %3756 = vst [vmem:[%s6693_s8 + $0xb8] sm:$0xff] %v2938_v22 }
 0x3ae   :  { %v3332_v42 = vmul.f32 %v3328_v60, %v3324_v30 }
 0x3b0   :  { %v3344_v22 = vmul.f32 %v4121_v24, %v3332_v42 }
 0x3b2   :  { %v3784_v51 = vclamps-f32 %v3344_v22, 1.0 }
 0x3b3   :  { %v3101_v1 = vpop.xlane.xlu0 %3100 }
 0x3b4   :  { %v3144_v58 = vsel %vm1690_vm5, %v3101_v1, %v3765_v5 }
 0x3b5   :  { %3769 = vst [vmem:[%s6693_s8 + $0xc0] sm:$0xff] %v3144_v58 }
 0x3bc   :  { %v3103_v43 = vpop.xlane.xlu1 %3102 }
 0x3bd   :  { %v3145_v37 = vsel %vm1690_vm5, %v3103_v43, %v3766_v10 }
 0x3be   :  { %3770 = vst [vmem:[%s6693_s8 + $0xc8] sm:$0xff] %v3145_v37 }
 0x3c3   :  { %v3105_v19 = vpop.xlane.xlu2 %3104 }
 0x3c4   :  { %v3146_v23 = vsel %vm1690_vm5, %v3105_v19, %v3767_v39 }
 0x3c5   :  { %3771 = vst [vmem:[%s6693_s8 + $0xd0] sm:$0xff] %v3146_v23 }
 0x3ce   :  { %v3107_v7 = vpop.xlane.xlu0 %3106 }
 0x3cf   :  { %v3147_v29 = vsel %vm1690_vm5, %v3107_v7, %v3768_v47 }
 0x3d0   :  { %3772 = vst [vmem:[%s6693_s8 + $0xd8] sm:$0xff] %v3147_v29 }
 0x3d4   :  { %v3310_v35 = vpop.xlane.xlu1 %3309 }
 0x3d5   :  { %v3353_v53 = vsel %vm1690_vm5, %v3310_v35, %v3781_v32 }
 0x3d6   :  { %3785 = vst [vmem:[%s6693_s8 + $0xe0] sm:$0xff] %v3353_v53 }
 0x3db   :  { %v3312_v57 = vpop.xlane.xlu2 %3311 }
 0x3dc   :  { %v3354_v28 = vsel %vm1690_vm5, %v3312_v57, %v3782_v56 }
 0x3dd   :  { %3786 = vst [vmem:[%s6693_s8 + $0xe8] sm:$0xff] %v3354_v28 }
 0x3f9   :  { %v3314_v15 = vpop.xlane.xlu0 %3313 }
 0x3fa   :  { %v3355_v36 = vsel %vm1690_vm5, %v3314_v15, %v3783_v62 }
 0x3fb   :  { %3787 = vst [vmem:[%s6693_s8 + $0xf0] sm:$0xff] %v3355_v36 }
 0x3ff   :  { %v3316_v55 = vpop.xlane.xlu1 %3315 }
 0x400   :  { %v3356_v0 = vsel %vm1690_vm5, %v3316_v55, %v3784_v51 }
 0x401   :  { %3788 = vst [vmem:[%s6693_s8 + $0xf8] sm:$0xff] %v3356_v0 }

</bundles_post_ra>
